<compile_context>
chip_gen: v5e
topology: v5e:2x2
jax: 0.10.0
libtpu: 0.0.40
codegen_flags: <defaults>
</compile_context>

<pallas_src>
import math

import numpy as np

import jax
import jax.numpy as jnp
from jax.experimental import pallas as pl
from jax.experimental.pallas import tpu as pltpu

_EPS = 1e-5


# ----------------------------- Pallas kernels ------------------------------


def _make_band_conv_kernel(*, Kh, Hi, Lin, cols_main, cols_extra, bn, relu,
                           has_res, B):
    """Fused (BN affine + ReLU) -> band-matmul conv -> (+residual) -> stats kernel.

    One grid step processes B images.  The activation is lane-fused: (B, Hi, Lin)
    with Lin = W * Cin (channel minor).  The conv is one bf16 MXU matmul:
        A (B*Hi, Kh*Lin) @ band (Kh*Lin, cols_main+cols_extra) -> f32.
    """

    def kernel(*refs):
        it = iter(refs)
        x_ref = next(it)                      # (B, Hi, Lin) f32
        scale_ref = next(it) if bn else None  # (1, Lin)
        shift_ref = next(it) if bn else None  # (1, Lin)
        w_ref = next(it)                      # (Kh*Lin, cols_main+cols_extra) bf16
        res_ref = next(it) if has_res else None
        out_ref = next(it)                    # (B, Hi, cols_main) f32
        out2_ref = next(it) if cols_extra else None
        sum_ref = next(it)                    # (1, 1, cols_main)
        sq_ref = next(it)                     # (1, 1, cols_main)

        # ---- prologue: folded-BN per-lane affine + ReLU (f32 VPU), bf16 cast ----
        a = x_ref[...]
        if bn:
            a = (a * scale_ref[...].reshape(1, 1, Lin)
                 + shift_ref[...].reshape(1, 1, Lin))
        if relu:
            a = jnp.maximum(a, 0.0)
        a = a.astype(jnp.bfloat16)

        # ---- H zero-padding in VMEM only (no HBM pad pass) ----------------------
        zrow = jnp.zeros((B, 1, Lin), jnp.bfloat16)
        if Kh == 3:
            p = jnp.concatenate([zrow, a, zrow], axis=1)      # (B, Hi+2, Lin)
        else:  # Kh == 2 (space-to-depth stride-2 conv, top pad only)
            p = jnp.concatenate([zrow, a], axis=1)            # (B, Hi+1, Lin)

        # ---- build A: Kh row-shifted copies, lane-concatenated (128-aligned) ----
        shifted = [p[:, ky:ky + Hi, :] for ky in range(Kh)]
        A = jnp.concatenate(shifted, axis=-1).reshape(B * Hi, Kh * Lin)

        # ---- ONE big-K bf16 matmul, f32 accumulation -----------------------------
        acc = jnp.dot(A, w_ref[...], preferred_element_type=jnp.float32)

        # ---- epilogue: shortcut columns, residual add, lane-dense stores, stats --
        out = acc[:, :cols_main] if cols_extra else acc
        if has_res:
            out = out + res_ref[...].reshape(B * Hi, cols_main)
        out_ref[...] = out.reshape(B, Hi, cols_main)
        if cols_extra:
            out2_ref[...] = acc[:, cols_main:].reshape(B, Hi, cols_extra)

        # per-step lane sums / sums-of-squares feed the *next* BatchNorm.
        sum_ref[...] = jnp.sum(out, axis=0, keepdims=True).reshape(1, 1, cols_main)
        sq_ref[...] = jnp.sum(out * out, axis=0, keepdims=True).reshape(1, 1, cols_main)

    return kernel


# ------------------------------ Pallas wrappers -----------------------------


def _pick_block_batch(n, max_b=8):
    """Images per grid step: divisor of n, <= max_b, and >=2 grid steps if n >= 2
    (keeps both v7x TensorCores busy); VMEM stays well under 16 MiB at max_b=8."""
    if n <= 1:
        return 1
    cap = max(1, min(max_b, n // 2))
    b = 1
    for d in range(1, cap + 1):
        if n % d == 0:
            b = d
    return b


def fused_band_conv(x, band, *, Kh, cols_main, cols_extra=0, scale_l=None,
                    shift_l=None, relu=True, residual=None, max_b=8):
    """x: (N, Hi, Lin) f32 lane-fused activation (Lin = W * Cin).
    band: (Kh*Lin, cols_main + cols_extra) bf16 band weight matrix.
    Returns (out, [shortcut_out,] lane_sum, lane_sumsq)."""
    N, Hi, Lin = x.shape
    Kband, cols_tot = band.shape
    assert Kband == Kh * Lin and cols_tot == cols_main + cols_extra
    bn = scale_l is not None
    B = _pick_block_batch(N, max_b)
    steps = N // B

    kernel = _make_band_conv_kernel(Kh=Kh, Hi=Hi, Lin=Lin, cols_main=cols_main,
                                    cols_extra=cols_extra, bn=bn, relu=relu,
                                    has_res=residual is not None, B=B)

    in_specs = [pl.BlockSpec((B, Hi, Lin), lambda n: (n, 0, 0))]
    inputs = [x]
    if bn:
        in_specs += [pl.BlockSpec((1, Lin), lambda n: (0, 0)),
                     pl.BlockSpec((1, Lin), lambda n: (0, 0))]
        inputs += [scale_l.reshape(1, Lin).astype(jnp.float32),
                   shift_l.reshape(1, Lin).astype(jnp.float32)]
    in_specs.append(pl.BlockSpec((Kband, cols_tot), lambda n: (0, 0)))
    inputs.append(band)
    if residual is not None:
        in_specs.append(pl.BlockSpec((B, Hi, cols_main), lambda n: (n, 0, 0)))
        inputs.append(residual)

    out_shape = [jax.ShapeDtypeStruct((N, Hi, cols_main), jnp.float32)]
    out_specs = [pl.BlockSpec((B, Hi, cols_main), lambda n: (n, 0, 0))]
    if cols_extra:
        out_shape.append(jax.ShapeDtypeStruct((N, Hi, cols_extra), jnp.float32))
        out_specs.append(pl.BlockSpec((B, Hi, cols_extra), lambda n: (n, 0, 0)))
    out_shape += [jax.ShapeDtypeStruct((steps, 1, cols_main), jnp.float32),
                  jax.ShapeDtypeStruct((steps, 1, cols_main), jnp.float32)]
    out_specs += [pl.BlockSpec((1, 1, cols_main), lambda n: (n, 0, 0)),
                  pl.BlockSpec((1, 1, cols_main), lambda n: (n, 0, 0))]

    return pl.pallas_call(
        kernel,
        grid=(steps,),
        in_specs=in_specs,
        out_specs=tuple(out_specs),
        out_shape=tuple(out_shape),
        compiler_params=pltpu.CompilerParams(
            dimension_semantics=("parallel",),          # batch steps across v7x cores
            vmem_limit_bytes=32 * 1024 * 1024),         # safe on v5e/v6e/v7x
    )(*inputs)


def head_pallas(x, scale, shift, fold, w, b):
    """Final BN (folded) + ReLU + avg_pool(HfxWf) + Linear, fused (lane-fused input)."""
    N, Hf, L = x.shape
    C, NC = w.shape
    Wf = L // C
    scale_l = jnp.tile(scale, Wf).reshape(1, L).astype(jnp.float32)
    shift_l = jnp.tile(shift, Wf).reshape(1, L).astype(jnp.float32)
    inv_hw = 1.0 / float(Hf * Wf)

    def kernel(x_ref, s_ref, t_ref, f_ref, w_ref, b_ref, o_ref):
        a = x_ref[...] * s_ref[...].reshape(1, 1, L) + t_ref[...].reshape(1, 1, L)
        a = jnp.maximum(a, 0.0)
        s = jnp.sum(a, axis=1)                                   # (N, L): sum over H
        pooled = jnp.dot(s, f_ref[...],
                         preferred_element_type=jnp.float32) * inv_hw   # (N, C)
        o_ref[...] = jnp.dot(pooled, w_ref[...],
                             preferred_element_type=jnp.float32) + b_ref[...]

    return pl.pallas_call(
        kernel,
        grid=(1,),
        in_specs=[
            pl.BlockSpec((N, Hf, L), lambda i: (0, 0, 0)),
            pl.BlockSpec((1, L), lambda i: (0, 0)),
            pl.BlockSpec((1, L), lambda i: (0, 0)),
            pl.BlockSpec((L, C), lambda i: (0, 0)),
            pl.BlockSpec((C, NC), lambda i: (0, 0)),
            pl.BlockSpec((1, NC), lambda i: (0, 0)),
        ],
        out_specs=pl.BlockSpec((N, NC), lambda i: (0, 0)),
        out_shape=jax.ShapeDtypeStruct((N, NC), jnp.float32),
        compiler_params=pltpu.CompilerParams(vmem_limit_bytes=32 * 1024 * 1024),
    )(x, scale_l, shift_l, fold, w, b.reshape(1, NC))


# --------------------------- JAX glue (tiny, 1x-volume) ----------------------


def _bn_scale_shift(stats, count, c, gamma, beta, eps=_EPS):
    """Fold training-mode BatchNorm (batch mean / biased variance, as PyTorch) into a
    per-channel scale/shift from the per-step lane sums emitted by the kernels."""
    sums, sumsqs = stats
    s = jnp.sum(sums.reshape(-1, c), axis=0)
    sq = jnp.sum(sumsqs.reshape(-1, c), axis=0)
    mean = s / count
    var = jnp.maximum(sq / count - mean * mean, 0.0)
    scale = gamma * jax.lax.rsqrt(var + eps)
    shift = beta - mean * scale
    return scale, shift


def _space_to_depth_fused(x, c):
    """(N, H, W*C) lane-fused -> (N, H//2, (W//2)*4C): lets a stride-2 3x3 conv run
    as a stride-1 2-tap band conv."""
    n, h, l = x.shape
    w = l // c
    x = x.reshape(n, h // 2, 2, w // 2, 2, c)
    x = jnp.transpose(x, (0, 1, 3, 2, 4, 5))
    return x.reshape(n, h // 2, (w // 2) * 4 * c)


# --------------------- host-side weight preprocessing (numpy) ----------------

_KMAP = {0: (0, 1), 1: (1, 0), 2: (1, 1)}      # kernel row/col -> (tap, s2d phase)


def _taps_3x3_np(w, w_sc=None):
    """(3,3,ci,co)[, 1x1 shortcut (ci,cs)] -> (9, ci, co+cs); shortcut on centre tap."""
    ci, co = w.shape[2], w.shape[3]
    taps = w.reshape(9, ci, co)
    if w_sc is None:
        return taps
    cs = w_sc.shape[1]
    full = np.zeros((9, ci, co + cs), np.float32)
    full[:, :, :co] = taps
    full[4, :, co:] = w_sc
    return full


def _taps_s2d_np(w, w_sc=None):
    """Stride-2 3x3 conv (+ optional stride-2 1x1 shortcut) rewritten for the
    space-to-depth input: -> (4, 4*ci, co+cs) with 2x2 taps."""
    ci, co = w.shape[2], w.shape[3]
    cs = 0 if w_sc is None else w_sc.shape[1]
    w4 = np.zeros((2, 2, 4, ci, co + cs), np.float32)
    for ky in range(3):
        ta, pr = _KMAP[ky]
        for kx in range(3):
            tb, pc = _KMAP[kx]
            w4[ta, tb, pr * 2 + pc, :, :co] = w[ky, kx]
    if w_sc is not None:
        w4[1, 1, 0, :, co:] = w_sc                 # centre tap, phase (0,0)
    return w4.reshape(4, 4 * ci, co + cs)


def _band_from_taps(taps, kh, wi, cout_main):
    """(Kh*Kw, ci, ctot) taps -> band weight matrix (Kh*Wi*ci, Wi*ctot) bf16.
    Column order: all main-output columns (w, co) first, then shortcut columns.
    W-direction zero padding (pad=1 left) is implicit in the band structure."""
    kk, ci, ctot = taps.shape
    kw = kk // kh
    t4 = taps.reshape(kh, kw, ci, ctot)

    def build(sub):
        cc = sub.shape[-1]
        bm = np.zeros((kh * wi * ci, wi * cc), np.float32)
        for w in range(wi):
            for ky in range(kh):
                for kx in range(kw):
                    wx = w + kx - 1
                    if 0 <= wx < wi:
                        r0 = (ky * wi + wx) * ci
                        bm[r0:r0 + ci, w * cc:(w + 1) * cc] = sub[ky, kx]
        return bm

    bm = build(t4[..., :cout_main])
    if ctot > cout_main:
        bm = np.concatenate([bm, build(t4[..., cout_main:])], axis=1)
    return jnp.asarray(bm, dtype=jnp.bfloat16)


# ------------------------------ model definition ----------------------------


def _conv_init(key, kh, kw, cin, cout):
    std = math.sqrt(2.0 / (kh * kw * cout))
    return std * jax.random.normal(key, (kh, kw, cin, cout), jnp.float32)


def init_params(key, depth=10, num_classes=10, widen_factor=1, m=4, img_hw=32):
    assert (depth - 4) % 6 == 0
    n = (depth - 4) // 6
    nch = [16, 16 * widen_factor, 32 * widen_factor, 64 * widen_factor]
    keys = iter(jax.random.split(key, 256))
    params = {"nch": nch}

    cin0 = 3 * m
    w0 = np.asarray(_conv_init(next(keys), 3, 3, cin0, nch[0]))
    params["conv1_band"] = _band_from_taps(_taps_3x3_np(w0), 3, img_hw, nch[0])
    params["conv1_cols"] = img_hw * nch[0]

    def make_block(cin, cout, stride, wi_in):
        equal = cin == cout
        blk = {
            "bn1_g": jnp.ones((cin,), jnp.float32),
            "bn1_b": jnp.zeros((cin,), jnp.float32),
            "bn2_g": jnp.ones((cout,), jnp.float32),
            "bn2_b": jnp.zeros((cout,), jnp.float32),
            "stride": stride, "equal": equal, "cin": cin, "cout": cout,
        }
        w1 = np.asarray(_conv_init(next(keys), 3, 3, cin, cout))
        w2 = np.asarray(_conv_init(next(keys), 3, 3, cout, cout))
        w_sc = None
        if not equal:
            std = math.sqrt(2.0 / cout)                 # 1x1 conv: n = 1*1*cout
            w_sc = np.asarray(std * jax.random.normal(next(keys), (cin, cout),
                                                      jnp.float32))
        if stride == 2:
            assert not equal, "equal block with stride 2 not supported"
            wo = wi_in // 2
            blk["band1"] = _band_from_taps(_taps_s2d_np(w1, w_sc), 2, wo, cout)
        else:
            wo = wi_in
            blk["band1"] = _band_from_taps(_taps_3x3_np(w1, w_sc), 3, wo, cout)
        blk["band2"] = _band_from_taps(_taps_3x3_np(w2), 3, wo, cout)
        return blk, wo

    def make_group(nb, cin, cout, stride, wi):
        blocks = []
        for i in range(nb):
            blk, wi = make_block(cin if i == 0 else cout, cout,
                                 stride if i == 0 else 1, wi)
            blocks.append(blk)
        return blocks, wi

    w = img_hw
    params["block1"], w = make_group(n, nch[0], nch[1], 1, w)
    params["block2"], w = make_group(n, nch[1], nch[2], 2, w)
    params["block3"], w = make_group(n, nch[2], nch[3], 2, w)

    params["bn_final_g"] = jnp.ones((nch[3],), jnp.float32)
    params["bn_final_b"] = jnp.zeros((nch[3],), jnp.float32)
    params["head_fold"] = jnp.asarray(np.tile(np.eye(nch[3], dtype=np.float32),
                                              (w, 1)))           # (Wf*C, C)
    params["fc_w"] = (1.0 / math.sqrt(nch[3])) * jax.random.normal(
        next(keys), (nch[3], num_classes), jnp.float32)
    params["fc_b"] = jnp.zeros((num_classes,), jnp.float32)  # Linear bias zeroed
    return params


def basic_block_forward(x, stats, blk):
    n, hx, lx = x.shape
    cin, cout = blk["cin"], blk["cout"]
    wx = lx // cin
    scale1, shift1 = _bn_scale_shift(stats, n * hx * wx, cin,
                                     blk["bn1_g"], blk["bn1_b"])

    if blk["equal"]:
        # out = relu(bn1(x)); block out = x + conv2(relu(bn2(conv1(out))))
        h, hs, hq = fused_band_conv(
            x, blk["band1"], Kh=3, cols_main=wx * cout,
            scale_l=jnp.tile(scale1, wx), shift_l=jnp.tile(shift1, wx), relu=True)
        ho, wo, res = hx, wx, x
    else:
        # non-equal: xa = relu(bn1(x)); conv1(xa) and the 1x1 shortcut(xa) share one
        # fused kernel (shortcut = extra band columns).
        if blk["stride"] == 2:
            # TODO(synk): fuse space-to-depth into the producing conv's epilogue.
            xin = _space_to_depth_fused(x, cin)
            ho, wo, kh, rep = hx // 2, wx // 2, 2, 4 * (wx // 2)
        else:
            xin, ho, wo, kh, rep = x, hx, wx, 3, wx
        h, sc, hs, hq = fused_band_conv(
            xin, blk["band1"], Kh=kh, cols_main=wo * cout, cols_extra=wo * cout,
            scale_l=jnp.tile(scale1, rep), shift_l=jnp.tile(shift1, rep), relu=True)
        res = sc

    scale2, shift2 = _bn_scale_shift((hs, hq), n * ho * wo, cout,
                                     blk["bn2_g"], blk["bn2_b"])
    out, osum, osq = fused_band_conv(
        h, blk["band2"], Kh=3, cols_main=wo * cout,
        scale_l=jnp.tile(scale2, wo), shift_l=jnp.tile(shift2, wo),
        relu=True, residual=res)
    return out, (osum, osq)


def wideresnet_b_forward(params, x_nchw):
    # TODO(synk): P2BE (binary embedding) is not defined in the reference source; this
    # reproduces forward(x, binary_embedding=False), so x must already carry 3*m chans.
    x = jnp.transpose(x_nchw, (0, 2, 3, 1)).astype(jnp.float32)      # NCHW -> NHWC
    n, h, w, c = x.shape
    x = x.reshape(n, h, w * c)                                       # lane-fused

    out, s, q = fused_band_conv(x, params["conv1_band"], Kh=3,
                                cols_main=params["conv1_cols"], relu=False)
    stats = (s, q)
    for blk in params["block1"] + params["block2"] + params["block3"]:
        out, stats = basic_block_forward(out, stats, blk)

    cf = params["nch"][3]
    nf, hf, lf = out.shape
    wf = lf // cf
    scale_f, shift_f = _bn_scale_shift(stats, nf * hf * wf, cf,
                                       params["bn_final_g"], params["bn_final_b"])
    return head_pallas(out, scale_f, shift_f, params["head_fold"],
                       params["fc_w"], params["fc_b"])


if __name__ == "__main__":
    key = jax.random.PRNGKey(0)
    kp, kx = jax.random.split(key)

    depth, num_classes, widen_factor, m = 10, 10, 1, 4
    params = init_params(kp, depth=depth, num_classes=num_classes,
                         widen_factor=widen_factor, m=m)

    # NCHW input like the PyTorch module; 32x32 so the hard-coded avg_pool2d(8)
    # exactly covers the 8x8 block3 output (3*m = 12 input channels).
    x = jax.random.normal(kx, (2, 3 * m, 32, 32), jnp.float32)

    logits = wideresnet_b_forward(params, x)
    jax.block_until_ready(logits)
    assert logits.shape == (2, num_classes), logits.shape
    print("KERNEL_OK")
</pallas_src>

<mosaic_0001>
module attributes {stable_mosaic.version = 11 : i64} {
  func.func @kernel(%arg0: i32, %arg1: memref<1x32x384xf32, #tpu.memory_space<vmem>>, %arg2: memref<1152x512xbf16, #tpu.memory_space<vmem>>, %arg3: memref<1x32x512xf32, #tpu.memory_space<vmem>>, %arg4: memref<1x1x512xf32, #tpu.memory_space<vmem>>, %arg5: memref<1x1x512xf32, #tpu.memory_space<vmem>>) attributes {dimension_semantics = [#tpu.dimension_semantics<parallel>], iteration_bounds = array<i64: 2>, scalar_prefetch = 0 : i64, scratch_operands = 0 : i64, tpu.core_type = #tpu.core_type<tc>, window_params = [{transform_indices = @transform_0, window_bounds = array<i64: 1, 32, 384>}, {pipeline_mode = #tpu.pipeline_mode<synchronous>, transform_indices = @transform_1, window_bounds = array<i64: 1152, 512>}, {transform_indices = @transform_2, window_bounds = array<i64: 1, 32, 512>}, {transform_indices = @transform_3, window_bounds = array<i64: 1, 1, 512>}, {transform_indices = @transform_4, window_bounds = array<i64: 1, 1, 512>}]} {
    %c0 = arith.constant 0 : index
    %c0_0 = arith.constant 0 : index
    %c0_1 = arith.constant 0 : index
    %0 = vector.load %arg1[%c0, %c0_0, %c0_1] : memref<1x32x384xf32, #tpu.memory_space<vmem>>, vector<1x32x384xf32>
    %1 = arith.truncf %0 : vector<1x32x384xf32> to vector<1x32x384xbf16>
    %cst = arith.constant 0.000000e+00 : bf16
    %2 = vector.broadcast %cst : bf16 to vector<1x1x384xbf16>
    %3 = tpu.concatenate %2, %1, %2 in 1 : vector<1x1x384xbf16>, vector<1x32x384xbf16>, vector<1x1x384xbf16> -> vector<1x34x384xbf16>
    %4 = vector.extract_strided_slice %3 {offsets = [0, 0, 0], sizes = [1, 32, 384], strides = [1, 1, 1]} : vector<1x34x384xbf16> to vector<1x32x384xbf16>
    %5 = vector.extract_strided_slice %3 {offsets = [0, 1, 0], sizes = [1, 32, 384], strides = [1, 1, 1]} : vector<1x34x384xbf16> to vector<1x32x384xbf16>
    %6 = vector.extract_strided_slice %3 {offsets = [0, 2, 0], sizes = [1, 32, 384], strides = [1, 1, 1]} : vector<1x34x384xbf16> to vector<1x32x384xbf16>
    %7 = tpu.concatenate %4, %5, %6 in 2 : vector<1x32x384xbf16>, vector<1x32x384xbf16>, vector<1x32x384xbf16> -> vector<1x32x1152xbf16>
    %8 = vector.shape_cast %7 : vector<1x32x1152xbf16> to vector<32x1152xbf16>
    %c0_2 = arith.constant 0 : index
    %c0_3 = arith.constant 0 : index
    %9 = vector.load %arg2[%c0_2, %c0_3] : memref<1152x512xbf16, #tpu.memory_space<vmem>>, vector<1152x512xbf16>
    %cst_4 = arith.constant dense<0.000000e+00> : vector<32x512xf32>
    %10 = tpu.matmul %8, %9, %cst_4 {dimension_numbers = #tpu.dot_dimension_numbers<[1], [0], [0], [1], [0, 0, 1, 1], [], []>} : vector<32x1152xbf16>, vector<1152x512xbf16>, vector<32x512xf32> -> vector<32x512xf32>
    %11 = vector.shape_cast %10 : vector<32x512xf32> to vector<1x32x512xf32>
    %c0_5 = arith.constant 0 : index
    %c0_6 = arith.constant 0 : index
    %c0_7 = arith.constant 0 : index
    %12 = vector.load %arg3[%c0_5, %c0_6, %c0_7] : memref<1x32x512xf32, #tpu.memory_space<vmem>>, vector<1x32x512xf32>
    tpu.vector_store %arg3[%c0_5, %c0_6, %c0_7], %11 {strides = array<i32>} : memref<1x32x512xf32, #tpu.memory_space<vmem>>, vector<1x32x512xf32>,
    %cst_8 = arith.constant dense<0.000000e+00> : vector<512xf32>
    %13 = vector.multi_reduction <add>, %10, %cst_8 [0] : vector<32x512xf32> to vector<512xf32>
    %14 = vector.shape_cast %13 : vector<512xf32> to vector<1x512xf32>
    %15 = vector.shape_cast %14 : vector<1x512xf32> to vector<1x1x512xf32>
    %c0_9 = arith.constant 0 : index
    %c0_10 = arith.constant 0 : index
    %c0_11 = arith.constant 0 : index
    %16 = vector.load %arg4[%c0_9, %c0_10, %c0_11] : memref<1x1x512xf32, #tpu.memory_space<vmem>>, vector<1x1x512xf32>
    tpu.vector_store %arg4[%c0_9, %c0_10, %c0_11], %15 {strides = array<i32>} : memref<1x1x512xf32, #tpu.memory_space<vmem>>, vector<1x1x512xf32>,
    %17 = arith.mulf %10, %10 : vector<32x512xf32>
    %cst_12 = arith.constant dense<0.000000e+00> : vector<512xf32>
    %18 = vector.multi_reduction <add>, %17, %cst_12 [0] : vector<32x512xf32> to vector<512xf32>
    %19 = vector.shape_cast %18 : vector<512xf32> to vector<1x512xf32>
    %20 = vector.shape_cast %19 : vector<1x512xf32> to vector<1x1x512xf32>
    %c0_13 = arith.constant 0 : index
    %c0_14 = arith.constant 0 : index
    %c0_15 = arith.constant 0 : index
    %21 = vector.load %arg5[%c0_13, %c0_14, %c0_15] : memref<1x1x512xf32, #tpu.memory_space<vmem>>, vector<1x1x512xf32>
    tpu.vector_store %arg5[%c0_13, %c0_14, %c0_15], %20 {strides = array<i32>} : memref<1x1x512xf32, #tpu.memory_space<vmem>>, vector<1x1x512xf32>,
    return
  }
  func.func @transform_0(%arg0: i32) -> (i32, i32, i32) {
    %c0_i32 = arith.constant 0 : i32
    %c0_i32_0 = arith.constant 0 : i32
    %c0_i32_1 = arith.constant 0 : i32
    return %arg0, %c0_i32, %c0_i32_0 : i32, i32, i32
  }
  func.func @transform_1(%arg0: i32) -> (i32, i32) {
    %c0_i32 = arith.constant 0 : i32
    %c0_i32_0 = arith.constant 0 : i32
    %c0_i32_1 = arith.constant 0 : i32
    return %c0_i32, %c0_i32_0 : i32, i32
  }
  func.func @transform_2(%arg0: i32) -> (i32, i32, i32) {
    %c0_i32 = arith.constant 0 : i32
    %c0_i32_0 = arith.constant 0 : i32
    %c0_i32_1 = arith.constant 0 : i32
    return %arg0, %c0_i32, %c0_i32_0 : i32, i32, i32
  }
  func.func @transform_3(%arg0: i32) -> (i32, i32, i32) {
    %c0_i32 = arith.constant 0 : i32
    %c0_i32_0 = arith.constant 0 : i32
    %c0_i32_1 = arith.constant 0 : i32
    return %arg0, %c0_i32, %c0_i32_0 : i32, i32, i32
  }
  func.func @transform_4(%arg0: i32) -> (i32, i32, i32) {
    %c0_i32 = arith.constant 0 : i32
    %c0_i32_0 = arith.constant 0 : i32
    %c0_i32_1 = arith.constant 0 : i32
    return %arg0, %c0_i32, %c0_i32_0 : i32, i32, i32
  }
}

</mosaic_0001>

<bundles_post_ra>
// kernel: tpu_custom_call.1
= control target key start
LH: loop header
LB: loop body
LE: loop exit
PB: predicated region body
PF: predicated region fallthrough
CT: control target
= control target key end

     0   :  { %10 = vsyncpa [#allocation3], 0  ;;  %s5668_s0 = inlined_call_operand.hbm [shape: f32[2,32,384], index: 0, kind: input, shape index: {}]   ;;  %s5669_s1 = inlined_call_operand.hbm [shape: bf16[1152,512], index: 1, kind: input, shape index: {}]   ;;  %s5670_s2 = inlined_call_operand.hbm [shape: f32[2,32,512], index: 2, kind: output, shape index: {0}]   ;;  %s5671_s3 = inlined_call_operand.hbm [shape: f32[2,1,512], index: 3, kind: output, shape index: {1}]   ;;  %s5672_s4 = inlined_call_operand.hbm [shape: f32[2,1,512], index: 4, kind: output, shape index: {2}]  }
   0x1   :  { %12 = vsyncpa [#allocation3 + $0x1], 0 }
   0x2   :  { %13 = vsyncpa [#allocation6], 0 }
   0x3   :  { %14 = vsyncpa [#allocation4], 0 }
   0x4   :  { %16 = vsyncpa [#allocation4 + $0x1], 0 }
   0x5   :  { %17 = vsyncpa [#allocation9], 0 }
   0x6   :  { %19 = vsyncpa [#allocation9 + $0x1], 0  ;;  %s4965_s15 = smov 0   ;;  %s4967_s16 = smov 0  }
   0x7   :  { %s4969_s17 = smov 0   ;;  %s4971_s18 = smov 0  }
   0x8 LB: > { %s4986_s19 = sadd.s32 4294967295, %s4931_s18   ;;  %s5673_s20 = sadd.s32 4294967294, %s4931_s18   ;;  %s4931_s18 = sphi %s4971_s18, %s5700_s18   ;;  %s4927_s17 = sphi %s4969_s17, %s5699_s17   ;;  %s4923_s16 = sphi %s4967_s16, %s5698_s16   ;;  %s4919_s15 = sphi %s4965_s15, %s5697_s15  }
   0x9   : > { %p45_p0 = scmp.ne.s32.totalorder %s4923_s16, %s4919_s15  ;;  %p46_p1 = scmp.eq.s32.totalorder %s4986_s19, 0 }
   0xa   : > { %p90_p2 = scmp.eq.s32.totalorder %s4986_s19, 1  ;;  %p96_p3 = scmp.eq.s32.totalorder %s5673_s20, 1 }
   0xb   : > { %p4997_p4 = por %p46_p1, %p45_p0  ;;  %p3206_p5 = scmp.ge.s32.totalorder %s4931_s18, 1 }
   0xc   : > { %p5002_p6 = por %p96_p3, %p45_p0  ;;  %p155_p7 = scmp.lt.s32.totalorder %s4931_s18, 3 }
   0xd   : > { %s166_s25 = sshll.u32 %s5669_s1, 4  ;;  %s4933_s27 = smov [#allocation5]   ;;  %s167_s25 = int_to_ptr.hbm [resolvable:$true] %s166_s25 }
   0xe   : > { %p5010_p8 = pnand %p3206_p5, %p155_p7  ;;  %s168_s28 = sshll.u32 %s4933_s27, 4  ;;  %s169_s28 = int_to_ptr.vmem [resolvable:$true] %s168_s28 }
   0xf   : > { %s5020_s29 = sadd.s32 1, %s4931_s18   ;;  %s4934_s30 = smov 256  }
  0x10   : > { %p4680_p9 = pneg %p5010_p8  ;;  %s4935_s5 = smov 16  }
  0x11   : > { %s29_s6 = ssub.s32 %s4931_s18, %s5020_s29  ;;  %s32_s7 = sadd.s32 1, %s4927_s17 }
  0x12   : > { %p4681_p10 = pnand %p4680_p9, %p46_p1  ;;  %p30_p12 = scmp.eq.s32.totalorder %s29_s6, 0 }
  0x13   : > { %p39_p13 = scmp.ne.s32.totalorder %s4927_s17, %s4923_s16  ;;  %p40_p0 = scmp.eq.s32.totalorder %s4931_s18, 0 }
  0x14   : > { %4683 = dma.hbm_to_vmem [thread:$0]  (!%p4681_p10), %s167_s25, 36864, %s169_s28, [#allocation6], %s4934_s30, %s4934_s30, %s4935_s5  }
  0x15   : > { %p4699_p3 = scmp.lt.s32.totalorder %s4931_s18, 2  ;;  %p41_p5 = por %p40_p0, %p39_p13 }
  0x16   : > { %s5030_s8 = scalar_select %p30_p12, %s4927_s17, %s32_s7  }
  0x17   : > { %p5034_p7 = por %p90_p2, %p39_p13  ;;  %s182_s10 = sand.u32 1, %s4927_s17  }
  0x18   : > { %s4666_s11 = smul.u32 96, %s4931_s18  ;;  %p5043_p9 = pnand %p4699_p3, %p41_p5 }
  0x19   : > { %s4665_s12 = smul.u32 96, %s182_s10  ;;  %s183_s30 = scalar_lea.sflag [#allocation3], %s182_s10 }
  0x1a   : > { %s191_s23 = scalar_lea.hbm %s5668_s0, %s4666_s11  ;;  %p4775_p10 = pneg %p5043_p9 }
  0x1b   : > { %s192_s25 = sshll.u32 %s191_s23, 4  ;;  %s186_s27 = scalar_lea.vmem [#allocation2], %s4665_s12  ;;  %s193_s25 = int_to_ptr.hbm [resolvable:$true] %s192_s25 }
  0x1c   : > { %s194_s28 = sshll.u32 %s186_s27, 4  ;;  %s4771_s5 = sshra.s32 %s193_s25, 4  ;;  %s195_s28 = int_to_ptr.vmem [resolvable:$true] %s194_s28  ;;  %s4772_s5 = int_to_ptr.hbm [resolvable:$true] %s4771_s5 }
  0x1d   : > { %s4773_s6 = scalar_lea.hbm %s4772_s5, 96  ;;  %s4778_s13 = scalar_lea.hbm %s5668_s0, 192 }
  0x1e   : > { %p4774_p2 = scmp.ne.s32.totalorder %s4772_s5, %s4773_s6  ;;  %p4779_p0 = scmp.lt.s32.totalorder %s4772_s5, %s5668_s0 }
  0x1f   : > { %p4780_p3 = scmp.lt.s32.totalorder %s4778_s13, %s4773_s6 }
  0x20   : > { %p4776_p12 = pnand %p4775_p10, %p4774_p2 }
  0x21   : > { %p4781_p5 = por %p4780_p3, %p4779_p0 }
  0x22   : > { %p4777_p13 = pneg %p4776_p12 }
  0x24   : > { %p4782_p11 = pnand %p4781_p5, %p4777_p13 }
  0x26   : > { %4785 = shalt.err (!%p4782_p11)
}
  0x27   : > { %s4936_s10 = smov 384   ;;  %s4937_s12 = smov 24  }
  0x28   : > { %4687 = dma.hbm_to_vmem [thread:$0]  (!%p5043_p9), %s193_s25, 1536, %s195_s28, %s183_s30, %s4936_s10, %s4936_s10, %s4937_s12  }
  0x29   : > { %206 = sbr.rel (%p5010_p8) target bundleno = 559 (0x22f), region = 28 }
  0x2e   : > { %s5060_s23 = sand.u32 1, %s4923_s16  }
  0x2f   : > { %s4667_s20 = smul.u32 96, %s5060_s23  ;;  %s209_s27 = scalar_lea.sflag [#allocation3], %s5060_s23 }
  0x31   : > { %s5064_s5 = scalar_lea.vmem [#allocation2], %s4667_s20 }
  0x32   : > { %4902 = dma.done.wait (%p4997_p4), %s209_s27, 1536  }
  0x33   : > { %4904 = vsyncadd (%p4997_p4), %s209_s27, 4294965760 }
  0x34   : > { %4906 = dma.done.wait (%p46_p1), [#allocation6], 36864  }
  0x35   : > { %4908 = vsyncadd (%p46_p1), [#allocation6], 4294930432  ;;  %v3329_v0 = vld [vmem:[#allocation5 + $0xe0] sm:$0xf]  ;;  %v4406_v1 = vld [vmem:[#allocation5 + $0xec] sm:$0xf0] }
  0x36   : > { %v3457_v2 = vld [vmem:[#allocation5 + $0x1e0] sm:$0xf]  ;;  %v3330_v3 = vor.u32 %v4406_v1, %v3329_v0  ;;  %v4438_v4 = vld [vmem:[#allocation5 + $0x1ec] sm:$0xf0]  ;;  %vm300_vm0 = vsmask.f32 256 }
  0x37   : > { %v3585_v5 = vld [vmem:[#allocation5 + $0x2e0] sm:$0xf]  ;;  %v4470_v6 = vld [vmem:[#allocation5 + $0x2ec] sm:$0xf0]  ;;  %v3458_v7 = vor.u32 %v4438_v4, %v3457_v2  ;;  %vm355_vm1 = vcmask 1040384   ;;  %vm436_vm4 = vcmask 1046528  }
  0x38   : > { %v3586_v8 = vor.u32 %v4470_v6, %v3585_v5  ;;  %v3713_v9 = vld [vmem:[#allocation5 + $0x3e0] sm:$0xf]  ;;  %v4502_v10 = vld [vmem:[#allocation5 + $0x3ec] sm:$0xf0]  ;;  %2186 = vmatpush.bf16.msra.mxu0 %v3330_v3  ;;  %vm363_vm2 = vsmask.f32 7424  ;;  %vm5156_vm3 = vmand %vm355_vm1, %vm300_vm0 }
  0x39   : > { %v3313_v11 = vld [vmem:[#allocation5 + $0xc0] sm:$0xf]  ;;  %v3714_v12 = vor.u32 %v4502_v10, %v3713_v9  ;;  %v4402_v13 = vld [vmem:[#allocation5 + $0xcc] sm:$0xf0]  ;;  %2205 = vmatpush.bf16.msra.mxu1 %v3458_v7  ;;  %s3212_s21 = sshll.u32 %s5060_s23, 7  ;;  %s4664_s24 = sshll.u32 %s4986_s19, 7 }
  0x3a   : > { %v3441_v14 = vld [vmem:[#allocation5 + $0x1c0] sm:$0xf]  ;;  %v4434_v15 = vld [vmem:[#allocation5 + $0x1cc] sm:$0xf0]  ;;  %2224 = vmatpush.bf16.msra.mxu2 %v3586_v8  ;;  %v3314_v16 = vor.u32 %v4402_v13, %v3313_v11  ;;  %s5433_s26 = scalar_lea.vmem [#allocation7], %s3212_s21  ;;  %s3027_s30 = scalar_lea.hbm %s5670_s2, %s4664_s24 }
  0x3b   : > { %v3442_v17 = vor.u32 %v4434_v15, %v3441_v14  ;;  %v3569_v18 = vld [vmem:[#allocation5 + $0x2c0] sm:$0xf]  ;;  %v4466_v19 = vld [vmem:[#allocation5 + $0x2cc] sm:$0xf0]  ;;  %2243 = vmatpush.bf16.msra.mxu3 %v3714_v12  ;;  %s3028_s6 = sshll.u32 %s5433_s26, 4  ;;  %s3030_s7 = sshll.u32 %s3027_s30, 4  ;;  %s5575_s6 = int_to_ptr.vmem [resolvable:$true] %s3028_s6  ;;  %s5577_s7 = int_to_ptr.hbm [resolvable:$true] %s3030_s7 }
  0x3c   : > { %v3697_v20 = vld [vmem:[#allocation5 + $0x3c0] sm:$0xf]  ;;  %v3570_v21 = vor.u32 %v4466_v19, %v3569_v18  ;;  %v4498_v22 = vld [vmem:[#allocation5 + $0x3cc] sm:$0xf0]  ;;  %2187 = vmatpush.bf16.msra.mxu0 %v3314_v16  ;;  %s3006_s11 = scalar_lea.sflag [#allocation4], %s5060_s23  ;;  %s4815_s13 = sshra.s32 %s5577_s7, 4  ;;  %s4816_s13 = int_to_ptr.hbm [resolvable:$true] %s4815_s13 }
  0x3d   : > { %v3297_v23 = vld [vmem:[#allocation5 + $0xa0] sm:$0xf]  ;;  %v4398_v24 = vld [vmem:[#allocation5 + $0xac] sm:$0xf0]  ;;  %v3698_v25 = vor.u32 %v4498_v22, %v3697_v20  ;;  %2206 = vmatpush.bf16.msra.mxu1 %v3442_v17  ;;  %s4817_s14 = scalar_lea.hbm %s4816_s13, 128  ;;  %s4821_s20 = scalar_lea.hbm %s5670_s2, 256 }
  0x3e   : > { %v3425_v26 = vld [vmem:[#allocation5 + $0x1a0] sm:$0xf]  ;;  %v4430_v27 = vld [vmem:[#allocation5 + $0x1ac] sm:$0xf0]  ;;  %v3298_v29 = vor.u32 %v4398_v24, %v3297_v23  ;;  %2225 = vmatpush.bf16.msra.mxu2 %v3570_v21  ;;  %p4818_p1 = scmp.ne.s32.totalorder %s4816_s13, %s4817_s14  ;;  %p4822_p11 = scmp.lt.s32.totalorder %s4816_s13, %s5670_s2 }
  0x3f   : > { %v3553_v28 = vld [vmem:[#allocation5 + $0x2a0] sm:$0xf]  ;;  %v4462_v30 = vld [vmem:[#allocation5 + $0x2ac] sm:$0xf0]  ;;  %v3426_v33 = vor.u32 %v4430_v27, %v3425_v26  ;;  %2244 = vmatpush.bf16.msra.mxu3 %v3698_v25  ;;  %v255_v27 = vld [vmem:[%s5064_s5 + $0x8] sm:$0xff]  ;;  %p4823_p9 = scmp.lt.s32.totalorder %s4821_s20, %s4817_s14 }
  0x40   : > { %v3681_v31 = vld [vmem:[#allocation5 + $0x3a0] sm:$0xf]  ;;  %v4494_v32 = vld [vmem:[#allocation5 + $0x3ac] sm:$0xf0]  ;;  %v3554_v34 = vor.u32 %v4462_v30, %v3553_v28  ;;  %2188 = vmatpush.bf16.msra.mxu0 %v3298_v29  ;;  %p4819_p4 = pnand %p4818_p1, %p5034_p7 }
  0x41   : > { %v3281_v35 = vld [vmem:[#allocation5 + $0x80] sm:$0xf]  ;;  %v4394_v36 = vld [vmem:[#allocation5 + $0x8c] sm:$0xf0]  ;;  %v3682_v38 = vor.u32 %v4494_v32, %v3681_v31  ;;  %2207 = vmatpush.bf16.msra.mxu1 %v3426_v33  ;;  %v257_v31 = vld [vmem:[%s5064_s5 + $0x18] sm:$0xff]  ;;  %p4824_p2 = por %p4823_p9, %p4822_p11 }
  0x42   : > { %v3409_v37 = vld [vmem:[#allocation5 + $0x180] sm:$0xf]  ;;  %v4426_v39 = vld [vmem:[#allocation5 + $0x18c] sm:$0xf0]  ;;  %v3282_v44 = vor.u32 %v4394_v36, %v3281_v35  ;;  %2226 = vmatpush.bf16.msra.mxu2 %v3554_v34  ;;  %p4820_p8 = pneg %p4819_p4 }
  0x43   : > { %v3537_v40 = vld [vmem:[#allocation5 + $0x280] sm:$0xf]  ;;  %v4458_v41 = vld [vmem:[#allocation5 + $0x28c] sm:$0xf0]  ;;  %v3410_v46 = vor.u32 %v4426_v39, %v3409_v37  ;;  %2245 = vmatpush.bf16.msra.mxu3 %v3682_v38  ;;  %v261_v37 = vld [vmem:[%s5064_s5 + $0x38] sm:$0xff] }
  0x44   : > { %v3665_v42 = vld [vmem:[#allocation5 + $0x380] sm:$0xf]  ;;  %v4490_v43 = vld [vmem:[#allocation5 + $0x38c] sm:$0xf0]  ;;  %v3538_v47 = vor.u32 %v4458_v41, %v3537_v40  ;;  %2189 = vmatpush.bf16.msra.mxu0 %v3282_v44  ;;  %v263_v38 = vld [vmem:[%s5064_s5 + $0x48] sm:$0xff]  ;;  %p4825_p10 = pnand %p4824_p2, %p4820_p8 }
  0x45   : > { %v3265_v45 = vld [vmem:[#allocation5 + $0x60] sm:$0xf]  ;;  %v4390_v48 = vld [vmem:[#allocation5 + $0x6c] sm:$0xf0]  ;;  %v3666_v51 = vor.u32 %v4490_v43, %v3665_v42  ;;  %2208 = vmatpush.bf16.msra.mxu1 %v3410_v46  ;;  %v259_v46 = vld [vmem:[%s5064_s5 + $0x28] sm:$0xff] }
  0x46   : > { %v3393_v49 = vld [vmem:[#allocation5 + $0x160] sm:$0xf]  ;;  %v4422_v50 = vld [vmem:[#allocation5 + $0x16c] sm:$0xf0]  ;;  %v3266_v58 = vor.u32 %v4390_v48, %v3265_v45  ;;  %2227 = vmatpush.bf16.msra.mxu2 %v3538_v47 }
  0x47   : > { %v3521_v52 = vld [vmem:[#allocation5 + $0x260] sm:$0xf]  ;;  %v4454_v53 = vld [vmem:[#allocation5 + $0x26c] sm:$0xf0]  ;;  %v3394_v63 = vor.u32 %v4422_v50, %v3393_v49  ;;  %2246 = vmatpush.bf16.msra.mxu3 %v3666_v51  ;;  %v269_v50 = vpack.c.bf16 %v259_v46, %v259_v46 }
  0x48   : > { %v3649_v54 = vld [vmem:[#allocation5 + $0x360] sm:$0xf]  ;;  %v4486_v55 = vld [vmem:[#allocation5 + $0x36c] sm:$0xf0]  ;;  %v3522_v0 = vor.u32 %v4454_v53, %v3521_v52  ;;  %2190 = vmatpush.bf16.msra.mxu0 %v3266_v58 }
  0x49   : > { %v3249_v56 = vld [vmem:[#allocation5 + $0x40] sm:$0xf]  ;;  %v4386_v57 = vld [vmem:[#allocation5 + $0x4c] sm:$0xf0]  ;;  %v3650_v5 = vor.u32 %v4486_v55, %v3649_v54  ;;  %2209 = vmatpush.bf16.msra.mxu1 %v3394_v63 }
  0x4a   : > { %v3377_v59 = vld [vmem:[#allocation5 + $0x140] sm:$0xf]  ;;  %v4418_v60 = vld [vmem:[#allocation5 + $0x14c] sm:$0xf0]  ;;  %v3250_v12 = vor.u32 %v4386_v57, %v3249_v56  ;;  %2228 = vmatpush.bf16.msra.mxu2 %v3522_v0 }
  0x4b   : > { %v3505_v61 = vld [vmem:[#allocation5 + $0x240] sm:$0xf]  ;;  %v4450_v62 = vld [vmem:[#allocation5 + $0x24c] sm:$0xf0]  ;;  %v3378_v16 = vor.u32 %v4418_v60, %v3377_v59  ;;  %2247 = vmatpush.bf16.msra.mxu3 %v3650_v5 }
  0x4c   : > { %v3633_v1 = vld [vmem:[#allocation5 + $0x340] sm:$0xf]  ;;  %v4482_v2 = vld [vmem:[#allocation5 + $0x34c] sm:$0xf0]  ;;  %v3506_v17 = vor.u32 %v4450_v62, %v3505_v61  ;;  %2191 = vmatpush.bf16.msra.mxu0 %v3250_v12  ;;  %v287_v61 = vunpack.c.l.b16 %v269_v50 }
  0x4d   : > { %v5074_v3 = vld [vmem:[#allocation5 + $0x20] sm:$0xf]  ;;  %v5076_v4 = vld [vmem:[#allocation5 + $0x2c] sm:$0xf0]  ;;  %v3634_v21 = vor.u32 %v4482_v2, %v3633_v1  ;;  %2210 = vmatpush.bf16.msra.mxu1 %v3378_v16 }
  0x4e   : > { %v5078_v6 = vld [vmem:[#allocation5 + $0x120] sm:$0xf]  ;;  %v5080_v7 = vld [vmem:[#allocation5 + $0x12c] sm:$0xf0]  ;;  %v3234_v22 = vor.u32 %v5076_v4, %v5074_v3  ;;  %2229 = vmatpush.bf16.msra.mxu2 %v3506_v17 }
  0x4f   : > { %v5082_v8 = vld [vmem:[#allocation5 + $0x220] sm:$0xf]  ;;  %v5084_v9 = vld [vmem:[#allocation5 + $0x22c] sm:$0xf0]  ;;  %v3362_v23 = vor.u32 %v5080_v7, %v5078_v6  ;;  %2248 = vmatpush.bf16.msra.mxu3 %v3634_v21 }
  0x50   : > { %v5086_v10 = vld [vmem:[#allocation5 + $0x320] sm:$0xf]  ;;  %v5088_v11 = vld [vmem:[#allocation5 + $0x32c] sm:$0xf0]  ;;  %v3490_v28 = vor.u32 %v5084_v9, %v5082_v8  ;;  %2192 = vmatpush.bf16.msra.mxu0 %v3234_v22 }
  0x51   : > { %v5090_v13 = vld [vmem:[#allocation5] sm:$0xf]  ;;  %v5092_v14 = vld [vmem:[#allocation5 + $0xc] sm:$0xf0]  ;;  %v3618_v29 = vor.u32 %v5088_v11, %v5086_v10  ;;  %2211 = vmatpush.bf16.msra.mxu1 %v3362_v23 }
  0x52   : > { %v5094_v15 = vld [vmem:[#allocation5 + $0x100] sm:$0xf]  ;;  %v5096_v18 = vld [vmem:[#allocation5 + $0x10c] sm:$0xf0]  ;;  %v3218_v30 = vor.u32 %v5092_v14, %v5090_v13  ;;  %2230 = vmatpush.bf16.msra.mxu2 %v3490_v28 }
  0x53   : > { %v5098_v19 = vld [vmem:[#allocation5 + $0x200] sm:$0xf]  ;;  %v5100_v20 = vld [vmem:[#allocation5 + $0x20c] sm:$0xf0]  ;;  %v3346_v35 = vor.u32 %v5096_v18, %v5094_v15  ;;  %2249 = vmatpush.bf16.msra.mxu3 %v3618_v29 }
  0x54   : > { %v5106_v24 = vld [vmem:[#allocation5 + $0x300] sm:$0xf]  ;;  %v5108_v25 = vld [vmem:[#allocation5 + $0x30c] sm:$0xf0]  ;;  %v3474_v36 = vor.u32 %v5100_v20, %v5098_v19  ;;  %2193 = vmatpush.bf16.msra.mxu0 %v3218_v30 }
  0x55   : > { %v254_v26 = vld [vmem:[%s5064_s5] sm:$0xff]  ;;  %v260_v33 = vld [vmem:[%s5064_s5 + $0x30] sm:$0xff]  ;;  %v3602_v54 = vor.u32 %v5108_v25, %v5106_v24  ;;  %2212 = vmatpush.bf16.msra.mxu1 %v3346_v35 }
  0x56   : > { %v258_v32 = vld [vmem:[%s5064_s5 + $0x20] sm:$0xff]  ;;  %v266_v34 = vpack.c.bf16 %v255_v27, %v254_v26  ;;  %v264_v39 = vld [vmem:[%s5064_s5 + $0x50] sm:$0xff]  ;;  %v5128_v41 = vpack.c.bf16 %v261_v37, %v260_v33  ;;  %2231 = vmatpush.bf16.msra.mxu2 %v3474_v36 }
  0x57   : > { %v268_v40 = vpack.c.bf16 %v258_v32, %v257_v31  ;;  %v5130_v42 = vpack.c.bf16 %v264_v39, %v263_v38  ;;  %v256_v45 = vld [vmem:[%s5064_s5 + $0x10] sm:$0xff]  ;;  %v4097_v51 = vld [vmem:[#allocation5 + $0x6e0] sm:$0xf]  ;;  %2250 = vmatpush.bf16.msra.mxu3 %v3602_v54  ;;  %v265_v54 = vld [vmem:[%s5064_s5 + $0x58] sm:$0xff] }
  0x58   : > { %v282_v43 = vunpack.c.l.b16 %v266_v34  ;;  %v283_v44 = vunpack.c.h.b16 %v266_v34  ;;  %v267_v49 = vpack.c.bf16 %v256_v45, %v256_v45  ;;  %v4598_v52 = vld [vmem:[#allocation5 + $0x6ec] sm:$0xf0]  ;;  %v3841_v53 = vld [vmem:[#allocation5 + $0x4e0] sm:$0xf]  ;;  %v288_v55 = vunpack.c.l.b16 %v5128_v41 }
  0x59   : > { %v285_v47 = vunpack.c.l.b16 %v268_v40  ;;  %v286_v48 = vunpack.c.h.b16 %v268_v40  ;;  %v291_v56 = vunpack.c.l.b16 %v5130_v42  ;;  %v4534_v57 = vld [vmem:[#allocation5 + $0x4ec] sm:$0xf0]  ;;  %v3969_v62 = vld [vmem:[#allocation5 + $0x5e0] sm:$0xf]  ;;  %v4098_v2 = vor.u32 %v4598_v52, %v4097_v51 }
  0x5a   : > { %v284_v60 = vunpack.c.l.b16 %v267_v49  ;;  %v4566_v63 = vld [vmem:[#allocation5 + $0x5ec] sm:$0xf0]  ;;  %v4225_v0 = vld [vmem:[#allocation5 + $0x7e0] sm:$0xf]  ;;  %v3842_v3 = vor.u32 %v4534_v57, %v3841_v53  ;;  %v289_v7 = vunpack.c.h.b16 %v5128_v41  ;;  %v292_v28 = vunpack.c.h.b16 %v5130_v42 }
  0x5b   : > { %v294_v58 = vpack.c.b16 %v285_v47, %v282_v43  ;;  %v295_v59 = vpack.c.b16 %v286_v48, %v283_v44  ;;  %v297_v1 = vpack.c.b16 %v291_v56, %v288_v55  ;;  %v4630_v4 = vld [vmem:[#allocation5 + $0x7ec] sm:$0xf0]  ;;  %v5138_v5 = vld [vmem:[#allocation5 + $0x6c0] sm:$0xf]  ;;  %v3970_v17 = vor.u32 %v4566_v63, %v3969_v62  ;;  %2300 = vmatpush.bf16.msrb.mxu2 %v4098_v2 }
  0x5c   : > { %v4594_v6 = vld [vmem:[#allocation5 + $0x6cc] sm:$0xf0]  ;;  %v5141_v12 = vld [vmem:[#allocation5 + $0x4c0] sm:$0xf]  ;;  %v296_v16 = vpack.c.b16 %v287_v61, %v284_v60  ;;  %v4226_v25 = vor.u32 %v4630_v4, %v4225_v0  ;;  %2262 = vmatpush.bf16.msrb.mxu0 %v3842_v3  ;;  %v298_v48 = vpack.c.b16 %v292_v28, %v289_v7 }
  0x5d   : > { %v302_v8 = vshrl.u32 %v294_v58, 16  ;;  %v305_v9 = vshll.u32 %v294_v58, 16  ;;  %v309_v10 = vshrl.u32 %v295_v59, 16  ;;  %v312_v11 = vshll.u32 %v295_v59, 16  ;;  %v4530_v21 = vld [vmem:[#allocation5 + $0x4cc] sm:$0xf0]  ;;  %2281 = vmatpush.bf16.msrb.mxu1 %v3970_v17 }
  0x5e   : > { %v323_v13 = vshrl.u32 %v297_v1, 16  ;;  %v326_v14 = vshll.u32 %v297_v1, 16  ;;  %v3953_v22 = vld [vmem:[#allocation5 + $0x5c0] sm:$0xf]  ;;  %v4562_v26 = vld [vmem:[#allocation5 + $0x5cc] sm:$0xf0]  ;;  %v4082_v18 = vor.u32 %v4594_v6, %v5138_v5  ;;  %v3826_v38 = vor.u32 %v4530_v21, %v5141_v12  ;;  %2319 = vmatpush.bf16.msrb.mxu3 %v4226_v25 }
  0x5f   : > { %v304_v23 = vrot.slane %v302_v8, 7  ;;  %v5143_v24 = vrot.slane %v309_v10, 7  ;;  %v4209_v27 = vld [vmem:[#allocation5 + $0x7c0] sm:$0xf]  ;;  %v316_v31 = vshrl.u32 %v296_v16, 16  ;;  %v319_v32 = vshll.u32 %v296_v16, 16 }
  0x60   : > { %v5152_v29 = vrot.slane %v323_v13, 7  ;;  %v4626_v33 = vld [vmem:[#allocation5 + $0x7cc] sm:$0xf0]  ;;  %v4065_v19 = vld [vmem:[#allocation5 + $0x6a0] sm:$0xf]  ;;  %v3954_v39 = vor.u32 %v4562_v26, %v3953_v22  ;;  %2301 = vmatpush.bf16.msrb.mxu2 %v4082_v18  ;;  %v331_v60 = vshrl.u32 %v298_v48, 16  ;;  %2263 = vmatpush.bf16.msrb.mxu0 %v3826_v38 }
  0x61   : > { %v307_v34 = vor.u32 %v305_v9, %v304_v23  ;;  %v314_v15 = vor.u32 %v312_v11, %v5143_v24  ;;  %v4590_v20 = vld [vmem:[#allocation5 + $0x6ac] sm:$0xf0]  ;;  %v3809_v35 = vld [vmem:[#allocation5 + $0x4a0] sm:$0xf]  ;;  %v5163_v37 = vrot.slane %v316_v31, 7  ;;  %v4210_v45 = vor.u32 %v4626_v33, %v4209_v27 }
  0x62   : > { %v328_v36 = vor.u32 %v326_v14, %v5152_v29  ;;  %v4526_v40 = vld [vmem:[#allocation5 + $0x4ac] sm:$0xf0]  ;;  %v3937_v41 = vld [vmem:[#allocation5 + $0x5a0] sm:$0xf]  ;;  %v4066_v56 = vor.u32 %v4590_v20, %v4065_v19  ;;  %2282 = vmatpush.bf16.msrb.mxu1 %v3954_v39  ;;  %v273_v9 = vpack.c.bf16 %v265_v54, %v265_v54  ;;  %v5192_v13 = vrot.slane %v331_v60, 7 }
  0x63   : > { %v262_v42 = vld [vmem:[%s5064_s5 + $0x40] sm:$0xff]  ;;  %v5169_v43 = vsel %vm5156_vm3, 0, %v307_v34  ;;  %v5173_v44 = vsel %vm5156_vm3, 0, %v314_v15  ;;  %v4558_v46 = vld [vmem:[#allocation5 + $0x5ac] sm:$0xf0]  ;;  %v321_v50 = vor.u32 %v319_v32, %v5163_v37  ;;  %v3810_v57 = vor.u32 %v4526_v40, %v3809_v35  ;;  %2320 = vmatpush.bf16.msrb.mxu3 %v4210_v45 }
  0x64   : > { %v4193_v47 = vld [vmem:[#allocation5 + $0x7a0] sm:$0xf]  ;;  %v5176_v49 = vsel %vm300_vm0, %v304_v23, %v328_v36  ;;  %2194 = vmatmul.bf16.vlgmr.msra.gmra.mxu0 %v5169_v43  ;;  %2213 = vmatmul.bf16.vlgmr.msra.gmra.mxu1 %v5173_v44  ;;  %v365_v51 = vshrl.u32 %v5169_v43, 16  ;;  %v367_v52 = vshll.u32 %v5169_v43, 16  ;;  %v4622_v53 = vld [vmem:[#allocation5 + $0x7ac] sm:$0xf0]  ;;  %v3938_v63 = vor.u32 %v4558_v46, %v3937_v41 }
  0x65   : > { %v372_v55 = vshll.u32 %v5176_v49, 16  ;;  %v4049_v58 = vld [vmem:[#allocation5 + $0x680] sm:$0xf]  ;;  %v4586_v59 = vld [vmem:[#allocation5 + $0x68c] sm:$0xf0]  ;;  %v5187_v61 = vsel %vm5156_vm3, 0, %v321_v50  ;;  %v271_v2 = vpack.c.bf16 %v262_v42, %v262_v42  ;;  %v4194_v7 = vor.u32 %v4622_v53, %v4193_v47  ;;  %2302 = vmatpush.bf16.msrb.mxu2 %v4066_v56  ;;  %2264 = vmatpush.bf16.msrb.mxu0 %v3810_v57 }
  0x66   : > { %v369_v62 = vrot.slane %v367_v52, 1  ;;  %v3793_v0 = vld [vmem:[#allocation5 + $0x480] sm:$0xf]  ;;  %v4522_v1 = vld [vmem:[#allocation5 + $0x48c] sm:$0xf0]  ;;  %2232 = vmatmul.bf16.vlgmr.msra.gmra.mxu2 %v5187_v61  ;;  %v4050_v11 = vor.u32 %v4586_v59, %v4049_v58  ;;  %v334_v14 = vshll.u32 %v298_v48, 16  ;;  %2283 = vmatpush.bf16.msrb.mxu1 %v3938_v63  ;;  %v293_v23 = vunpack.c.l.b16 %v273_v9 }
  0x67   : > { %v5190_v3 = vrot.slane %v372_v55, 1  ;;  %v3921_v4 = vld [vmem:[#allocation5 + $0x580] sm:$0xf]  ;;  %v4554_v5 = vld [vmem:[#allocation5 + $0x58c] sm:$0xf0]  ;;  %v290_v10 = vunpack.c.l.b16 %v271_v2  ;;  %v5197_v16 = vsel %vm5156_vm3, %v5152_v29, 0  ;;  %v3794_v21 = vor.u32 %v4522_v1, %v3793_v0  ;;  %2321 = vmatpush.bf16.msrb.mxu3 %v4194_v7 }
  0x68   : > { %v370_v6 = vor.u32 %v369_v62, %v365_v51  ;;  %v4177_v8 = vld [vmem:[#allocation5 + $0x780] sm:$0xf]  ;;  %v4618_v12 = vld [vmem:[#allocation5 + $0x78c] sm:$0xf0]  ;;  %v3922_v22 = vor.u32 %v4554_v5, %v3921_v4  ;;  %v404_v34 = vshll.u32 %v5197_v16, 16  ;;  %v336_v15 = vor.u32 %v334_v14, %v5192_v13 }
  0x69   : > { %v4033_v25 = vld [vmem:[#allocation5 + $0x660] sm:$0xf]  ;;  %v4582_v26 = vld [vmem:[#allocation5 + $0x66c] sm:$0xf0]  ;;  %v4178_v29 = vor.u32 %v4618_v12, %v4177_v8  ;;  %v299_v33 = vpack.c.b16 %v293_v23, %v290_v10  ;;  %2303 = vmatpush.bf16.msrb.mxu2 %v4050_v11  ;;  %2265 = vmatpush.bf16.msrb.mxu0 %v3794_v21  ;;  %v400_v50 = vshrl.u32 %v5176_v49, 16  ;;  %v379_v12 = vshll.u32 %v5173_v44, 16 }
  0x6a   : > { %v5201_v17 = vsel %vm363_vm2, %v370_v6, %v5190_v3  ;;  %v3777_v27 = vld [vmem:[#allocation5 + $0x460] sm:$0xf]  ;;  %v4518_v28 = vld [vmem:[#allocation5 + $0x46c] sm:$0xf0]  ;;  %v4034_v18 = vor.u32 %v4582_v26, %v4033_v25  ;;  %2284 = vmatpush.bf16.msrb.mxu1 %v3922_v22  ;;  %v5211_v51 = vsel %vm300_vm0, %v5143_v24, %v336_v15  ;;  %v406_v52 = vrot.slane %v404_v34, 1 }
  0x6b   : > { %5685 = vst [vmem:[#allocation15_spill] sm:$0xff] %v5201_v17  ;;  %2251 = vmatmul.bf16.vlgmr.msra.gmra.mxu3 %v5201_v17  ;;  %v3905_v31 = vld [vmem:[#allocation5 + $0x560] sm:$0xf]  ;;  %v4550_v32 = vld [vmem:[#allocation5 + $0x56c] sm:$0xf0]  ;;  %v339_v36 = vshrl.u32 %v299_v33, 16  ;;  %v3778_v39 = vor.u32 %v4518_v28, %v3777_v27  ;;  %v402_v4 = vor.u32 %v400_v50, %v5190_v3 }
  0x6c   : > { %v4161_v19 = vld [vmem:[#allocation5 + $0x760] sm:$0xf]  ;;  %v4614_v20 = vld [vmem:[#allocation5 + $0x76c] sm:$0xf0]  ;;  %v342_v38 = vshll.u32 %v299_v33, 16  ;;  %v3906_v40 = vor.u32 %v4550_v32, %v3905_v31  ;;  %2322 = vmatpush.bf16.msrb.mxu3 %v4178_v29  ;;  %5686 = vst [vmem:[#allocation16_spill] sm:$0xff] %v5211_v51 }
  0x6d   : > { %v4017_v35 = vld [vmem:[#allocation5 + $0x640] sm:$0xf]  ;;  %v4578_v41 = vld [vmem:[#allocation5 + $0x64c] sm:$0xf0]  ;;  %v5206_v48 = vrot.slane %v339_v36, 7  ;;  %2304 = vmatpush.bf16.msrb.mxu2 %v4034_v18  ;;  %v4162_v53 = vor.u32 %v4614_v20, %v4161_v19  ;;  %2266 = vmatpush.bf16.msrb.mxu0 %v3778_v39  ;;  %v391_v14 = vshll.u32 %v5187_v61, 16  ;;  %v5229_v33 = vsel %vm363_vm2, %v402_v4, %v406_v52 }
  0x6e   : > { %v3761_v42 = vld [vmem:[#allocation5 + $0x440] sm:$0xf]  ;;  %v4514_v45 = vld [vmem:[#allocation5 + $0x44c] sm:$0xf0]  ;;  %v4018_v54 = vor.u32 %v4578_v41, %v4017_v35  ;;  %2285 = vmatpush.bf16.msrb.mxu1 %v3906_v40  ;;  %v377_v27 = vshrl.u32 %v5173_v44, 16  ;;  %v384_v28 = vshll.u32 %v5211_v51, 16 }
  0x6f   : > { %v3889_v46 = vld [vmem:[#allocation5 + $0x540] sm:$0xf]  ;;  %v4546_v47 = vld [vmem:[#allocation5 + $0x54c] sm:$0xf0]  ;;  %v344_v57 = vor.u32 %v342_v38, %v5206_v48  ;;  %v3762_v58 = vor.u32 %v4514_v45, %v3761_v42  ;;  %v389_v31 = vshrl.u32 %v5187_v61, 16  ;;  %v381_v35 = vrot.slane %v379_v12, 1 }
  0x70   : > { %v4145_v55 = vld [vmem:[#allocation5 + $0x740] sm:$0xf]  ;;  %v4610_v56 = vld [vmem:[#allocation5 + $0x74c] sm:$0xf0]  ;;  %v3890_v59 = vor.u32 %v4546_v47, %v3889_v46  ;;  %2323 = vmatpush.bf16.msrb.mxu3 %v4162_v53  ;;  %v4436_v29 = vld [vmem:[#allocation5 + $0x1e4] sm:$0xf] }
  0x71   : > { %v4001_v60 = vld [vmem:[#allocation5 + $0x620] sm:$0xf]  ;;  %v4574_v62 = vld [vmem:[#allocation5 + $0x62c] sm:$0xf0]  ;;  %v5218_v24 = vsel %vm300_vm0, %v5163_v37, %v344_v57  ;;  %2305 = vmatpush.bf16.msrb.mxu2 %v4018_v54  ;;  %v4146_v8 = vor.u32 %v4610_v56, %v4145_v55  ;;  %2267 = vmatpush.bf16.msrb.mxu0 %v3762_v58  ;;  %v3459_v34 = vld [vmem:[#allocation5 + $0x1f0] sm:$0xf0]  ;;  %v382_v57 = vor.u32 %v381_v35, %v377_v27 }
  0x72   : > { %v3745_v63 = vld [vmem:[#allocation5 + $0x420] sm:$0xf]  ;;  %v4510_v0 = vld [vmem:[#allocation5 + $0x42c] sm:$0xf0]  ;;  %v4002_v9 = vor.u32 %v4574_v62, %v4001_v60  ;;  %2286 = vmatpush.bf16.msrb.mxu1 %v3890_v59  ;;  %v396_v32 = vshll.u32 %v5218_v24, 16  ;;  %v393_v36 = vrot.slane %v391_v14, 1  ;;  %v3462_v42 = vor.u32 %v4436_v29, %v3459_v34 }
  0x73   : > { %v3873_v1 = vld [vmem:[#allocation5 + $0x520] sm:$0xf]  ;;  %v4542_v2 = vld [vmem:[#allocation5 + $0x52c] sm:$0xf0]  ;;  %v3746_v21 = vor.u32 %v4510_v0, %v3745_v63  ;;  %v4404_v38 = vld [vmem:[#allocation5 + $0xe4] sm:$0xf] }
  0x74   : > { %2199 = vmatmul.bf16.gmra.mxu0 %v5176_v49  ;;  %2218 = vmatmul.bf16.gmra.mxu1 %v5211_v51  ;;  %v4129_v5 = vld [vmem:[#allocation5 + $0x720] sm:$0xf]  ;;  %v4606_v6 = vld [vmem:[#allocation5 + $0x72c] sm:$0xf0]  ;;  %v3874_v37 = vor.u32 %v4542_v2, %v3873_v1  ;;  %v3331_v39 = vld [vmem:[#allocation5 + $0xf0] sm:$0xf0]  ;;  %v394_v59 = vor.u32 %v393_v36, %v389_v31 }
  0x75   : > { %v3985_v7 = vld [vmem:[#allocation5 + $0x600] sm:$0xf]  ;;  %v4570_v10 = vld [vmem:[#allocation5 + $0x60c] sm:$0xf0]  ;;  %2324 = vmatpush.bf16.msrb.mxu3 %v4146_v8  ;;  %2306 = vmatpush.bf16.msrb.mxu2 %v4002_v9  ;;  %v4130_v19 = vor.u32 %v4606_v6, %v4129_v5  ;;  %v4468_v46 = vld [vmem:[#allocation5 + $0x2e4] sm:$0xf]  ;;  %v3334_v53 = vor.u32 %v4404_v38, %v3331_v39 }
  0x76   : > { %v3729_v11 = vld [vmem:[#allocation5 + $0x400] sm:$0xf]  ;;  %v4506_v22 = vld [vmem:[#allocation5 + $0x40c] sm:$0xf0]  ;;  %2237 = vmatmul.bf16.gmra.mxu2 %v5218_v24  ;;  %v3986_v20 = vor.u32 %v4570_v10, %v3985_v7  ;;  %2268 = vmatpush.bf16.msrb.mxu0 %v3746_v21  ;;  %v3587_v47 = vld [vmem:[#allocation5 + $0x2f0] sm:$0xf0] }
  0x77   : > { %v3857_v23 = vld [vmem:[#allocation5 + $0x500] sm:$0xf]  ;;  %v4538_v3 = vld [vmem:[#allocation5 + $0x50c] sm:$0xf0]  ;;  %2287 = vmatpush.bf16.msrb.mxu1 %v3874_v37  ;;  %v3730_v40 = vor.u32 %v4506_v22, %v3729_v11  ;;  %v4432_v50 = vld [vmem:[#allocation5 + $0x1c4] sm:$0xf]  ;;  %v3590_v62 = vor.u32 %v4468_v46, %v3587_v47 }
  0x78   : > { %v4113_v25 = vld [vmem:[#allocation5 + $0x700] sm:$0xf]  ;;  %v4602_v26 = vld [vmem:[#allocation5 + $0x70c] sm:$0xf0]  ;;  %v3858_v41 = vor.u32 %v4538_v3, %v3857_v23  ;;  %v3443_v54 = vld [vmem:[#allocation5 + $0x1d0] sm:$0xf0] }
  0x79   : > { %v4353_v15 = vld [vmem:[#allocation5 + $0x8e0] sm:$0xf]  ;;  %v4662_v18 = vld [vmem:[#allocation5 + $0x8ec] sm:$0xf0]  ;;  %v4114_v52 = vor.u32 %v4602_v26, %v4113_v25  ;;  %2325 = vmatpush.bf16.msrb.mxu3 %v4130_v19  ;;  %2307 = vmatpush.bf16.msrb.mxu2 %v3986_v20  ;;  %v5232_v58 = vrot.slane %v384_v28, 1  ;;  %v5234_v60 = vrot.slane %v396_v32, 1  ;;  %v3446_v1 = vor.u32 %v4432_v50, %v3443_v54 }
  0x7a   : > { %v4354_v45 = vor.u32 %v4662_v18, %v4353_v15  ;;  %v4337_v55 = vld [vmem:[#allocation5 + $0x8c0] sm:$0xf]  ;;  %v4658_v56 = vld [vmem:[#allocation5 + $0x8cc] sm:$0xf0]  ;;  %2269 = vmatpush.bf16.msrb.mxu0 %v3730_v40  ;;  %v4400_v63 = vld [vmem:[#allocation5 + $0xc4] sm:$0xf] }
  0x7b   : > { %2256 = vmatmul.bf16.gmra.mxu3 %v5229_v33  ;;  %2288 = vmatpush.bf16.msrb.mxu1 %v3858_v41  ;;  %v3315_v0 = vld [vmem:[#allocation5 + $0xd0] sm:$0xf0]  ;;  %v4338_v2 = vor.u32 %v4658_v56, %v4337_v55  ;;  %v4464_v4 = vld [vmem:[#allocation5 + $0x2c4] sm:$0xf]  ;;  %v437_v6 = vrot.slane %v5169_v43, 1  ;;  %v438_v7 = vrot.slane %v5176_v49, 1  ;;  %v5240_v10 = vsel %vm363_vm2, %v382_v57, %v5232_v58 }
  0x7c   : > { %v3571_v5 = vld [vmem:[#allocation5 + $0x2d0] sm:$0xf0]  ;;  %v4321_v8 = vld [vmem:[#allocation5 + $0x8a0] sm:$0xf]  ;;  %v4654_v9 = vld [vmem:[#allocation5 + $0x8ac] sm:$0xf0]  ;;  %v5244_v11 = vsel %vm363_vm2, %v394_v59, %v5234_v60  ;;  %v3318_v12 = vor.u32 %v4400_v63, %v3315_v0 }
  0x7d   : > { %2376 = vmatpush.bf16.msra.mxu2 %v3462_v42  ;;  %2326 = vmatpush.bf16.msrb.mxu3 %v4114_v52  ;;  %5687 = vst [vmem:[#allocation17_spill] sm:$0xff] %v5240_v10  ;;  %v4428_v14 = vld [vmem:[#allocation5 + $0x1a4] sm:$0xf]  ;;  %v3427_v21 = vld [vmem:[#allocation5 + $0x1b0] sm:$0xf0]  ;;  %v3574_v37 = vor.u32 %v4464_v4, %v3571_v5  ;;  %v4322_v3 = vor.u32 %v4654_v9, %v4321_v8  ;;  %v440_v28 = vrot.slane %v5173_v44, 1 }
  0x7e   : > { %2338 = vmatpush.bf16.msra.mxu0 %v4354_v45  ;;  %5688 = vst [vmem:[#allocation18_spill] sm:$0xff] %v5244_v11  ;;  %v4396_v22 = vld [vmem:[#allocation5 + $0xa4] sm:$0xf]  ;;  %v3299_v23 = vld [vmem:[#allocation5 + $0xb0] sm:$0xf0]  ;;  %v5251_v27 = vsel %vm436_vm4, %v437_v6, %v438_v7  ;;  %v441_v31 = vrot.slane %v5211_v51, 1  ;;  %v3430_v32 = vor.u32 %v4428_v14, %v3427_v21 }
  0x7f   : > { %2357 = vmatpush.bf16.msra.mxu1 %v3334_v53  ;;  %v4460_v25 = vld [vmem:[#allocation5 + $0x2a4] sm:$0xf]  ;;  %v3555_v26 = vld [vmem:[#allocation5 + $0x2b0] sm:$0xf0]  ;;  %v4305_v29 = vld [vmem:[#allocation5 + $0x880] sm:$0xf]  ;;  %v3302_v15 = vor.u32 %v4396_v22, %v3299_v23 }
  0x80   : > { %v4650_v34 = vld [vmem:[#allocation5 + $0x88c] sm:$0xf0]  ;;  %v4424_v18 = vld [vmem:[#allocation5 + $0x184] sm:$0xf]  ;;  %v3411_v19 = vld [vmem:[#allocation5 + $0x190] sm:$0xf0]  ;;  %v3558_v35 = vor.u32 %v4460_v25, %v3555_v26 }
  0x81   : > { %2395 = vmatpush.bf16.msra.mxu3 %v3590_v62  ;;  %2377 = vmatpush.bf16.msra.mxu2 %v3446_v1  ;;  %v5258_v20 = vsel %vm5156_vm3, %v5192_v13, 0  ;;  %v4392_v36 = vld [vmem:[#allocation5 + $0x84] sm:$0xf]  ;;  %v3283_v38 = vld [vmem:[#allocation5 + $0x90] sm:$0xf0]  ;;  %v5263_v39 = vsel %vm5156_vm3, %v5206_v48, 0  ;;  %v4306_v40 = vor.u32 %v4650_v34, %v4305_v29  ;;  %v5269_v13 = vsel %vm436_vm4, %v440_v28, %v441_v31 }
  0x82   : > { %2339 = vmatpush.bf16.msra.mxu0 %v4338_v2  ;;  %v4456_v41 = vld [vmem:[#allocation5 + $0x284] sm:$0xf]  ;;  %v3539_v42 = vld [vmem:[#allocation5 + $0x290] sm:$0xf0]  ;;  %v3414_v45 = vor.u32 %v4424_v18, %v3411_v19  ;;  %v408_v46 = vshrl.u32 %v5211_v51, 16  ;;  %v412_v47 = vshll.u32 %v5258_v20, 16  ;;  %v3286_v50 = vor.u32 %v4392_v36, %v3283_v38 }
  0x83   : > { %2358 = vmatpush.bf16.msra.mxu1 %v3318_v12  ;;  %v4289_v30 = vld [vmem:[#allocation5 + $0x860] sm:$0xf]  ;;  %v4646_v48 = vld [vmem:[#allocation5 + $0x86c] sm:$0xf0]  ;;  %v416_v52 = vshrl.u32 %v5218_v24, 16  ;;  %v420_v53 = vshll.u32 %v5263_v39, 16  ;;  %v3542_v56 = vor.u32 %v4456_v41, %v3539_v42 }
  0x84   : > { %2270 = vmatmul.bf16.vlgmr.msrb.gmra.mxu0 %v5240_v10  ;;  %2289 = vmatmul.bf16.vlgmr.msrb.gmra.mxu1 %v5244_v11  ;;  %v4420_v54 = vld [vmem:[#allocation5 + $0x164] sm:$0xf]  ;;  %v3395_v55 = vld [vmem:[#allocation5 + $0x170] sm:$0xf0]  ;;  %v4290_v62 = vor.u32 %v4646_v48, %v4289_v30  ;;  %v410_v1 = vor.u32 %v408_v46, %v5232_v58  ;;  %v4273_v4 = vld [vmem:[#allocation5 + $0x840] sm:$0xf] }
  0x85   : > { %2396 = vmatpush.bf16.msra.mxu3 %v3574_v37  ;;  %2378 = vmatpush.bf16.msra.mxu2 %v3430_v32  ;;  %v4388_v57 = vld [vmem:[#allocation5 + $0x64] sm:$0xf]  ;;  %v3267_v59 = vld [vmem:[#allocation5 + $0x70] sm:$0xf0]  ;;  %v3398_v2 = vor.u32 %v4420_v54, %v3395_v55  ;;  %v4642_v5 = vld [vmem:[#allocation5 + $0x84c] sm:$0xf0]  ;;  %v418_v8 = vor.u32 %v416_v52, %v5234_v60 }
  0x86   : > { %2308 = vmatmul.bf16.vlgmr.msrb.gmra.mxu2 %v5251_v27  ;;  %2340 = vmatpush.bf16.msra.mxu0 %v4322_v3  ;;  %v4452_v63 = vld [vmem:[#allocation5 + $0x264] sm:$0xf]  ;;  %v3523_v0 = vld [vmem:[#allocation5 + $0x270] sm:$0xf0]  ;;  %v414_v6 = vrot.slane %v412_v47, 1  ;;  %v422_v9 = vrot.slane %v420_v53, 1  ;;  %v3270_v12 = vor.u32 %v4388_v57, %v3267_v59  ;;  %v4274_v3 = vor.u32 %v4642_v5, %v4273_v4 }
  0x87   : > { %2359 = vmatpush.bf16.msra.mxu1 %v3302_v15  ;;  %v4416_v14 = vld [vmem:[#allocation5 + $0x144] sm:$0xf]  ;;  %v3526_v21 = vor.u32 %v4452_v63, %v3523_v0  ;;  %v3379_v37 = vld [vmem:[#allocation5 + $0x150] sm:$0xf0]  ;;  %v446_v58 = vrot.slane %v5197_v16, 1  ;;  %v448_v16 = vrot.slane %v5258_v20, 1 }
  0x88   : > { %v4384_v22 = vld [vmem:[#allocation5 + $0x44] sm:$0xf]  ;;  %v3251_v23 = vld [vmem:[#allocation5 + $0x50] sm:$0xf0]  ;;  %v4257_v28 = vld [vmem:[#allocation5 + $0x820] sm:$0xf]  ;;  %v5280_v29 = vsel %vm363_vm2, %v410_v1, %v414_v6  ;;  %v5283_v60 = vsel %vm363_vm2, %v418_v8, %v422_v9  ;;  %v3382_v34 = vor.u32 %v4416_v14, %v3379_v37 }
  0x89   : > { %2397 = vmatpush.bf16.msra.mxu3 %v3558_v35  ;;  %2379 = vmatpush.bf16.msra.mxu2 %v3414_v45  ;;  %v4448_v25 = vld [vmem:[#allocation5 + $0x244] sm:$0xf]  ;;  %v3507_v26 = vld [vmem:[#allocation5 + $0x250] sm:$0xf0]  ;;  %v4638_v32 = vld [vmem:[#allocation5 + $0x82c] sm:$0xf0]  ;;  %v3254_v15 = vor.u32 %v4384_v22, %v3251_v23  ;;  %v5291_v45 = vsel %vm436_vm4, %v438_v7, %v446_v58  ;;  %v5297_v1 = vsel %vm436_vm4, %v441_v31, %v448_v16 }
  0x8a   : > { %2341 = vmatpush.bf16.msra.mxu0 %v4306_v40  ;;  %v4412_v18 = vld [vmem:[#allocation5 + $0x124] sm:$0xf]  ;;  %v3510_v19 = vor.u32 %v4448_v25, %v3507_v26  ;;  %v3363_v35 = vld [vmem:[#allocation5 + $0x130] sm:$0xf0]  ;;  %v4258_v40 = vor.u32 %v4638_v32, %v4257_v28  ;;  %v4241_v30 = vld [vmem:[#allocation5 + $0x800] sm:$0xf] }
  0x8b   : > { %2327 = vmatmul.bf16.vlgmr.msrb.gmra.mxu3 %v5269_v13  ;;  %2360 = vmatpush.bf16.msra.mxu1 %v3286_v50  ;;  %v4380_v36 = vld [vmem:[#allocation5 + $0x24] sm:$0xf]  ;;  %v3235_v38 = vld [vmem:[#allocation5 + $0x30] sm:$0xf0]  ;;  %v4634_v48 = vld [vmem:[#allocation5 + $0x80c] sm:$0xf0]  ;;  %v3366_v20 = vor.u32 %v4412_v18, %v3363_v35 }
  0x8c   : > { %v4444_v41 = vld [vmem:[#allocation5 + $0x224] sm:$0xf]  ;;  %v3491_v42 = vld [vmem:[#allocation5 + $0x230] sm:$0xf0]  ;;  %v3238_v50 = vor.u32 %v4380_v36, %v3235_v38  ;;  %v4242_v7 = vor.u32 %v4634_v48, %v4241_v30 }
  0x8d   : > { %2398 = vmatpush.bf16.msra.mxu3 %v3542_v56  ;;  %2380 = vmatpush.bf16.msra.mxu2 %v3398_v2  ;;  %v4408_v46 = vld [vmem:[#allocation5 + $0x104] sm:$0xf]  ;;  %v3347_v47 = vld [vmem:[#allocation5 + $0x110] sm:$0xf0]  ;;  %v3494_v55 = vor.u32 %v4444_v41, %v3491_v42 }
  0x8e   : > { %2342 = vmatpush.bf16.msra.mxu0 %v4290_v62  ;;  %v4376_v52 = vld [vmem:[#allocation5 + $0x4] sm:$0xf]  ;;  %v3715_v54 = vld [vmem:[#allocation5 + $0x3f0] sm:$0xf0]  ;;  %v3350_v8 = vor.u32 %v4408_v46, %v3347_v47 }
  0x8f   : > { %2361 = vmatpush.bf16.msra.mxu1 %v3270_v12  ;;  %v4500_v53 = vld [vmem:[#allocation5 + $0x3e4] sm:$0xf]  ;;  %v3219_v56 = vld [vmem:[#allocation5 + $0x10] sm:$0xf0] }
  0x90   : > { %v4440_v57 = vld [vmem:[#allocation5 + $0x204] sm:$0xf]  ;;  %v3475_v59 = vld [vmem:[#allocation5 + $0x210] sm:$0xf0]  ;;  %v3718_v2 = vor.u32 %v4500_v53, %v3715_v54  ;;  %v3222_v9 = vor.u32 %v4376_v52, %v3219_v56 }
  0x91   : > { %2399 = vmatpush.bf16.msra.mxu3 %v3526_v21  ;;  %2381 = vmatpush.bf16.msra.mxu2 %v3382_v34  ;;  %v4564_v62 = vld [vmem:[#allocation5 + $0x5e4] sm:$0xf]  ;;  %v3971_v63 = vld [vmem:[#allocation5 + $0x5f0] sm:$0xf0]  ;;  %v3478_v21 = vor.u32 %v4440_v57, %v3475_v59  ;;  %v443_v34 = vrot.slane %v5187_v61, 1 }
  0x92   : > { %2343 = vmatpush.bf16.msra.mxu0 %v4274_v3  ;;  %v4532_v0 = vld [vmem:[#allocation5 + $0x4e4] sm:$0xf]  ;;  %v3843_v4 = vld [vmem:[#allocation5 + $0x4f0] sm:$0xf0]  ;;  %v3974_v37 = vor.u32 %v4564_v62, %v3971_v63 }
  0x93   : > { %2362 = vmatpush.bf16.msra.mxu1 %v3254_v15  ;;  %v4596_v5 = vld [vmem:[#allocation5 + $0x6e4] sm:$0xf]  ;;  %v4099_v6 = vld [vmem:[#allocation5 + $0x6f0] sm:$0xf0]  ;;  %v3846_v22 = vor.u32 %v4532_v0, %v3843_v4  ;;  %v444_v15 = vrot.slane %v5218_v24, 1 }
  0x94   : > { %2275 = vmatmul.bf16.gmra.mxu0 %v5280_v29  ;;  %2294 = vmatmul.bf16.gmra.mxu1 %v5283_v60  ;;  %v4496_v12 = vld [vmem:[#allocation5 + $0x3c4] sm:$0xf]  ;;  %v3699_v14 = vld [vmem:[#allocation5 + $0x3d0] sm:$0xf0]  ;;  %v4102_v23 = vor.u32 %v4596_v5, %v4099_v6 }
  0x95   : > { %2400 = vmatpush.bf16.msra.mxu3 %v3510_v19  ;;  %2382 = vmatpush.bf16.msra.mxu2 %v3366_v20  ;;  %v4560_v31 = vld [vmem:[#allocation5 + $0x5c4] sm:$0xf]  ;;  %v3955_v3 = vld [vmem:[#allocation5 + $0x5d0] sm:$0xf0]  ;;  %v3702_v26 = vor.u32 %v4496_v12, %v3699_v14  ;;  %v5305_v46 = vsel %vm436_vm4, %v443_v34, %v444_v15 }
  0x96   : > { %2313 = vmatmul.bf16.gmra.mxu2 %v5291_v45  ;;  %2344 = vmatpush.bf16.msra.mxu0 %v4258_v40  ;;  %v4528_v25 = vld [vmem:[#allocation5 + $0x4c4] sm:$0xf]  ;;  %v3827_v58 = vld [vmem:[#allocation5 + $0x4d0] sm:$0xf0]  ;;  %v3958_v18 = vor.u32 %v4560_v31, %v3955_v3 }
  0x97   : > { %2363 = vmatpush.bf16.msra.mxu1 %v3238_v50  ;;  %v4592_v28 = vld [vmem:[#allocation5 + $0x6c4] sm:$0xf]  ;;  %v4083_v32 = vld [vmem:[#allocation5 + $0x6d0] sm:$0xf0]  ;;  %v3830_v36 = vor.u32 %v4528_v25, %v3827_v58 }
  0x98   : > { %v4492_v19 = vld [vmem:[#allocation5 + $0x3a4] sm:$0xf]  ;;  %v3683_v35 = vld [vmem:[#allocation5 + $0x3b0] sm:$0xf0]  ;;  %v4086_v38 = vor.u32 %v4592_v28, %v4083_v32 }
  0x99   : > { %2401 = vmatpush.bf16.msra.mxu3 %v3494_v55  ;;  %2383 = vmatpush.bf16.msra.mxu2 %v3350_v8  ;;  %v4556_v16 = vld [vmem:[#allocation5 + $0x5a4] sm:$0xf]  ;;  %v3939_v40 = vld [vmem:[#allocation5 + $0x5b0] sm:$0xf0]  ;;  %v3686_v47 = vor.u32 %v4492_v19, %v3683_v35 }
  0x9a   : > { %2345 = vmatpush.bf16.msra.mxu0 %v4242_v7  ;;  %v4524_v41 = vld [vmem:[#allocation5 + $0x4a4] sm:$0xf]  ;;  %v3811_v42 = vld [vmem:[#allocation5 + $0x4b0] sm:$0xf0]  ;;  %v3942_v20 = vor.u32 %v4556_v16, %v3939_v40 }
  0x9b   : > { %2332 = vmatmul.bf16.gmra.mxu3 %v5297_v1  ;;  %2364 = vmatpush.bf16.msra.mxu1 %v3222_v9  ;;  %v4588_v30 = vld [vmem:[#allocation5 + $0x6a4] sm:$0xf]  ;;  %v4067_v48 = vld [vmem:[#allocation5 + $0x6b0] sm:$0xf0]  ;;  %v3814_v53 = vor.u32 %v4524_v41, %v3811_v42 }
  0x9c   : > { %v4488_v50 = vld [vmem:[#allocation5 + $0x384] sm:$0xf]  ;;  %v3667_v52 = vld [vmem:[#allocation5 + $0x390] sm:$0xf0]  ;;  %v4070_v56 = vor.u32 %v4588_v30, %v4067_v48 }
  0x9d   : > { %2402 = vmatpush.bf16.msra.mxu3 %v3478_v21  ;;  %2452 = vmatpush.bf16.msrb.mxu2 %v3974_v37  ;;  %v4552_v54 = vld [vmem:[#allocation5 + $0x584] sm:$0xf]  ;;  %v3923_v55 = vld [vmem:[#allocation5 + $0x590] sm:$0xf0]  ;;  %v3670_v7 = vor.u32 %v4488_v50, %v3667_v52 }
  0x9e   : > { %2414 = vmatpush.bf16.msrb.mxu0 %v3718_v2  ;;  %v4520_v57 = vld [vmem:[#allocation5 + $0x484] sm:$0xf]  ;;  %v3795_v59 = vld [vmem:[#allocation5 + $0x490] sm:$0xf0]  ;;  %v3926_v0 = vor.u32 %v4552_v54, %v3923_v55 }
  0x9f   : > { %2433 = vmatpush.bf16.msrb.mxu1 %v3846_v22  ;;  %v4584_v62 = vld [vmem:[#allocation5 + $0x684] sm:$0xf]  ;;  %v4051_v63 = vld [vmem:[#allocation5 + $0x690] sm:$0xf0]  ;;  %v3798_v5 = vor.u32 %v4520_v57, %v3795_v59 }
  0xa0   : > { %v4484_v2 = vld [vmem:[#allocation5 + $0x364] sm:$0xf]  ;;  %v3651_v4 = vld [vmem:[#allocation5 + $0x370] sm:$0xf0]  ;;  %v4054_v9 = vor.u32 %v4584_v62, %v4051_v63 }
  0xa1   : > { %2471 = vmatpush.bf16.msrb.mxu3 %v4102_v23  ;;  %2453 = vmatpush.bf16.msrb.mxu2 %v3958_v18  ;;  %v4548_v6 = vld [vmem:[#allocation5 + $0x564] sm:$0xf]  ;;  %v3907_v8 = vld [vmem:[#allocation5 + $0x570] sm:$0xf0]  ;;  %v3654_v21 = vor.u32 %v4484_v2, %v3651_v4  ;;  %v450_v18 = vrot.slane %v5263_v39, 1 }
  0xa2   : > { %2415 = vmatpush.bf16.msrb.mxu0 %v3702_v26  ;;  %v4516_v12 = vld [vmem:[#allocation5 + $0x464] sm:$0xf]  ;;  %v3779_v14 = vld [vmem:[#allocation5 + $0x470] sm:$0xf0]  ;;  %v3910_v23 = vor.u32 %v4548_v6, %v3907_v8  ;;  %v3337_v2 = vld [vmem:[#allocation5 + $0xe8] sm:$0xf] }
  0xa3   : > { %2434 = vmatpush.bf16.msrb.mxu1 %v3830_v36  ;;  %v4580_v37 = vld [vmem:[#allocation5 + $0x664] sm:$0xf]  ;;  %v4035_v22 = vld [vmem:[#allocation5 + $0x670] sm:$0xf0]  ;;  %v3782_v25 = vor.u32 %v4516_v12, %v3779_v14  ;;  %v4407_v6 = vld [vmem:[#allocation5 + $0xf4] sm:$0xf0] }
  0xa4   : > { %2346 = vmatmul.bf16.vlgmr.msra.gmra.mxu0 %v5305_v46  ;;  %2365 = vmatmul.bf16.vlgmr.msra.gmra.mxu1 %v5169_v43  ;;  %v4480_v31 = vld [vmem:[#allocation5 + $0x344] sm:$0xf]  ;;  %v3635_v3 = vld [vmem:[#allocation5 + $0x350] sm:$0xf0]  ;;  %v4038_v28 = vor.u32 %v4580_v37, %v4035_v22  ;;  %v3465_v22 = vld [vmem:[#allocation5 + $0x1e8] sm:$0xf] }
  0xa5   : > { %2472 = vmatpush.bf16.msrb.mxu3 %v4086_v38  ;;  %2454 = vmatpush.bf16.msrb.mxu2 %v3942_v20  ;;  %v4544_v26 = vld [vmem:[#allocation5 + $0x544] sm:$0xf]  ;;  %v3891_v58 = vld [vmem:[#allocation5 + $0x550] sm:$0xf0]  ;;  %v3638_v19 = vor.u32 %v4480_v31, %v3635_v3  ;;  %v5315_v20 = vsel %vm436_vm4, %v444_v15, %v450_v18  ;;  %v4439_v31 = vld [vmem:[#allocation5 + $0x1f4] sm:$0xf0] }
  0xa6   : > { %2416 = vmatpush.bf16.msrb.mxu0 %v3686_v47  ;;  %2384 = vmatmul.bf16.vlgmr.msra.gmra.mxu2 %v5173_v44  ;;  %v4512_v32 = vld [vmem:[#allocation5 + $0x444] sm:$0xf]  ;;  %v3763_v34 = vld [vmem:[#allocation5 + $0x450] sm:$0xf0]  ;;  %v3894_v36 = vor.u32 %v4544_v26, %v3891_v58  ;;  %v3338_v26 = vor.u32 %v4407_v6, %v3337_v2  ;;  %v4427_v6 = vld [vmem:[#allocation5 + $0x194] sm:$0xf0] }
  0xa7   : > { %2435 = vmatpush.bf16.msrb.mxu1 %v3814_v53  ;;  %v4576_v35 = vld [vmem:[#allocation5 + $0x644] sm:$0xf]  ;;  %v4019_v38 = vld [vmem:[#allocation5 + $0x650] sm:$0xf0]  ;;  %v3766_v41 = vor.u32 %v4512_v32, %v3763_v34  ;;  %v4403_v34 = vld [vmem:[#allocation5 + $0xd4] sm:$0xf0] }
  0xa8   : > { %v4476_v16 = vld [vmem:[#allocation5 + $0x324] sm:$0xf]  ;;  %v3619_v40 = vld [vmem:[#allocation5 + $0x330] sm:$0xf0]  ;;  %v4022_v39 = vor.u32 %v4576_v35, %v4019_v38  ;;  %v3466_v35 = vor.u32 %v4439_v31, %v3465_v22  ;;  %v3449_v38 = vld [vmem:[#allocation5 + $0x1c8] sm:$0xf] }
  0xa9   : > { %2473 = vmatpush.bf16.msrb.mxu3 %v4070_v56  ;;  %2455 = vmatpush.bf16.msrb.mxu2 %v3926_v0  ;;  %v4540_v42 = vld [vmem:[#allocation5 + $0x524] sm:$0xf]  ;;  %v3875_v47 = vld [vmem:[#allocation5 + $0x530] sm:$0xf0]  ;;  %v3622_v50 = vor.u32 %v4476_v16, %v3619_v40  ;;  %v4435_v16 = vld [vmem:[#allocation5 + $0x1d4] sm:$0xf0] }
  0xaa   : > { %2417 = vmatpush.bf16.msrb.mxu0 %v3670_v7  ;;  %v4508_v30 = vld [vmem:[#allocation5 + $0x424] sm:$0xf]  ;;  %v3747_v48 = vld [vmem:[#allocation5 + $0x430] sm:$0xf0]  ;;  %v3878_v54 = vor.u32 %v4540_v42, %v3875_v47 }
  0xab   : > { %2403 = vmatmul.bf16.vlgmr.msra.gmra.mxu3 %v5187_v61  ;;  %2436 = vmatpush.bf16.msrb.mxu1 %v3798_v5  ;;  %v4572_v52 = vld [vmem:[#allocation5 + $0x624] sm:$0xf]  ;;  %v4003_v53 = vld [vmem:[#allocation5 + $0x630] sm:$0xf0]  ;;  %v3750_v59 = vor.u32 %v4508_v30, %v3747_v48  ;;  %v3305_v30 = vld [vmem:[#allocation5 + $0xa8] sm:$0xf] }
  0xac   : > { %v4536_v55 = vld [vmem:[#allocation5 + $0x504] sm:$0xf]  ;;  %v3603_v57 = vld [vmem:[#allocation5 + $0x310] sm:$0xf0]  ;;  %v4006_v4 = vor.u32 %v4572_v52, %v4003_v53  ;;  %v4399_v48 = vld [vmem:[#allocation5 + $0xb4] sm:$0xf0] }
  0xad   : > { %2474 = vmatpush.bf16.msrb.mxu3 %v4054_v9  ;;  %2456 = vmatpush.bf16.msrb.mxu2 %v3910_v23  ;;  %v4472_v56 = vld [vmem:[#allocation5 + $0x304] sm:$0xf]  ;;  %v3859_v7 = vld [vmem:[#allocation5 + $0x510] sm:$0xf0] }
  0xae   : > { %2418 = vmatpush.bf16.msrb.mxu0 %v3654_v21  ;;  %v4628_v62 = vld [vmem:[#allocation5 + $0x7e4] sm:$0xf]  ;;  %v4227_v63 = vld [vmem:[#allocation5 + $0x7f0] sm:$0xf0]  ;;  %v3606_v5 = vor.u32 %v4472_v56, %v3603_v57  ;;  %v3862_v12 = vor.u32 %v4536_v55, %v3859_v7  ;;  %v4431_v55 = vld [vmem:[#allocation5 + $0x1b4] sm:$0xf0] }
  0xaf   : > { %2437 = vmatpush.bf16.msrb.mxu1 %v3782_v25  ;;  %v4504_v15 = vld [vmem:[#allocation5 + $0x404] sm:$0xf]  ;;  %v3731_v0 = vld [vmem:[#allocation5 + $0x410] sm:$0xf0]  ;;  %v4230_v37 = vor.u32 %v4628_v62, %v4227_v63  ;;  %v3289_v62 = vld [vmem:[#allocation5 + $0x88] sm:$0xf] }
  0xb0   : > { %v4660_v8 = vld [vmem:[#allocation5 + $0x8e4] sm:$0xf]  ;;  %v4355_v9 = vld [vmem:[#allocation5 + $0x8f0] sm:$0xf0]  ;;  %v3734_v23 = vor.u32 %v4504_v15, %v3731_v0  ;;  %v4395_v63 = vld [vmem:[#allocation5 + $0x94] sm:$0xf0] }
  0xb1   : > { %2475 = vmatpush.bf16.msrb.mxu3 %v4038_v28  ;;  %2457 = vmatpush.bf16.msrb.mxu2 %v3894_v36  ;;  %v4568_v14 = vld [vmem:[#allocation5 + $0x604] sm:$0xf]  ;;  %v3987_v21 = vld [vmem:[#allocation5 + $0x610] sm:$0xf0]  ;;  %v4358_v58 = vor.u32 %v4660_v8, %v4355_v9  ;;  %v3321_v28 = vld [vmem:[#allocation5 + $0xc8] sm:$0xf] }
  0xb2   : > { %2419 = vmatpush.bf16.msrb.mxu0 %v3638_v19  ;;  %v4624_v3 = vld [vmem:[#allocation5 + $0x7c4] sm:$0xf]  ;;  %v4211_v25 = vld [vmem:[#allocation5 + $0x7d0] sm:$0xf0]  ;;  %v3990_v32 = vor.u32 %v4568_v14, %v3987_v21  ;;  %v3322_v42 = vor.u32 %v4403_v34, %v3321_v28  ;;  %v3273_v21 = vld [vmem:[#allocation5 + $0x68] sm:$0xf] }
  0xb3   : > { %2438 = vmatpush.bf16.msrb.mxu1 %v3766_v41  ;;  %v4656_v18 = vld [vmem:[#allocation5 + $0x8c4] sm:$0xf]  ;;  %v4339_v19 = vld [vmem:[#allocation5 + $0x8d0] sm:$0xf0]  ;;  %v4214_v36 = vor.u32 %v4624_v3, %v4211_v25  ;;  %v3401_v25 = vld [vmem:[#allocation5 + $0x168] sm:$0xf] }
  0xb4   : > { %2351 = vmatmul.bf16.gmra.mxu0 %v5315_v20  ;;  %2370 = vmatmul.bf16.gmra.mxu1 %v5176_v49  ;;  %v4620_v40 = vld [vmem:[#allocation5 + $0x7a4] sm:$0xf]  ;;  %v4195_v41 = vld [vmem:[#allocation5 + $0x7b0] sm:$0xf0]  ;;  %v4342_v47 = vor.u32 %v4656_v18, %v4339_v19  ;;  %v3257_v18 = vld [vmem:[#allocation5 + $0x48] sm:$0xf] }
  0xb5   : > { %2476 = vmatpush.bf16.msrb.mxu3 %v4022_v39  ;;  %2458 = vmatpush.bf16.msrb.mxu2 %v3878_v54  ;;  %v3450_v39 = vor.u32 %v4435_v16, %v3449_v38  ;;  %v4652_v52 = vld [vmem:[#allocation5 + $0x8a4] sm:$0xf]  ;;  %v4323_v53 = vld [vmem:[#allocation5 + $0x8b0] sm:$0xf0]  ;;  %v3433_v54 = vld [vmem:[#allocation5 + $0x1a8] sm:$0xf] }
  0xb6   : > { %2420 = vmatpush.bf16.msrb.mxu0 %v3622_v50  ;;  %2389 = vmatmul.bf16.gmra.mxu2 %v5211_v51  ;;  %v4198_v50 = vor.u32 %v4620_v40, %v4195_v41  ;;  %v4616_v56 = vld [vmem:[#allocation5 + $0x784] sm:$0xf]  ;;  %v4179_v57 = vld [vmem:[#allocation5 + $0x790] sm:$0xf0]  ;;  %v4326_v7 = vor.u32 %v4652_v52, %v4323_v53  ;;  %v3434_v15 = vor.u32 %v4431_v55, %v3433_v54  ;;  %v4387_v19 = vld [vmem:[#allocation5 + $0x54] sm:$0xf0] }
  0xb7   : > { %2439 = vmatpush.bf16.msrb.mxu1 %v3750_v59  ;;  %v3306_v59 = vor.u32 %v4399_v48, %v3305_v30  ;;  %v4182_v0 = vor.u32 %v4616_v56, %v4179_v57  ;;  %v4648_v2 = vld [vmem:[#allocation5 + $0x884] sm:$0xf]  ;;  %v4163_v9 = vld [vmem:[#allocation5 + $0x770] sm:$0xf0]  ;;  %v3385_v40 = vld [vmem:[#allocation5 + $0x148] sm:$0xf]  ;;  %v3258_v30 = vor.u32 %v4387_v19, %v3257_v18 }
  0xb8   : > { %v4612_v8 = vld [vmem:[#allocation5 + $0x764] sm:$0xf]  ;;  %v4291_v3 = vld [vmem:[#allocation5 + $0x870] sm:$0xf0]  ;;  %v4419_v41 = vld [vmem:[#allocation5 + $0x154] sm:$0xf0] }
  0xb9   : > { %2477 = vmatpush.bf16.msrb.mxu3 %v4006_v4  ;;  %2459 = vmatpush.bf16.msrb.mxu2 %v3862_v12  ;;  %v4307_v4 = vld [vmem:[#allocation5 + $0x890] sm:$0xf0]  ;;  %v3290_v12 = vor.u32 %v4395_v63, %v3289_v62  ;;  %v4644_v31 = vld [vmem:[#allocation5 + $0x864] sm:$0xf]  ;;  %v3386_v52 = vor.u32 %v4419_v41, %v3385_v40  ;;  %v3369_v56 = vld [vmem:[#allocation5 + $0x128] sm:$0xf] }
  0xba   : > { %2421 = vmatpush.bf16.msrb.mxu0 %v3606_v5  ;;  %v3417_v5 = vld [vmem:[#allocation5 + $0x188] sm:$0xf]  ;;  %v4310_v14 = vor.u32 %v4648_v2, %v4307_v4  ;;  %v4147_v28 = vld [vmem:[#allocation5 + $0x750] sm:$0xf0]  ;;  %v4294_v34 = vor.u32 %v4644_v31, %v4291_v3  ;;  %v4640_v38 = vld [vmem:[#allocation5 + $0x844] sm:$0xf] }
  0xbb   : > { %2408 = vmatmul.bf16.gmra.mxu3 %v5218_v24  ;;  %2440 = vmatpush.bf16.msrb.mxu1 %v3734_v23  ;;  %v3418_v22 = vor.u32 %v4427_v6, %v3417_v5  ;;  %v4166_v23 = vor.u32 %v4612_v8, %v4163_v9  ;;  %v4275_v16 = vld [vmem:[#allocation5 + $0x850] sm:$0xf0]  ;;  %v4636_v54 = vld [vmem:[#allocation5 + $0x824] sm:$0xf]  ;;  %v4415_v57 = vld [vmem:[#allocation5 + $0x134] sm:$0xf0] }
  0xbc   : > { %v4278_v48 = vor.u32 %v4640_v38, %v4275_v16  ;;  %v4259_v55 = vld [vmem:[#allocation5 + $0x830] sm:$0xf0]  ;;  %v3593_v62 = vld [vmem:[#allocation5 + $0x2e8] sm:$0xf]  ;;  %v4471_v63 = vld [vmem:[#allocation5 + $0x2f4] sm:$0xf0]  ;;  %v3370_v5 = vor.u32 %v4415_v57, %v3369_v56 }
  0xbd   : > { %2528 = vmatpush.bf16.msra.mxu2 %v3338_v26  ;;  %2478 = vmatpush.bf16.msrb.mxu3 %v3990_v32  ;;  %v4423_v26 = vld [vmem:[#allocation5 + $0x174] sm:$0xf0]  ;;  %v3225_v2 = vld [vmem:[#allocation5 + $0x8] sm:$0xf]  ;;  %v4632_v8 = vld [vmem:[#allocation5 + $0x804] sm:$0xf] }
  0xbe   : > { %2490 = vmatpush.bf16.msra.mxu0 %v4230_v37  ;;  %v4391_v37 = vld [vmem:[#allocation5 + $0x74] sm:$0xf0]  ;;  %v4243_v9 = vld [vmem:[#allocation5 + $0x810] sm:$0xf0]  ;;  %v3977_v3 = vld [vmem:[#allocation5 + $0x5e8] sm:$0xf] }
  0xbf   : > { %2509 = vmatpush.bf16.msra.mxu1 %v4358_v58  ;;  %v4608_v58 = vld [vmem:[#allocation5 + $0x744] sm:$0xf]  ;;  %v3274_v32 = vor.u32 %v4391_v37, %v3273_v21  ;;  %v4379_v4 = vld [vmem:[#allocation5 + $0x14] sm:$0xf0]  ;;  %v3849_v21 = vld [vmem:[#allocation5 + $0x4e8] sm:$0xf] }
  0xc0   : > { %v4535_v37 = vld [vmem:[#allocation5 + $0x4f4] sm:$0xf0]  ;;  %v3705_v40 = vld [vmem:[#allocation5 + $0x3c8] sm:$0xf] }
  0xc1   : > { %2547 = vmatpush.bf16.msra.mxu3 %v3466_v35  ;;  %2529 = vmatpush.bf16.msra.mxu2 %v3322_v42  ;;  %v3402_v35 = vor.u32 %v4423_v26, %v3401_v25  ;;  %v4604_v42 = vld [vmem:[#allocation5 + $0x724] sm:$0xf]  ;;  %v4503_v31 = vld [vmem:[#allocation5 + $0x3f4] sm:$0xf0]  ;;  %v3226_v25 = vor.u32 %v4379_v4, %v3225_v2  ;;  %v4246_v26 = vor.u32 %v4632_v8, %v4243_v9  ;;  %v3689_v56 = vld [vmem:[#allocation5 + $0x3a8] sm:$0xf] }
  0xc2   : > { %2491 = vmatpush.bf16.msra.mxu0 %v4214_v36  ;;  %v4150_v36 = vor.u32 %v4608_v58, %v4147_v28  ;;  %v4567_v58 = vld [vmem:[#allocation5 + $0x5f4] sm:$0xf0]  ;;  %v3577_v28 = vld [vmem:[#allocation5 + $0x2c8] sm:$0xf]  ;;  %v3850_v18 = vor.u32 %v4535_v37, %v3849_v21 }
  0xc3   : > { %2510 = vmatpush.bf16.msra.mxu1 %v4342_v47  ;;  %v4131_v47 = vld [vmem:[#allocation5 + $0x730] sm:$0xf0]  ;;  %v3978_v38 = vor.u32 %v4567_v58, %v3977_v3  ;;  %v4499_v41 = vld [vmem:[#allocation5 + $0x3d4] sm:$0xf0]  ;;  %v3801_v2 = vld [vmem:[#allocation5 + $0x488] sm:$0xf] }
  0xc4   : > { %2422 = vmatmul.bf16.vlgmr.msrb.gmra.mxu0 %v5201_v17  ;;  %2441 = vmatmul.bf16.vlgmr.msrb.gmra.mxu1 %v5240_v10  ;;  %v4134_v53 = vor.u32 %v4604_v42, %v4131_v47  ;;  %v3961_v42 = vld [vmem:[#allocation5 + $0x5c8] sm:$0xf]  ;;  %v4563_v47 = vld [vmem:[#allocation5 + $0x5d4] sm:$0xf0] }
  0xc5   : > { %2548 = vmatpush.bf16.msra.mxu3 %v3450_v39  ;;  %2530 = vmatpush.bf16.msra.mxu2 %v3306_v59  ;;  %v3241_v39 = vld [vmem:[#allocation5 + $0x28] sm:$0xf]  ;;  %v4600_v59 = vld [vmem:[#allocation5 + $0x704] sm:$0xf]  ;;  %v4495_v57 = vld [vmem:[#allocation5 + $0x3b4] sm:$0xf0] }
  0xc6   : > { %2492 = vmatpush.bf16.msra.mxu0 %v4198_v50  ;;  %2460 = vmatmul.bf16.vlgmr.msrb.gmra.mxu2 %v5244_v11  ;;  %v4383_v50 = vld [vmem:[#allocation5 + $0x34] sm:$0xf0]  ;;  %v3929_v21 = vld [vmem:[#allocation5 + $0x588] sm:$0xf] }
  0xc7   : > { %2511 = vmatpush.bf16.msra.mxu1 %v4326_v7  ;;  %v4115_v7 = vld [vmem:[#allocation5 + $0x710] sm:$0xf0]  ;;  %v4523_v4 = vld [vmem:[#allocation5 + $0x494] sm:$0xf0]  ;;  %v3657_v58 = vld [vmem:[#allocation5 + $0x368] sm:$0xf] }
  0xc8   : > { %v4118_v6 = vor.u32 %v4600_v59, %v4115_v7  ;;  %v3945_v59 = vld [vmem:[#allocation5 + $0x5a8] sm:$0xf]  ;;  %v3802_v37 = vor.u32 %v4523_v4, %v3801_v2 }
  0xc9   : > { %2549 = vmatpush.bf16.msra.mxu3 %v3434_v15  ;;  %2531 = vmatpush.bf16.msra.mxu2 %v3290_v12  ;;  %v3242_v15 = vor.u32 %v4383_v50, %v3241_v39  ;;  %v3353_v12 = vld [vmem:[#allocation5 + $0x108] sm:$0xf]  ;;  %v3706_v50 = vor.u32 %v4499_v41, %v3705_v40  ;;  %v4515_v41 = vld [vmem:[#allocation5 + $0x454] sm:$0xf0] }
  0xca   : > { %2493 = vmatpush.bf16.msra.mxu0 %v4182_v0  ;;  %v4262_v0 = vor.u32 %v4636_v54, %v4259_v55  ;;  %v3962_v54 = vor.u32 %v4563_v47, %v3961_v42  ;;  %v3769_v40 = vld [vmem:[#allocation5 + $0x448] sm:$0xf]  ;;  %v4483_v47 = vld [vmem:[#allocation5 + $0x354] sm:$0xf0] }
  0xcb   : > { %2512 = vmatpush.bf16.msra.mxu1 %v4310_v14  ;;  %2479 = vmatmul.bf16.vlgmr.msrb.gmra.mxu3 %v5251_v27  ;;  %v4411_v14 = vld [vmem:[#allocation5 + $0x114] sm:$0xf0]  ;;  %v3641_v42 = vld [vmem:[#allocation5 + $0x348] sm:$0xf] }
  0xcc   : > { %v3881_v4 = vld [vmem:[#allocation5 + $0x528] sm:$0xf] }
  0xcd   : > { %2550 = vmatpush.bf16.msra.mxu3 %v3418_v22  ;;  %2532 = vmatpush.bf16.msra.mxu2 %v3274_v32  ;;  %v3594_v22 = vor.u32 %v4471_v63, %v3593_v62  ;;  %v4467_v32 = vld [vmem:[#allocation5 + $0x2d4] sm:$0xf0]  ;;  %v3545_v63 = vld [vmem:[#allocation5 + $0x288] sm:$0xf] }
  0xce   : > { %2494 = vmatpush.bf16.msra.mxu0 %v4166_v23  ;;  %v3721_v23 = vld [vmem:[#allocation5 + $0x3e8] sm:$0xf]  ;;  %v3578_v16 = vor.u32 %v4467_v32, %v3577_v28  ;;  %v4559_v62 = vld [vmem:[#allocation5 + $0x5b4] sm:$0xf0] }
  0xcf   : > { %2513 = vmatpush.bf16.msra.mxu1 %v4294_v34  ;;  %v3354_v34 = vor.u32 %v4411_v14, %v3353_v12  ;;  %v3722_v19 = vor.u32 %v4503_v31, %v3721_v23  ;;  %v3946_v12 = vor.u32 %v4559_v62, %v3945_v59  ;;  %v3529_v23 = vld [vmem:[#allocation5 + $0x268] sm:$0xf]  ;;  %v4455_v31 = vld [vmem:[#allocation5 + $0x274] sm:$0xf0]  ;;  %v3642_v59 = vor.u32 %v4483_v47, %v3641_v42  ;;  %v4405_v47 = vld [vmem:[#allocation5 + $0xec] sm:$0xf] }
  0xd0   : > { %v4487_v28 = vld [vmem:[#allocation5 + $0x374] sm:$0xf0] }
  0xd1   : > { %2551 = vmatpush.bf16.msra.mxu3 %v3402_v35  ;;  %2533 = vmatpush.bf16.msra.mxu2 %v3258_v30  ;;  %v3833_v35 = vld [vmem:[#allocation5 + $0x4c8] sm:$0xf]  ;;  %v4511_v62 = vld [vmem:[#allocation5 + $0x434] sm:$0xf0] }
  0xd2   : > { %2495 = vmatpush.bf16.msra.mxu0 %v4150_v36  ;;  %v4531_v36 = vld [vmem:[#allocation5 + $0x4d4] sm:$0xf0]  ;;  %v3561_v30 = vld [vmem:[#allocation5 + $0x2a8] sm:$0xf] }
  0xd3   : > { %2514 = vmatpush.bf16.msra.mxu1 %v4278_v48  ;;  %v4463_v48 = vld [vmem:[#allocation5 + $0x2b4] sm:$0xf0]  ;;  %v3834_v39 = vor.u32 %v4531_v36, %v3833_v35  ;;  %v3513_v36 = vld [vmem:[#allocation5 + $0x248] sm:$0xf] }
  0xd4   : > { %2427 = vmatmul.bf16.gmra.mxu0 %v5229_v33  ;;  %2446 = vmatmul.bf16.gmra.mxu1 %v5280_v29  ;;  %v3562_v55 = vor.u32 %v4463_v48, %v3561_v30  ;;  %v4551_v35 = vld [vmem:[#allocation5 + $0x574] sm:$0xf0] }
  0xd5   : > { %2552 = vmatpush.bf16.msra.mxu3 %v3386_v52  ;;  %2534 = vmatpush.bf16.msra.mxu2 %v3242_v15  ;;  %v3817_v52 = vld [vmem:[#allocation5 + $0x4a8] sm:$0xf]  ;;  %v4459_v15 = vld [vmem:[#allocation5 + $0x294] sm:$0xf0] }
  0xd6   : > { %2496 = vmatpush.bf16.msra.mxu0 %v4134_v53  ;;  %2465 = vmatmul.bf16.gmra.mxu2 %v5283_v60  ;;  %v4527_v53 = vld [vmem:[#allocation5 + $0x4b4] sm:$0xf0]  ;;  %v3546_v14 = vor.u32 %v4459_v15, %v3545_v63  ;;  %v3625_v63 = vld [vmem:[#allocation5 + $0x328] sm:$0xf] }
  0xd7   : > { %2515 = vmatpush.bf16.msra.mxu1 %v4262_v0  ;;  %v3818_v7 = vor.u32 %v4527_v53, %v3817_v52  ;;  %v3690_v0 = vor.u32 %v4495_v57, %v3689_v56  ;;  %v3897_v52 = vld [vmem:[#allocation5 + $0x548] sm:$0xf]  ;;  %v4447_v57 = vld [vmem:[#allocation5 + $0x234] sm:$0xf0] }
  0xd8   : > { %v3497_v56 = vld [vmem:[#allocation5 + $0x228] sm:$0xf]  ;;  %v4479_v15 = vld [vmem:[#allocation5 + $0x334] sm:$0xf0] }
  0xd9   : > { %2553 = vmatpush.bf16.msra.mxu3 %v3370_v5  ;;  %2535 = vmatpush.bf16.msra.mxu2 %v3226_v25  ;;  %v3673_v5 = vld [vmem:[#allocation5 + $0x388] sm:$0xf]  ;;  %v3498_v2 = vor.u32 %v4447_v57, %v3497_v56 }
  0xda   : > { %2497 = vmatpush.bf16.msra.mxu0 %v4118_v6  ;;  %v4491_v6 = vld [vmem:[#allocation5 + $0x394] sm:$0xf0]  ;;  %v3785_v25 = vld [vmem:[#allocation5 + $0x468] sm:$0xf] }
  0xdb   : > { %2516 = vmatpush.bf16.msra.mxu1 %v4246_v26  ;;  %2484 = vmatmul.bf16.gmra.mxu3 %v5291_v45  ;;  %v3674_v3 = vor.u32 %v4491_v6, %v3673_v5  ;;  %v4519_v26 = vld [vmem:[#allocation5 + $0x474] sm:$0xf0]  ;;  %v4345_v57 = vld [vmem:[#allocation5 + $0x8c8] sm:$0xf] }
  0xdc   : > { %v4543_v5 = vld [vmem:[#allocation5 + $0x534] sm:$0xf0] }
  0xdd   : > { %2554 = vmatpush.bf16.msra.mxu3 %v3354_v34  ;;  %2604 = vmatpush.bf16.msrb.mxu2 %v3850_v18  ;;  %v3530_v34 = vor.u32 %v4455_v31, %v3529_v23  ;;  %v3913_v18 = vld [vmem:[#allocation5 + $0x568] sm:$0xf]  ;;  %v4507_v23 = vld [vmem:[#allocation5 + $0x414] sm:$0xf0] }
  0xde   : > { %2566 = vmatpush.bf16.msrb.mxu0 %v3594_v22  ;;  %v4555_v22 = vld [vmem:[#allocation5 + $0x594] sm:$0xf0]  ;;  %v4105_v31 = vld [vmem:[#allocation5 + $0x6e8] sm:$0xf] }
  0xdf   : > { %2585 = vmatpush.bf16.msrb.mxu1 %v3722_v19  ;;  %v3930_v32 = vor.u32 %v4555_v22, %v3929_v21  ;;  %v3786_v19 = vor.u32 %v4519_v26, %v3785_v25  ;;  %v3481_v21 = vld [vmem:[#allocation5 + $0x208] sm:$0xf]  ;;  %v3626_v22 = vor.u32 %v4479_v15, %v3625_v63  ;;  %v4475_v26 = vld [vmem:[#allocation5 + $0x314] sm:$0xf0] }
  0xe0   : > { %v3609_v25 = vld [vmem:[#allocation5 + $0x308] sm:$0xf]  ;;  %v4627_v63 = vld [vmem:[#allocation5 + $0x7d4] sm:$0xf0] }
  0xe1   : > { %2623 = vmatpush.bf16.msrb.mxu3 %v3978_v38  ;;  %2605 = vmatpush.bf16.msrb.mxu2 %v3834_v39  ;;  %v5329_v8 = vpop.f32.mrf.mxu0  ;;  %v5331_v9 = vpop.f32.mrf.mxu1  ;;  %v4451_v38 = vld [vmem:[#allocation5 + $0x254] sm:$0xf0]  ;;  %v3914_v39 = vor.u32 %v4551_v35, %v3913_v18  ;;  %v4233_v35 = vld [vmem:[#allocation5 + $0x7e8] sm:$0xf] }
  0xe2   : > { %2567 = vmatpush.bf16.msrb.mxu0 %v3578_v16  ;;  %v3658_v16 = vor.u32 %v4487_v28, %v3657_v58  ;;  %v4361_v58 = vld [vmem:[#allocation5 + $0x8e8] sm:$0xf] }
  0xe3   : > { %2586 = vmatpush.bf16.msrb.mxu1 %v3706_v50  ;;  %v3514_v50 = vor.u32 %v4451_v38, %v3513_v36  ;;  %v4631_v36 = vld [vmem:[#allocation5 + $0x7f4] sm:$0xf0] }
  0xe4   : > { %2498 = vmatmul.bf16.vlgmr.msra.gmra.mxu0 %v5269_v13  ;;  %2517 = vmatmul.bf16.vlgmr.msra.gmra.mxu1 %v5305_v46  ;;  %v4234_v56 = vor.u32 %v4631_v36, %v4233_v35  ;;  %v3307_v35 = vld [vmem:[#allocation5 + $0xb8] sm:$0xf0]  ;;  %v4057_v36 = vld [vmem:[#allocation5 + $0x688] sm:$0xf] }
  0xe5   : > { %2624 = vmatpush.bf16.msrb.mxu3 %v3962_v54  ;;  %2606 = vmatpush.bf16.msrb.mxu2 %v3818_v7  ;;  %v3770_v54 = vor.u32 %v4515_v41, %v3769_v40  ;;  %v3753_v7 = vld [vmem:[#allocation5 + $0x428] sm:$0xf]  ;;  %v4539_v41 = vld [vmem:[#allocation5 + $0x514] sm:$0xf0] }
  0xe6   : > { %2568 = vmatpush.bf16.msrb.mxu0 %v3562_v55  ;;  %2536 = vmatmul.bf16.vlgmr.msra.gmra.mxu2 %v5169_v43  ;;  %v4547_v55 = vld [vmem:[#allocation5 + $0x554] sm:$0xf0]  ;;  %v3865_v40 = vld [vmem:[#allocation5 + $0x508] sm:$0xf] }
  0xe7   : > { %2587 = vmatpush.bf16.msrb.mxu1 %v3690_v0  ;;  %v3898_v0 = vor.u32 %v4547_v55, %v3897_v52  ;;  %v4089_v52 = vld [vmem:[#allocation5 + $0x6c8] sm:$0xf] }
  0xe9   : > { %2625 = vmatpush.bf16.msrb.mxu3 %v3946_v12  ;;  %2607 = vmatpush.bf16.msrb.mxu2 %v3802_v37  ;;  %v5336_v30 = vpop.f32.mrf.mxu0  ;;  %v5338_v48 = vpop.f32.mrf.mxu1  ;;  %v3754_v12 = vor.u32 %v4511_v62, %v3753_v7  ;;  %v4443_v37 = vld [vmem:[#allocation5 + $0x214] sm:$0xf0]  ;;  %v4217_v62 = vld [vmem:[#allocation5 + $0x7c8] sm:$0xf] }
  0xea   : > { %2569 = vmatpush.bf16.msrb.mxu0 %v3546_v14  ;;  %v5340_v53 = vpop.f32.mrf.mxu2  ;;  %v3737_v14 = vld [vmem:[#allocation5 + $0x408] sm:$0xf]  ;;  %v3482_v18 = vor.u32 %v4443_v37, %v3481_v21  ;;  %v4659_v7 = vld [vmem:[#allocation5 + $0x8d4] sm:$0xf0]  ;;  %v4218_v37 = vor.u32 %v4627_v63, %v4217_v62 }
  0xeb   : > { %2588 = vmatpush.bf16.msrb.mxu1 %v3674_v3  ;;  %2555 = vmatmul.bf16.vlgmr.msra.gmra.mxu3 %v5173_v44  ;;  %v4599_v3 = vld [vmem:[#allocation5 + $0x6f4] sm:$0xf0]  ;;  %v4346_v21 = vor.u32 %v4659_v7, %v4345_v57  ;;  %v3291_v57 = vld [vmem:[#allocation5 + $0x98] sm:$0xf0] }
  0xec   : > { %v4106_v42 = vor.u32 %v4599_v3, %v4105_v31  ;;  %v4655_v3 = vld [vmem:[#allocation5 + $0x8b4] sm:$0xf0] }
  0xed   : > { %2626 = vmatpush.bf16.msrb.mxu3 %v3930_v32  ;;  %2608 = vmatpush.bf16.msrb.mxu2 %v3786_v19  ;;  %v4663_v19 = vld [vmem:[#allocation5 + $0x8f4] sm:$0xf0] }
  0xee   : > { %2570 = vmatpush.bf16.msrb.mxu0 %v3530_v34  ;;  %v5343_v6 = vpop.f32.mrf.mxu3  ;;  %v3882_v34 = vor.u32 %v4543_v5, %v3881_v4  ;;  %v4362_v55 = vor.u32 %v4663_v19, %v4361_v58  ;;  %v4401_v4 = vld [vmem:[#allocation5 + $0xcc] sm:$0xf]  ;;  %v3323_v5 = vld [vmem:[#allocation5 + $0xd8] sm:$0xf0]  ;;  %v4583_v7 = vld [vmem:[#allocation5 + $0x674] sm:$0xf0] }
  0xef   : > { %2589 = vmatpush.bf16.msrb.mxu1 %v3658_v16  ;;  %v3738_v16 = vor.u32 %v4507_v23, %v3737_v14  ;;  %v4591_v14 = vld [vmem:[#allocation5 + $0x6b4] sm:$0xf0]  ;;  %v4397_v19 = vld [vmem:[#allocation5 + $0xac] sm:$0xf] }
  0xf1   : > { %2627 = vmatpush.bf16.msrb.mxu3 %v3914_v39  ;;  %2609 = vmatpush.bf16.msrb.mxu2 %v3770_v54  ;;  %v5345_v28 = vpop.f32.mrf.mxu0  ;;  %v5347_v32 = vpop.f32.mrf.mxu1  ;;  %v3610_v39 = vor.u32 %v4475_v26, %v3609_v25  ;;  %v4595_v54 = vld [vmem:[#allocation5 + $0x6d4] sm:$0xf0]  ;;  %v4201_v25 = vld [vmem:[#allocation5 + $0x7a8] sm:$0xf] }
  0xf2   : > { %2571 = vmatpush.bf16.msrb.mxu0 %v3514_v50  ;;  %v5349_v38 = vpop.f32.mrf.mxu2  ;;  %v3339_v50 = vld [vmem:[#allocation5 + $0xf8] sm:$0xf0]  ;;  %v4623_v26 = vld [vmem:[#allocation5 + $0x7b4] sm:$0xf0] }
  0xf3   : > { %2590 = vmatpush.bf16.msrb.mxu1 %v3642_v59  ;;  %v3866_v59 = vor.u32 %v4539_v41, %v3865_v40  ;;  %v4202_v41 = vor.u32 %v4623_v26, %v4201_v25  ;;  %v3275_v25 = vld [vmem:[#allocation5 + $0x78] sm:$0xf0]  ;;  %v4025_v26 = vld [vmem:[#allocation5 + $0x648] sm:$0xf] }
  0xf4   : > { %2503 = vmatmul.bf16.gmra.mxu0 %v5297_v1  ;;  %2522 = vmatmul.bf16.gmra.mxu1 %v5315_v20 }
  0xf5   : > { %2628 = vmatpush.bf16.msrb.mxu3 %v3898_v0  ;;  %2610 = vmatpush.bf16.msrb.mxu2 %v3754_v12  ;;  %v3342_v0 = vor.u32 %v4405_v47, %v3339_v50  ;;  %v4073_v12 = vld [vmem:[#allocation5 + $0x6a8] sm:$0xf]  ;;  %v4651_v47 = vld [vmem:[#allocation5 + $0x894] sm:$0xf0]  ;;  %v3310_v50 = vor.u32 %v4397_v19, %v3307_v35 }
  0xf6   : > { %2572 = vmatpush.bf16.msrb.mxu0 %v3498_v2  ;;  %v5353_v15 = vpop.f32.mrf.mxu3  ;;  %v4090_v2 = vor.u32 %v4595_v54, %v4089_v52  ;;  %2541 = vmatmul.bf16.gmra.mxu2 %v5176_v49  ;;  %v4185_v54 = vld [vmem:[#allocation5 + $0x788] sm:$0xf] }
  0xf7   : > { %2591 = vmatpush.bf16.msrb.mxu1 %v3626_v22  ;;  %v4329_v22 = vld [vmem:[#allocation5 + $0x8a8] sm:$0xf] }
  0xf8   : > { %v4330_v40 = vor.u32 %v4655_v3, %v4329_v22  ;;  %v4615_v22 = vld [vmem:[#allocation5 + $0x774] sm:$0xf0]  ;;  %v4389_v3 = vld [vmem:[#allocation5 + $0x6c] sm:$0xf]  ;;  %v4281_v35 = vld [vmem:[#allocation5 + $0x848] sm:$0xf] }
  0xf9   : > { %2629 = vmatpush.bf16.msrb.mxu3 %v3882_v34  ;;  %2611 = vmatpush.bf16.msrb.mxu2 %v3738_v16  ;;  %v5356_v23 = vpop.f32.mrf.mxu0  ;;  %v5358_v31 = vpop.f32.mrf.mxu1  ;;  %v3326_v34 = vor.u32 %v4401_v4, %v3323_v5  ;;  %v4587_v16 = vld [vmem:[#allocation5 + $0x694] sm:$0xf0]  ;;  %v4297_v4 = vld [vmem:[#allocation5 + $0x868] sm:$0xf] }
  0xfa   : > { %2573 = vmatpush.bf16.msrb.mxu0 %v3482_v18  ;;  %v5360_v58 = vpop.f32.mrf.mxu2  ;;  %v4074_v18 = vor.u32 %v4591_v14, %v4073_v12  ;;  %v4058_v52 = vor.u32 %v4587_v16, %v4057_v36  ;;  %v4647_v5 = vld [vmem:[#allocation5 + $0x874] sm:$0xf0] }
  0xfb   : > { %2592 = vmatpush.bf16.msrb.mxu1 %v3610_v39  ;;  %2560 = vmatmul.bf16.gmra.mxu3 %v5211_v51  ;;  %v4643_v36 = vld [vmem:[#allocation5 + $0x854] sm:$0xf0]  ;;  %v4501_v51 = vld [vmem:[#allocation5 + $0x3ec] sm:$0xf] }
  0xfd   : > { %2680 = vmatpush.bf16.msra.mxu2 %v4362_v55  ;;  %2630 = vmatpush.bf16.msrb.mxu3 %v3866_v59  ;;  %v4619_v55 = vld [vmem:[#allocation5 + $0x794] sm:$0xf0]  ;;  %v4041_v59 = vld [vmem:[#allocation5 + $0x668] sm:$0xf] }
  0xfe   : > { %2642 = vmatpush.bf16.msra.mxu0 %v4106_v42  ;;  %v4313_v42 = vld [vmem:[#allocation5 + $0x888] sm:$0xf]  ;;  %v5363_v39 = vpop.f32.mrf.mxu3 }
  0xff   : > { %2661 = vmatpush.bf16.msra.mxu1 %v4234_v56  ;;  %v4393_v56 = vld [vmem:[#allocation5 + $0x8c] sm:$0xf] }
 0x100   : > { %v3294_v14 = vor.u32 %v4393_v56, %v3291_v57 }
 0x101   : > { %2699 = vmatpush.bf16.msra.mxu3 %v3342_v0  ;;  %2681 = vmatpush.bf16.msra.mxu2 %v4346_v21  ;;  %v5365_v62 = vpop.f32.mrf.mxu0  ;;  %v5367_v63 = vpop.f32.mrf.mxu1  ;;  %v4314_v0 = vor.u32 %v4651_v47, %v4313_v42  ;;  %v4042_v21 = vor.u32 %v4583_v7, %v4041_v59  ;;  %v4153_v42 = vld [vmem:[#allocation5 + $0x748] sm:$0xf]  ;;  %v4611_v47 = vld [vmem:[#allocation5 + $0x754] sm:$0xf0]  ;;  %v4282_v59 = vor.u32 %v4643_v36, %v4281_v35 }
 0x102   : > { %2643 = vmatpush.bf16.msra.mxu0 %v4090_v2  ;;  %v4186_v2 = vor.u32 %v4619_v55, %v4185_v54  ;;  %v5369_v12 = vpop.f32.mrf.mxu2  ;;  %v4009_v54 = vld [vmem:[#allocation5 + $0x628] sm:$0xf]  ;;  %v4575_v55 = vld [vmem:[#allocation5 + $0x634] sm:$0xf0]  ;;  %v4154_v7 = vor.u32 %v4611_v47, %v4153_v42 }
 0x103   : > { %2662 = vmatpush.bf16.msra.mxu1 %v4218_v37  ;;  %v4169_v37 = vld [vmem:[#allocation5 + $0x768] sm:$0xf]  ;;  %v4635_v42 = vld [vmem:[#allocation5 + $0x814] sm:$0xf0] }
 0x104   : > { %2574 = vmatmul.bf16.vlgmr.msrb.gmra.mxu0 %v5187_v61  ;;  %2593 = vmatmul.bf16.vlgmr.msrb.gmra.mxu1 %v5201_v17  ;;  %v4170_v19 = vor.u32 %v4615_v22, %v4169_v37  ;;  %v4607_v37 = vld [vmem:[#allocation5 + $0x734] sm:$0xf0]  ;;  %v4381_v22 = vld [vmem:[#allocation5 + $0x2c] sm:$0xf]  ;;  %v4249_v36 = vld [vmem:[#allocation5 + $0x808] sm:$0xf] }
 0x105   : > { %2700 = vmatpush.bf16.msra.mxu3 %v3326_v34  ;;  %2682 = vmatpush.bf16.msra.mxu2 %v4330_v40  ;;  %v4579_v34 = vld [vmem:[#allocation5 + $0x654] sm:$0xf0]  ;;  %v3278_v40 = vor.u32 %v4389_v3, %v3275_v25  ;;  %v3243_v3 = vld [vmem:[#allocation5 + $0x38] sm:$0xf0]  ;;  %v3993_v25 = vld [vmem:[#allocation5 + $0x608] sm:$0xf] }
 0x106   : > { %2644 = vmatpush.bf16.msra.mxu0 %v4074_v18  ;;  %v4298_v18 = vor.u32 %v4647_v5, %v4297_v4  ;;  %v5373_v16 = vpop.f32.mrf.mxu3  ;;  %2612 = vmatmul.bf16.vlgmr.msrb.gmra.mxu2 %v5240_v10  ;;  %v3246_v47 = vor.u32 %v4381_v22, %v3243_v3  ;;  %v4433_v22 = vld [vmem:[#allocation5 + $0x1cc] sm:$0xf]  ;;  %v3451_v3 = vld [vmem:[#allocation5 + $0x1d8] sm:$0xf0] }
 0x107   : > { %2663 = vmatpush.bf16.msra.mxu1 %v4202_v41  ;;  %v4026_v41 = vor.u32 %v4579_v34, %v4025_v26  ;;  %v4571_v26 = vld [vmem:[#allocation5 + $0x614] sm:$0xf0]  ;;  %v4437_v34 = vld [vmem:[#allocation5 + $0x1ec] sm:$0xf] }
 0x109   : > { %2701 = vmatpush.bf16.msra.mxu3 %v3310_v50  ;;  %2683 = vmatpush.bf16.msra.mxu2 %v4314_v0  ;;  %v4385_v50 = vld [vmem:[#allocation5 + $0x4c] sm:$0xf]  ;;  %v5376_v56 = vpop.f32.mrf.mxu0  ;;  %v5378_v57 = vpop.f32.mrf.mxu1  ;;  %v4265_v0 = vld [vmem:[#allocation5 + $0x828] sm:$0xf] }
 0x10a   : > { %2645 = vmatpush.bf16.msra.mxu0 %v4058_v52  ;;  %v3259_v52 = vld [vmem:[#allocation5 + $0x58] sm:$0xf0]  ;;  %v5380_v4 = vpop.f32.mrf.mxu2 }
 0x10b   : > { %2664 = vmatpush.bf16.msra.mxu1 %v4186_v2  ;;  %v4639_v2 = vld [vmem:[#allocation5 + $0x834] sm:$0xf0]  ;;  %v3262_v5 = vor.u32 %v4385_v50, %v3259_v52  ;;  %2631 = vmatmul.bf16.vlgmr.msrb.gmra.mxu3 %v5244_v11  ;;  %v3994_v50 = vor.u32 %v4571_v26, %v3993_v25  ;;  %v4121_v52 = vld [vmem:[#allocation5 + $0x708] sm:$0xf]  ;;  %v3227_v11 = vld [vmem:[#allocation5 + $0x18] sm:$0xf0] }
 0x10d   : > { %2702 = vmatpush.bf16.msra.mxu3 %v3294_v14  ;;  %2684 = vmatpush.bf16.msra.mxu2 %v4298_v18  ;;  %v4010_v14 = vor.u32 %v4575_v55, %v4009_v54  ;;  %v3467_v18 = vld [vmem:[#allocation5 + $0x1f8] sm:$0xf0]  ;;  %v4603_v54 = vld [vmem:[#allocation5 + $0x714] sm:$0xf0]  ;;  %v4377_v55 = vld [vmem:[#allocation5 + $0xc] sm:$0xf] }
 0x10e   : > { %2646 = vmatpush.bf16.msra.mxu0 %v4042_v21  ;;  %v4137_v21 = vld [vmem:[#allocation5 + $0x728] sm:$0xf]  ;;  %v3230_v26 = vor.u32 %v4377_v55, %v3227_v11  ;;  %v4429_v11 = vld [vmem:[#allocation5 + $0x1ac] sm:$0xf] }
 0x10f   : > { %2665 = vmatpush.bf16.msra.mxu1 %v4170_v19  ;;  %v4266_v19 = vor.u32 %v4639_v2, %v4265_v0  ;;  %v4138_v35 = vor.u32 %v4607_v37, %v4137_v21  ;;  %v4469_v2 = vld [vmem:[#allocation5 + $0x2ec] sm:$0xf]  ;;  %v3595_v21 = vld [vmem:[#allocation5 + $0x2f8] sm:$0xf0] }
 0x110   : > { %v4533_v37 = vld [vmem:[#allocation5 + $0x4ec] sm:$0xf] }
 0x111   : > { %2703 = vmatpush.bf16.msra.mxu3 %v3278_v40  ;;  %2685 = vmatpush.bf16.msra.mxu2 %v4282_v59  ;;  %v2215_v40 = vadd.f32 %v5331_v9, %v5329_v8  ;;  %v3723_v59 = vld [vmem:[#allocation5 + $0x3f8] sm:$0xf0]  ;;  %v5388_v10 = vpop.f32.mrf.mxu0  ;;  %v5390_v8 = vpop.f32.mrf.mxu1  ;;  %v4250_v9 = vor.u32 %v4635_v42, %v4249_v36  ;;  %v4465_v36 = vld [vmem:[#allocation5 + $0x2cc] sm:$0xf] }
 0x112   : > { %2647 = vmatpush.bf16.msra.mxu0 %v4026_v41  ;;  %v5385_v41 = vpop.f32.mrf.mxu3  ;;  %v5392_v25 = vpop.f32.mrf.mxu2  ;;  %v3579_v42 = vld [vmem:[#allocation5 + $0x2d8] sm:$0xf0] }
 0x113   : > { %2666 = vmatpush.bf16.msra.mxu1 %v4154_v7  ;;  %v3470_v7 = vor.u32 %v4437_v34, %v3467_v18  ;;  %v2234_v0 = vadd.f32 %v5340_v53, %v2215_v40  ;;  %v3726_v53 = vor.u32 %v4501_v51, %v3723_v59  ;;  %v3598_v34 = vor.u32 %v4469_v2, %v3595_v21  ;;  %v4497_v18 = vld [vmem:[#allocation5 + $0x3cc] sm:$0xf]  ;;  %v3707_v40 = vld [vmem:[#allocation5 + $0x3d8] sm:$0xf0] }
 0x114   : > { %2579 = vmatmul.bf16.gmra.mxu0 %v5218_v24  ;;  %2598 = vmatmul.bf16.gmra.mxu1 %v5229_v33  ;;  %v3835_v51 = vld [vmem:[#allocation5 + $0x4d8] sm:$0xf0]  ;;  %v3710_v55 = vor.u32 %v4497_v18, %v3707_v40  ;;  %v4461_v21 = vld [vmem:[#allocation5 + $0x2ac] sm:$0xf] }
 0x115   : > { %2704 = vmatpush.bf16.msra.mxu3 %v3262_v5  ;;  %2686 = vmatpush.bf16.msra.mxu2 %v4266_v19  ;;  %v4122_v5 = vor.u32 %v4603_v54, %v4121_v52  ;;  %v2253_v17 = vadd.f32 %v5343_v6, %v2234_v0  ;;  %v4529_v52 = vld [vmem:[#allocation5 + $0x4cc] sm:$0xf]  ;;  %v3675_v40 = vld [vmem:[#allocation5 + $0x398] sm:$0xf0] }
 0x116   : > { %2648 = vmatpush.bf16.msra.mxu0 %v4010_v14  ;;  %v3851_v14 = vld [vmem:[#allocation5 + $0x4f8] sm:$0xf0]  ;;  %2617 = vmatmul.bf16.gmra.mxu2 %v5280_v29  ;;  %v4493_v0 = vld [vmem:[#allocation5 + $0x3ac] sm:$0xf] }
 0x117   : > { %2667 = vmatpush.bf16.msra.mxu1 %v4138_v35  ;;  %v3854_v19 = vor.u32 %v4533_v37, %v3851_v14  ;;  %v3454_v35 = vor.u32 %v4433_v22, %v3451_v3  ;;  %v2272_v54 = vadd.f32 %v5365_v62, %v2253_v17  ;;  %v3563_v37 = vld [vmem:[#allocation5 + $0x2b8] sm:$0xf0]  ;;  %v4525_v17 = vld [vmem:[#allocation5 + $0x4ac] sm:$0xf] }
 0x118   : > { %v4425_v14 = vld [vmem:[#allocation5 + $0x18c] sm:$0xf] }
 0x119   : > { %2705 = vmatpush.bf16.msra.mxu3 %v3246_v47  ;;  %v2217_v47 = vadd.f32 %v5338_v48, %v5336_v30  ;;  %2687 = vmatpush.bf16.msra.mxu2 %v4250_v9  ;;  %v3691_v30 = vld [vmem:[#allocation5 + $0x3b8] sm:$0xf0]  ;;  %v3838_v48 = vor.u32 %v4529_v52, %v3835_v51  ;;  %v5404_v62 = vpop.f32.mrf.mxu0  ;;  %v5406_v9 = vpop.f32.mrf.mxu1  ;;  %v2291_v22 = vadd.f32 %v5367_v63, %v2272_v54  ;;  %v4489_v18 = vld [vmem:[#allocation5 + $0x38c] sm:$0xf] }
 0x11a   : > { %2649 = vmatpush.bf16.msra.mxu0 %v3994_v50  ;;  %v3435_v50 = vld [vmem:[#allocation5 + $0x1b8] sm:$0xf0]  ;;  %v5400_v6 = vpop.f32.mrf.mxu3  ;;  %v5409_v3 = vpop.f32.mrf.mxu2  ;;  %v4457_v63 = vld [vmem:[#allocation5 + $0x28c] sm:$0xf] }
 0x11b   : > { %2668 = vmatpush.bf16.msra.mxu1 %v4122_v5  ;;  %v2236_v59 = vadd.f32 %v5349_v38, %v2217_v47  ;;  %v3438_v2 = vor.u32 %v4429_v11, %v3435_v50  ;;  %v3819_v5 = vld [vmem:[#allocation5 + $0x4b8] sm:$0xf0]  ;;  %2636 = vmatmul.bf16.gmra.mxu3 %v5283_v60  ;;  %v4521_v52 = vld [vmem:[#allocation5 + $0x48c] sm:$0xf]  ;;  %v2220_v47 = vadd.f32 %v5347_v32, %v5345_v28 }
 0x11c   : > { %v3419_v38 = vld [vmem:[#allocation5 + $0x198] sm:$0xf0]  ;;  %v3678_v11 = vor.u32 %v4489_v18, %v3675_v40  ;;  %v4421_v54 = vld [vmem:[#allocation5 + $0x16c] sm:$0xf] }
 0x11d   : > { %2706 = vmatpush.bf16.msra.mxu3 %v3230_v26  ;;  %2756 = vmatpush.bf16.msrb.mxu2 %v3726_v53  ;;  %v3694_v26 = vor.u32 %v4493_v0, %v3691_v30  ;;  %v2255_v53 = vadd.f32 %v5353_v15, %v2236_v59  ;;  %v3803_v50 = vld [vmem:[#allocation5 + $0x498] sm:$0xf0]  ;;  %v4485_v59 = vld [vmem:[#allocation5 + $0x36c] sm:$0xf]  ;;  %v2239_v0 = vadd.f32 %v5360_v58, %v2220_v47 }
 0x11e   : > { %2718 = vmatpush.bf16.msrb.mxu0 %v3470_v7  ;;  %v3582_v7 = vor.u32 %v4465_v36, %v3579_v42  ;;  %v3422_v36 = vor.u32 %v4425_v14, %v3419_v38  ;;  %v3547_v42 = vld [vmem:[#allocation5 + $0x298] sm:$0xf0]  ;;  %v4453_v28 = vld [vmem:[#allocation5 + $0x26c] sm:$0xf] }
 0x11f   : > { %2737 = vmatpush.bf16.msrb.mxu1 %v3598_v34  ;;  %v3566_v34 = vor.u32 %v4461_v21, %v3563_v37  ;;  %v2274_v15 = vadd.f32 %v5376_v56, %v2255_v53  ;;  %v3531_v32 = vld [vmem:[#allocation5 + $0x278] sm:$0xf0]  ;;  %v4517_v37 = vld [vmem:[#allocation5 + $0x46c] sm:$0xf]  ;;  %v2258_v18 = vadd.f32 %v5363_v39, %v2239_v0 }
 0x120   : > { %v4417_v38 = vld [vmem:[#allocation5 + $0x14c] sm:$0xf]  ;;  %v3771_v47 = vld [vmem:[#allocation5 + $0x458] sm:$0xf0] }
 0x121   : > { %2775 = vmatpush.bf16.msrb.mxu3 %v3854_v19  ;;  %2757 = vmatpush.bf16.msrb.mxu2 %v3710_v55  ;;  %v2310_v19 = vadd.f32 %v5380_v4, %v2291_v22  ;;  %v3403_v4 = vld [vmem:[#allocation5 + $0x178] sm:$0xf0]  ;;  %v3550_v55 = vor.u32 %v4457_v63, %v3547_v42  ;;  %v2347_v56 = vpop.f32.mrf.mxu0  ;;  %v4481_v53 = vld [vmem:[#allocation5 + $0x34c] sm:$0xf]  ;;  %v2277_v63 = vadd.f32 %v5388_v10, %v2258_v18 }
 0x122   : > { %2719 = vmatpush.bf16.msrb.mxu0 %v3454_v35  ;;  %v3822_v35 = vor.u32 %v4525_v17, %v3819_v5  ;;  %v5418_v51 = vpop.f32.mrf.mxu3  ;;  %v3406_v21 = vor.u32 %v4421_v54, %v3403_v4  ;;  %v2293_v17 = vadd.f32 %v5378_v57, %v2274_v15  ;;  %v5425_v5 = vpop.f32.mrf.mxu2  ;;  %v3387_v22 = vld [vmem:[#allocation5 + $0x158] sm:$0xf0]  ;;  %v4449_v57 = vld [vmem:[#allocation5 + $0x24c] sm:$0xf] }
 0x123   : > { %2738 = vmatpush.bf16.msrb.mxu1 %v3582_v7  ;;  %v3659_v7 = vld [vmem:[#allocation5 + $0x378] sm:$0xf0]  ;;  %v2329_v30 = vadd.f32 %v5385_v41, %v2310_v19  ;;  %v4413_v15 = vld [vmem:[#allocation5 + $0x12c] sm:$0xf] }
 0x124   : > { %v3662_v58 = vor.u32 %v4485_v59, %v3659_v7  ;;  %v3787_v41 = vld [vmem:[#allocation5 + $0x478] sm:$0xf0]  ;;  %v2312_v40 = vadd.f32 %v5392_v25, %v2293_v17  ;;  %2650 = vmatmul.bf16.vlgmr.msra.gmra.mxu0 %v5251_v27  ;;  %2669 = vmatmul.bf16.vlgmr.msra.gmra.mxu1 %v5269_v13  ;;  %v4513_v25 = vld [vmem:[#allocation5 + $0x44c] sm:$0xf] }
 0x125   : > { %2776 = vmatpush.bf16.msrb.mxu3 %v3838_v48  ;;  %2758 = vmatpush.bf16.msrb.mxu2 %v3694_v26  ;;  %v5422_v48 = vpop.f32.mrf.mxu1  ;;  %v5427_v14 = vadd.f32 %v2347_v56, %v2329_v30  ;;  %v3534_v26 = vor.u32 %v4453_v28, %v3531_v32  ;;  %v3515_v19 = vld [vmem:[#allocation5 + $0x258] sm:$0xf0]  ;;  %v3790_v39 = vor.u32 %v4517_v37, %v3787_v41  ;;  %v4509_v10 = vld [vmem:[#allocation5 + $0x42c] sm:$0xf] }
 0x126   : > { %2720 = vmatpush.bf16.msrb.mxu0 %v3438_v2  ;;  %v3806_v2 = vor.u32 %v4521_v52, %v3803_v50  ;;  %2688 = vmatmul.bf16.vlgmr.msra.gmra.mxu2 %v5305_v46  ;;  %v3627_v54 = vld [vmem:[#allocation5 + $0x338] sm:$0xf0]  ;;  %v2331_v4 = vadd.f32 %v5400_v6, %v2312_v40  ;;  %v3774_v30 = vor.u32 %v4513_v25, %v3771_v47  ;;  %v4409_v17 = vld [vmem:[#allocation5 + $0x10c] sm:$0xf] }
 0x127   : > { %2739 = vmatpush.bf16.msrb.mxu1 %v3566_v34  ;;  %v3643_v34 = vld [vmem:[#allocation5 + $0x358] sm:$0xf0]  ;;  %2870 = vst [vmem:[%s5433_s26] sm:$0xff] %v5427_v14  ;;  %v4441_v41 = vld [vmem:[#allocation5 + $0x20c] sm:$0xf]  ;;  %v2941_v18 = vmul.f32 %v5427_v14, %v5427_v14 }
 0x128   : > { %v3646_v52 = vor.u32 %v4481_v53, %v3643_v34  ;;  %v3499_v59 = vld [vmem:[#allocation5 + $0x238] sm:$0xf0]  ;;  %v4565_v53 = vld [vmem:[#allocation5 + $0x5ec] sm:$0xf] }
 0x129   : > { %2777 = vmatpush.bf16.msrb.mxu3 %v3822_v35  ;;  %2759 = vmatpush.bf16.msrb.mxu2 %v3678_v11  ;;  %v2222_v35 = vadd.f32 %v5358_v31, %v5356_v23  ;;  %v3371_v11 = vld [vmem:[#allocation5 + $0x138] sm:$0xf0]  ;;  %v3518_v23 = vor.u32 %v4449_v57, %v3515_v19  ;;  %v4477_v31 = vld [vmem:[#allocation5 + $0x32c] sm:$0xf]  ;;  %v2349_v7 = vpop.f32.mrf.mxu0 }
 0x12a   : > { %2721 = vmatpush.bf16.msrb.mxu0 %v3422_v36  ;;  %v3390_v36 = vor.u32 %v4417_v38, %v3387_v22  ;;  %v5442_v42 = vpop.f32.mrf.mxu3  ;;  %v3374_v28 = vor.u32 %v4413_v15, %v3371_v11  ;;  %v3755_v32 = vld [vmem:[#allocation5 + $0x438] sm:$0xf0]  ;;  %v2350_v37 = vadd.f32 %v2349_v7, %v2331_v4  ;;  %v3630_v6 = vor.u32 %v4477_v31, %v3627_v54  ;;  %v4629_v19 = vld [vmem:[#allocation5 + $0x7ec] sm:$0xf] }
 0x12b   : > { %2740 = vmatpush.bf16.msrb.mxu1 %v3550_v55  ;;  %v2241_v50 = vadd.f32 %v5369_v12, %v2222_v35  ;;  %v4445_v55 = vld [vmem:[#allocation5 + $0x22c] sm:$0xf]  ;;  %v3611_v56 = vld [vmem:[#allocation5 + $0x318] sm:$0xf0]  ;;  %2707 = vmatmul.bf16.vlgmr.msra.gmra.mxu3 %v5169_v43  ;;  %v3758_v43 = vor.u32 %v4509_v10, %v3755_v32 }
 0x12c   : > { %v4473_v12 = vld [vmem:[#allocation5 + $0x30c] sm:$0xf]  ;;  %v3502_v22 = vor.u32 %v4445_v55, %v3499_v59  ;;  %v3979_v34 = vld [vmem:[#allocation5 + $0x5f8] sm:$0xf0]  ;;  %2874 = vst [vmem:[%s5433_s26 + $0x20] sm:$0xff] %v2350_v37  ;;  %v2886_v40 = vadd.f32 %v2350_v37, %v5427_v14  ;;  %v2945_v57 = vmul.f32 %v2350_v37, %v2350_v37 }
 0x12d   : > { %2778 = vmatpush.bf16.msrb.mxu3 %v3806_v2  ;;  %2760 = vmatpush.bf16.msrb.mxu2 %v3662_v58  ;;  %v5447_v0 = vpop.f32.mrf.mxu1  ;;  %v2296_v2 = vadd.f32 %v5390_v8, %v2277_v63  ;;  %v3355_v58 = vld [vmem:[#allocation5 + $0x118] sm:$0xf0]  ;;  %v2260_v38 = vadd.f32 %v5373_v16, %v2241_v50  ;;  %v3982_v47 = vor.u32 %v4565_v53, %v3979_v34  ;;  %v4597_v15 = vld [vmem:[#allocation5 + $0x6ec] sm:$0xf] }
 0x12e   : > { %2722 = vmatpush.bf16.msrb.mxu0 %v3406_v21  ;;  %v5450_v21 = vpop.f32.mrf.mxu2  ;;  %v4235_v35 = vld [vmem:[#allocation5 + $0x7f8] sm:$0xf0]  ;;  %v4661_v14 = vld [vmem:[#allocation5 + $0x8ec] sm:$0xf] }
 0x12f   : > { %2741 = vmatpush.bf16.msrb.mxu1 %v3534_v26  ;;  %v3483_v26 = vld [vmem:[#allocation5 + $0x218] sm:$0xf0]  ;;  %v2315_v8 = vadd.f32 %v5409_v3, %v2296_v2  ;;  %v2279_v16 = vadd.f32 %v5404_v62, %v2260_v38  ;;  %v2957_v3 = vadd.f32 %v2945_v57, %v2941_v18  ;;  %v4561_v62 = vld [vmem:[#allocation5 + $0x5cc] sm:$0xf] }
 0x130   : > { %v3739_v25 = vld [vmem:[#allocation5 + $0x418] sm:$0xf0]  ;;  %v3486_v50 = vor.u32 %v4441_v41, %v3483_v26  ;;  %v4557_v41 = vld [vmem:[#allocation5 + $0x5ac] sm:$0xf] }
 0x131   : > { %2779 = vmatpush.bf16.msrb.mxu3 %v3790_v39  ;;  %2761 = vmatpush.bf16.msrb.mxu2 %v3646_v52  ;;  %v3358_v39 = vor.u32 %v4409_v17, %v3355_v58  ;;  %v3614_v52 = vor.u32 %v4473_v12, %v3611_v56  ;;  %v4107_v11 = vld [vmem:[#allocation5 + $0x6f8] sm:$0xf0]  ;;  %v2334_v4 = vadd.f32 %v5418_v51, %v2315_v8  ;;  %v2352_v59 = vpop.f32.mrf.mxu0  ;;  %v4593_v51 = vld [vmem:[#allocation5 + $0x6cc] sm:$0xf] }
 0x132   : > { %2723 = vmatpush.bf16.msrb.mxu0 %v3390_v36  ;;  %v4505_v36 = vld [vmem:[#allocation5 + $0x40c] sm:$0xf]  ;;  %v5460_v63 = vpop.f32.mrf.mxu3  ;;  %v4363_v31 = vld [vmem:[#allocation5 + $0x8f8] sm:$0xf0]  ;;  %v2298_v55 = vadd.f32 %v5406_v9, %v2279_v16 }
 0x133   : > { %2742 = vmatpush.bf16.msrb.mxu1 %v3518_v23  ;;  %v4238_v23 = vor.u32 %v4629_v19, %v4235_v35  ;;  %v3963_v54 = vld [vmem:[#allocation5 + $0x5d8] sm:$0xf0]  ;;  %v3742_v7 = vor.u32 %v4505_v36, %v3739_v25  ;;  %v2353_v56 = vadd.f32 %v2352_v59, %v2334_v4  ;;  %v4366_v2 = vor.u32 %v4661_v14, %v4363_v31  ;;  %v4657_v9 = vld [vmem:[#allocation5 + $0x8cc] sm:$0xf] }
 0x134   : > { %v4219_v32 = vld [vmem:[#allocation5 + $0x7d8] sm:$0xf0]  ;;  %v3966_v37 = vor.u32 %v4561_v62, %v3963_v54  ;;  %v2317_v17 = vadd.f32 %v5425_v5, %v2298_v55  ;;  %2655 = vmatmul.bf16.gmra.mxu0 %v5291_v45  ;;  %2674 = vmatmul.bf16.gmra.mxu1 %v5297_v1  ;;  %v4621_v8 = vld [vmem:[#allocation5 + $0x7ac] sm:$0xf] }
 0x135   : > { %2780 = vmatpush.bf16.msrb.mxu3 %v3774_v30  ;;  %2762 = vmatpush.bf16.msrb.mxu2 %v3630_v6  ;;  %v5464_v10 = vpop.f32.mrf.mxu1  ;;  %v4110_v30 = vor.u32 %v4597_v15, %v4107_v11  ;;  %v4091_v6 = vld [vmem:[#allocation5 + $0x6d8] sm:$0xf0]  ;;  %2878 = vst [vmem:[%s5433_s26 + $0x40] sm:$0xff] %v2353_v56  ;;  %v2949_v26 = vmul.f32 %v2353_v56, %v2353_v56  ;;  %v4589_v16 = vld [vmem:[#allocation5 + $0x6ac] sm:$0xf] }
 0x136   : > { %2724 = vmatpush.bf16.msrb.mxu0 %v3374_v28  ;;  %v4625_v28 = vld [vmem:[#allocation5 + $0x7cc] sm:$0xf]  ;;  %v5466_v12 = vpop.f32.mrf.mxu2  ;;  %v4347_v58 = vld [vmem:[#allocation5 + $0x8d8] sm:$0xf0]  ;;  %v4094_v34 = vor.u32 %v4593_v51, %v4091_v6  ;;  %2693 = vmatmul.bf16.gmra.mxu2 %v5315_v20 }
 0x137   : > { %2743 = vmatpush.bf16.msrb.mxu1 %v3502_v22  ;;  %v3947_v38 = vld [vmem:[#allocation5 + $0x5b8] sm:$0xf0]  ;;  %v2887_v22 = vadd.f32 %v2886_v40, %v2353_v56  ;;  %v4222_v53 = vor.u32 %v4625_v28, %v4219_v32  ;;  %v2958_v5 = vadd.f32 %v2957_v3, %v2949_v26  ;;  %v4350_v19 = vor.u32 %v4657_v9, %v4347_v58  ;;  %v4553_v36 = vld [vmem:[#allocation5 + $0x58c] sm:$0xf] }
 0x138   : > { %v4203_v18 = vld [vmem:[#allocation5 + $0x7b8] sm:$0xf0]  ;;  %v3950_v35 = vor.u32 %v4557_v41, %v3947_v38  ;;  %v4617_v14 = vld [vmem:[#allocation5 + $0x78c] sm:$0xf] }
 0x139   : > { %2781 = vmatpush.bf16.msrb.mxu3 %v3758_v43  ;;  %2763 = vmatpush.bf16.msrb.mxu2 %v3614_v52  ;;  %v4075_v40 = vld [vmem:[#allocation5 + $0x6b8] sm:$0xf0]  ;;  %v4653_v43 = vld [vmem:[#allocation5 + $0x8ac] sm:$0xf]  ;;  %v2336_v52 = vadd.f32 %v5442_v42, %v2317_v17  ;;  %v2354_v15 = vpop.f32.mrf.mxu0 }
 0x13a   : > { %2725 = vmatpush.bf16.msrb.mxu0 %v3358_v39  ;;  %v5472_v57 = vpop.f32.mrf.mxu3  ;;  %v4331_v39 = vld [vmem:[#allocation5 + $0x8b8] sm:$0xf0]  ;;  %v4078_v3 = vor.u32 %v4589_v16, %v4075_v40  ;;  %v4585_v4 = vld [vmem:[#allocation5 + $0x68c] sm:$0xf] }
 0x13b   : > { %2744 = vmatpush.bf16.msrb.mxu1 %v3486_v50  ;;  %v3931_v25 = vld [vmem:[#allocation5 + $0x598] sm:$0xf0]  ;;  %v2355_v31 = vadd.f32 %v2354_v15, %v2336_v52  ;;  %v4334_v62 = vor.u32 %v4653_v43, %v4331_v39  ;;  %v4649_v42 = vld [vmem:[#allocation5 + $0x88c] sm:$0xf]  ;;  %2712 = vmatmul.bf16.gmra.mxu3 %v5176_v49 }
 0x13c   : > { %v4187_v50 = vld [vmem:[#allocation5 + $0x798] sm:$0xf0]  ;;  %v3934_v54 = vor.u32 %v4553_v36, %v3931_v25  ;;  %v4581_v58 = vld [vmem:[#allocation5 + $0x66c] sm:$0xf] }
 0x13d   : > { %2832 = vmatpush.bf16.msra.mxu2 %v4238_v23  ;;  %2782 = vmatpush.bf16.msrb.mxu3 %v3742_v7  ;;  %v5476_v11 = vpop.f32.mrf.mxu1  ;;  %v4059_v55 = vld [vmem:[#allocation5 + $0x698] sm:$0xf0]  ;;  %v4549_v7 = vld [vmem:[#allocation5 + $0x56c] sm:$0xf]  ;;  %2882 = vst [vmem:[%s5433_s26 + $0x60] sm:$0xff] %v2355_v31  ;;  %v5482_v28 = vadd.f32 %v2887_v22, %v2355_v31  ;;  %v2953_v32 = vmul.f32 %v2355_v31, %v2355_v31 }
 0x13e   : > { %2794 = vmatpush.bf16.msra.mxu0 %v3982_v47  ;;  %v4206_v47 = vor.u32 %v4621_v8, %v4203_v18  ;;  %v5478_v23 = vpop.f32.mrf.mxu2  ;;  %v4315_v59 = vld [vmem:[#allocation5 + $0x898] sm:$0xf0]  ;;  %v4190_v56 = vor.u32 %v4617_v14, %v4187_v50  ;;  %v4645_v38 = vld [vmem:[#allocation5 + $0x86c] sm:$0xf] }
 0x13f   : > { %2813 = vmatpush.bf16.msra.mxu1 %v4110_v30  ;;  %v3915_v30 = vld [vmem:[#allocation5 + $0x578] sm:$0xf0]  ;;  %v5486_v9 = vadd.f32 %v2958_v5, %v2953_v32  ;;  %v4318_v49 = vor.u32 %v4649_v42, %v4315_v59  ;;  %v4545_v26 = vld [vmem:[#allocation5 + $0x54c] sm:$0xf] }
 0x140   : > { %v4171_v51 = vld [vmem:[#allocation5 + $0x778] sm:$0xf0]  ;;  %v3918_v17 = vor.u32 %v4549_v7, %v3915_v30  ;;  %v4609_v5 = vld [vmem:[#allocation5 + $0x74c] sm:$0xf]  ;;  %v5689_v7 = vld [vmem:[#allocation15_spill] sm:$0xff] }
 0x141   : > { %2851 = vmatpush.bf16.msra.mxu3 %v4366_v2  ;;  %2833 = vmatpush.bf16.msra.mxu2 %v4222_v53  ;;  %v4062_v2 = vor.u32 %v4585_v4, %v4059_v55  ;;  %v4043_v41 = vld [vmem:[#allocation5 + $0x678] sm:$0xf0]  ;;  %v4577_v39 = vld [vmem:[#allocation5 + $0x64c] sm:$0xf] }
 0x142   : > { %2795 = vmatpush.bf16.msra.mxu0 %v3966_v37  ;;  %v4613_v37 = vld [vmem:[#allocation5 + $0x76c] sm:$0xf]  ;;  %v5484_v6 = vpop.f32.mrf.mxu3  ;;  %v4299_v22 = vld [vmem:[#allocation5 + $0x878] sm:$0xf0] }
 0x143   : > { %2814 = vmatpush.bf16.msra.mxu1 %v4094_v34  ;;  %v3899_v53 = vld [vmem:[#allocation5 + $0x558] sm:$0xf0]  ;;  %v5488_v34 = vpop.f32.mrf.mxu0  ;;  %v4174_v18 = vor.u32 %v4613_v37, %v4171_v51  ;;  %v4302_v40 = vor.u32 %v4645_v38, %v4299_v22  ;;  %v4641_v25 = vld [vmem:[#allocation5 + $0x84c] sm:$0xf] }
 0x144   : > { %v3902_v43 = vor.u32 %v4545_v26, %v3899_v53  ;;  %v4027_v36 = vld [vmem:[#allocation5 + $0x658] sm:$0xf0]  ;;  %2726 = vmatmul.bf16.vlgmr.msrb.gmra.mxu0 %v5173_v44  ;;  %2745 = vmatmul.bf16.vlgmr.msrb.gmra.mxu1 %v5187_v61  ;;  %v4605_v50 = vld [vmem:[#allocation5 + $0x72c] sm:$0xf]  ;;  %v5690_v26 = vld [vmem:[#allocation17_spill] sm:$0xff] }
 0x145   : > { %2852 = vmatpush.bf16.msra.mxu3 %v4350_v19  ;;  %2834 = vmatpush.bf16.msra.mxu2 %v4206_v47  ;;  %v5490_v8 = vpop.f32.mrf.mxu1  ;;  %v4046_v19 = vor.u32 %v4581_v58, %v4043_v41  ;;  %v4283_v52 = vld [vmem:[#allocation5 + $0x858] sm:$0xf0]  ;;  %v4541_v47 = vld [vmem:[#allocation5 + $0x52c] sm:$0xf]  ;;  %v4030_v14 = vor.u32 %v4577_v39, %v4027_v36 }
 0x146   : > { %2796 = vmatpush.bf16.msra.mxu0 %v3950_v35  ;;  %v4155_v35 = vld [vmem:[#allocation5 + $0x758] sm:$0xf0]  ;;  %v5492_v16 = vpop.f32.mrf.mxu2  ;;  %v4573_v55 = vld [vmem:[#allocation5 + $0x62c] sm:$0xf]  ;;  %2764 = vmatmul.bf16.vlgmr.msrb.gmra.mxu2 %v5689_v7 }
 0x147   : > { %2815 = vmatpush.bf16.msra.mxu1 %v4078_v3  ;;  %v3883_v15 = vld [vmem:[#allocation5 + $0x538] sm:$0xf0]  ;;  %v4158_v3 = vor.u32 %v4609_v5, %v4155_v35  ;;  %v4637_v59 = vld [vmem:[#allocation5 + $0x82c] sm:$0xf] }
 0x148   : > { %v4139_v31 = vld [vmem:[#allocation5 + $0x738] sm:$0xf0]  ;;  %v3886_v4 = vor.u32 %v4541_v47, %v3883_v15  ;;  %v4537_v30 = vld [vmem:[#allocation5 + $0x50c] sm:$0xf] }
 0x149   : > { %2853 = vmatpush.bf16.msra.mxu3 %v4334_v62  ;;  %2835 = vmatpush.bf16.msra.mxu2 %v4190_v56  ;;  %v4011_v42 = vld [vmem:[#allocation5 + $0x638] sm:$0xf0]  ;;  %v4601_v51 = vld [vmem:[#allocation5 + $0x70c] sm:$0xf] }
 0x14a   : > { %2797 = vmatpush.bf16.msra.mxu0 %v3934_v54  ;;  %v5496_v62 = vpop.f32.mrf.mxu3  ;;  %v4286_v54 = vor.u32 %v4641_v25, %v4283_v52  ;;  %v4267_v44 = vld [vmem:[#allocation5 + $0x838] sm:$0xf0]  ;;  %v4014_v37 = vor.u32 %v4573_v55, %v4011_v42  ;;  %v4569_v38 = vld [vmem:[#allocation5 + $0x60c] sm:$0xf] }
 0x14b   : > { %2816 = vmatpush.bf16.msra.mxu1 %v4062_v2  ;;  %v3867_v61 = vld [vmem:[#allocation5 + $0x518] sm:$0xf0]  ;;  %v2425_v32 = vpop.f32.mrf.mxu0  ;;  %v4142_v2 = vor.u32 %v4605_v50, %v4139_v31  ;;  %2783 = vmatmul.bf16.vlgmr.msrb.gmra.mxu3 %v5690_v26  ;;  %v4633_v53 = vld [vmem:[#allocation5 + $0x80c] sm:$0xf] }
 0x14c   : > { %v4123_v58 = vld [vmem:[#allocation5 + $0x718] sm:$0xf0]  ;;  %v3870_v41 = vor.u32 %v4537_v30, %v3867_v61 }
 0x14d   : > { %2854 = vmatpush.bf16.msra.mxu3 %v4318_v49  ;;  %2836 = vmatpush.bf16.msra.mxu2 %v4174_v18  ;;  %v2444_v56 = vpop.f32.mrf.mxu1  ;;  %v3995_v22 = vld [vmem:[#allocation5 + $0x618] sm:$0xf0] }
 0x14e   : > { %2798 = vmatpush.bf16.msra.mxu0 %v3918_v17  ;;  %v2461_v49 = vpop.f32.mrf.mxu2  ;;  %v4270_v17 = vor.u32 %v4637_v59, %v4267_v44  ;;  %v4251_v18 = vld [vmem:[#allocation5 + $0x818] sm:$0xf0]  ;;  %v3998_v5 = vor.u32 %v4569_v38, %v3995_v22 }
 0x14f   : > { %2817 = vmatpush.bf16.msra.mxu1 %v4046_v19  ;;  %v4126_v19 = vor.u32 %v4601_v51, %v4123_v58  ;;  %v5691_v47 = vld [vmem:[#allocation16_spill] sm:$0xff] }
 0x151   : > { %2855 = vmatpush.bf16.msra.mxu3 %v4302_v40  ;;  %2837 = vmatpush.bf16.msra.mxu2 %v4158_v3  ;;  %v4254_v40 = vor.u32 %v4633_v53, %v4251_v18 }
 0x152   : > { %2799 = vmatpush.bf16.msra.mxu0 %v3902_v43  ;;  %v2480_v35 = vpop.f32.mrf.mxu3  ;;  %v2386_v43 = vadd.f32 %v5450_v21, %v5422_v48  ;;  %v2388_v48 = vadd.f32 %v5466_v12, %v5447_v0 }
 0x153   : > { %2818 = vmatpush.bf16.msra.mxu1 %v4030_v14  ;;  %v2428_v39 = vpop.f32.mrf.mxu0 }
 0x154   : > { %v2405_v52 = vadd.f32 %v5460_v63, %v2386_v43  ;;  %2731 = vmatmul.bf16.gmra.mxu0 %v5691_v47  ;;  %2750 = vmatmul.bf16.gmra.mxu1 %v5218_v24  ;;  %v2407_v63 = vadd.f32 %v5472_v57, %v2388_v48 }
 0x155   : > { %2856 = vmatpush.bf16.msra.mxu3 %v4286_v54  ;;  %2838 = vmatpush.bf16.msra.mxu2 %v4142_v2  ;;  %v2447_v36 = vpop.f32.mrf.mxu1 }
 0x156   : > { %2800 = vmatpush.bf16.msra.mxu0 %v3886_v4  ;;  %v2463_v25 = vpop.f32.mrf.mxu2  ;;  %v2424_v15 = vadd.f32 %v5488_v34, %v2405_v52  ;;  %2769 = vmatmul.bf16.gmra.mxu2 %v5229_v33  ;;  %v2426_v4 = vadd.f32 %v2425_v32, %v2407_v63  ;;  %v2391_v34 = vadd.f32 %v5478_v23, %v5464_v10  ;;  %v2960_v52 = vrot.slane %v5486_v9, 4 }
 0x157   : > { %2819 = vmatpush.bf16.msra.mxu1 %v4014_v37  ;;  %v2393_v10 = vadd.f32 %v5492_v16, %v5476_v11 }
 0x158   : > { %v2443_v50 = vadd.f32 %v5490_v8, %v2424_v15  ;;  %v2445_v0 = vadd.f32 %v2444_v56, %v2426_v4  ;;  %v2410_v8 = vadd.f32 %v5484_v6, %v2391_v34 }
 0x159   : > { %2857 = vmatpush.bf16.msra.mxu3 %v4270_v17  ;;  %2839 = vmatpush.bf16.msra.mxu2 %v4126_v19 }
 0x15a   : > { %2801 = vmatpush.bf16.msra.mxu0 %v3870_v41  ;;  %v2482_v3 = vpop.f32.mrf.mxu3  ;;  %v2462_v54 = vadd.f32 %v2461_v49, %v2443_v50  ;;  %v2464_v7 = vadd.f32 %v2463_v25, %v2445_v0  ;;  %v2429_v57 = vadd.f32 %v2428_v39, %v2410_v8 }
 0x15b   : > { %2820 = vmatpush.bf16.msra.mxu1 %v3998_v5  ;;  %v2430_v21 = vpop.f32.mrf.mxu0  ;;  %2788 = vmatmul.bf16.gmra.mxu3 %v5280_v29  ;;  %v5692_v29 = vld [vmem:[#allocation18_spill] sm:$0xff] }
 0x15c   : > { %v2481_v33 = vadd.f32 %v2480_v35, %v2462_v54  ;;  %v2483_v23 = vadd.f32 %v2482_v3, %v2464_v7  ;;  %v2448_v56 = vadd.f32 %v2447_v36, %v2429_v57  ;;  %v2961_v3 = vadd.f32 %v2960_v52, %v5486_v9 }
 0x15d   : > { %2858 = vmatpush.bf16.msra.mxu3 %v4254_v40  ;;  %v2449_v14 = vpop.f32.mrf.mxu1  ;;  %v2889_v40 = vrot.slane %v5482_v28, 4 }
 0x15e   : > { %v2466_v31 = vpop.f32.mrf.mxu2  ;;  %v2962_v4 = vrot.slane %v2961_v3, 2 }
 0x15f   : > { %v2467_v37 = vadd.f32 %v2466_v31, %v2448_v56 }
 0x162   : > { %v2485_v24 = vpop.f32.mrf.mxu3 }
 0x163   : > { %v2499_v55 = vpop.f32.mrf.mxu0  ;;  %v2486_v16 = vadd.f32 %v2485_v24, %v2467_v37 }
 0x164   : > { %v2500_v59 = vadd.f32 %v2499_v55, %v2481_v33  ;;  %2802 = vmatmul.bf16.vlgmr.msra.gmra.mxu0 %v5692_v29  ;;  %2821 = vmatmul.bf16.vlgmr.msra.gmra.mxu1 %v5251_v27  ;;  %v2412_v27 = vadd.f32 %v5496_v62, %v2393_v10 }
 0x165   : > { %v2518_v42 = vpop.f32.mrf.mxu1 }
 0x166   : > { %v2468_v12 = vpop.f32.mrf.mxu2  ;;  %v2519_v44 = vadd.f32 %v2518_v42, %v2500_v59  ;;  %2840 = vmatmul.bf16.vlgmr.msra.gmra.mxu2 %v5269_v13  ;;  %v2431_v49 = vadd.f32 %v2430_v21, %v2412_v27 }
 0x168   : > { %2871 = vst [vmem:[%s5433_s26 + $0x8] sm:$0xff] %v2519_v44  ;;  %v2942_v17 = vmul.f32 %v2519_v44, %v2519_v44  ;;  %v2450_v26 = vadd.f32 %v2449_v14, %v2431_v49 }
 0x16a   : > { %v2487_v30 = vpop.f32.mrf.mxu3  ;;  %v2469_v18 = vadd.f32 %v2468_v12, %v2450_v26 }
 0x16b   : > { %v2501_v61 = vpop.f32.mrf.mxu0  ;;  %2859 = vmatmul.bf16.vlgmr.msra.gmra.mxu3 %v5305_v46 }
 0x16c   : > { %v2502_v2 = vadd.f32 %v2501_v61, %v2483_v23  ;;  %v2488_v43 = vadd.f32 %v2487_v30, %v2469_v18 }
 0x16d   : > { %v2520_v32 = vpop.f32.mrf.mxu1 }
 0x16e   : > { %v5521_v6 = vpop.f32.mrf.mxu2  ;;  %v2521_v51 = vadd.f32 %v2520_v32, %v2502_v2 }
 0x170   : > { %2875 = vst [vmem:[%s5433_s26 + $0x28] sm:$0xff] %v2521_v51  ;;  %v2895_v13 = vadd.f32 %v2521_v51, %v2519_v44  ;;  %v2946_v11 = vmul.f32 %v2521_v51, %v2521_v51 }
 0x172   : > { %v5525_v58 = vpop.f32.mrf.mxu3  ;;  %v2966_v41 = vadd.f32 %v2946_v11, %v2942_v17 }
 0x173   : > { %v2504_v38 = vpop.f32.mrf.mxu0 }
 0x174   : > { %v2505_v46 = vadd.f32 %v2504_v38, %v2486_v16  ;;  %2807 = vmatmul.bf16.gmra.mxu0 %v5283_v60  ;;  %2826 = vmatmul.bf16.gmra.mxu1 %v5291_v45  ;;  %v2890_v45 = vadd.f32 %v2889_v40, %v5482_v28  ;;  %v2963_v28 = vadd.f32 %v2962_v4, %v2961_v3 }
 0x175   : > { %v2523_v22 = vpop.f32.mrf.mxu1 }
 0x176   : > { %v5528_v53 = vpop.f32.mrf.mxu2  ;;  %v2524_v62 = vadd.f32 %v2523_v22, %v2505_v46  ;;  %2845 = vmatmul.bf16.gmra.mxu2 %v5297_v1  ;;  %v2891_v14 = vrot.slane %v2890_v45, 2  ;;  %v2964_v57 = vrot.slane %v2963_v28, 1 }
 0x178   : > { %2879 = vst [vmem:[%s5433_s26 + $0x48] sm:$0xff] %v2524_v62  ;;  %v2896_v5 = vadd.f32 %v2895_v13, %v2524_v62  ;;  %v2950_v35 = vmul.f32 %v2524_v62, %v2524_v62  ;;  %v2892_v55 = vadd.f32 %v2891_v14, %v2890_v45  ;;  %v2965_v2 = vadd.f32 %v2964_v57, %v2963_v28 }
 0x17a   : > { %v5532_v19 = vpop.f32.mrf.mxu3  ;;  %v2967_v39 = vadd.f32 %v2966_v41, %v2950_v35  ;;  %v2893_v59 = vrot.slane %v2892_v55, 1  ;;  %v2557_v41 = vadd.f32 %v5525_v58, %v5521_v6 }
 0x17b   : > { %v2506_v36 = vpop.f32.mrf.mxu0  ;;  %2864 = vmatmul.bf16.gmra.mxu3 %v5315_v20 }
 0x17c   : > { %v2507_v60 = vadd.f32 %v2506_v36, %v2488_v43  ;;  %v2894_v61 = vadd.f32 %v2893_v59, %v2892_v55 }
 0x17d   : > { %v2525_v25 = vpop.f32.mrf.mxu1 }
 0x17e   : > { %v5538_v47 = vpop.f32.mrf.mxu2  ;;  %v2526_v15 = vadd.f32 %v2525_v25, %v2507_v60 }
 0x180   : > { %2883 = vst [vmem:[%s5433_s26 + $0x68] sm:$0xff] %v2526_v15  ;;  %v2897_v1 = vadd.f32 %v2896_v5, %v2526_v15  ;;  %v2954_v21 = vmul.f32 %v2526_v15, %v2526_v15  ;;  %v2559_v5 = vadd.f32 %v5532_v19, %v5528_v53 }
 0x182   : > { %v2561_v48 = vpop.f32.mrf.mxu3  ;;  %v2898_v50 = vrot.slane %v2897_v1, 4  ;;  %v2968_v31 = vadd.f32 %v2967_v39, %v2954_v21 }
 0x183   : > { %v2575_v63 = vpop.f32.mrf.mxu0  ;;  %v2562_v6 = vadd.f32 %v2561_v48, %v5538_v47 }
 0x184   : > { %v2899_v24 = vadd.f32 %v2898_v50, %v2897_v1  ;;  %v2969_v34 = vrot.slane %v2968_v31, 4  ;;  %v2576_v38 = vadd.f32 %v2575_v63, %v2557_v41 }
 0x185   : > { %v2594_v54 = vpop.f32.mrf.mxu1 }
 0x186   : > { %v2544_v33 = vpop.f32.mrf.mxu2  ;;  %v2900_v20 = vrot.slane %v2899_v24, 2  ;;  %v2970_v42 = vadd.f32 %v2969_v34, %v2968_v31  ;;  %v2595_v18 = vadd.f32 %v2594_v54, %v2576_v38 }
 0x188   : > { %v2901_v0 = vadd.f32 %v2900_v20, %v2899_v24  ;;  %v2971_v12 = vrot.slane %v2970_v42, 2 }
 0x18a   : > { %v2563_v9 = vpop.f32.mrf.mxu3  ;;  %v2902_v8 = vrot.slane %v2901_v0, 1  ;;  %v2972_v7 = vadd.f32 %v2971_v12, %v2970_v42 }
 0x18b   : > { %v2577_v44 = vpop.f32.mrf.mxu0  ;;  %v2564_v63 = vadd.f32 %v2563_v9, %v2544_v33 }
 0x18c   : > { %v2903_v30 = vadd.f32 %v2902_v8, %v2901_v0  ;;  %v2973_v10 = vrot.slane %v2972_v7, 1  ;;  %v2578_v40 = vadd.f32 %v2577_v44, %v2559_v5 }
 0x18d   : > { %v2596_v29 = vpop.f32.mrf.mxu1 }
 0x18e   : > { %v2613_v23 = vpop.f32.mrf.mxu2  ;;  %v2926_v32 = vrot.slane %v2903_v30, 7  ;;  %v2974_v56 = vadd.f32 %v2973_v10, %v2972_v7  ;;  %v2597_v52 = vadd.f32 %v2596_v29, %v2578_v40 }
 0x18f   : > { %v2614_v35 = vadd.f32 %v2613_v23, %v2595_v18 }
 0x190   : > { %v2997_v27 = vrot.slane %v2974_v56, 7  ;;  %v5545_v51 = vsel %vm355_vm1, %v2894_v61, %v2926_v32 }
 0x192   : > { %v2632_v37 = vpop.f32.mrf.mxu3  ;;  %v5548_v49 = vsel %vm355_vm1, %v2965_v2, %v2997_v27 }
 0x193   : > { %v2580_v17 = vpop.f32.mrf.mxu0  ;;  %v2633_v25 = vadd.f32 %v2632_v37, %v2614_v35 }
 0x194   : > { %v2581_v15 = vadd.f32 %v2580_v17, %v2562_v6 }
 0x195   : > { %v2599_v13 = vpop.f32.mrf.mxu1 }
 0x196   : > { %v2615_v11 = vpop.f32.mrf.mxu2  ;;  %v2600_v19 = vadd.f32 %v2599_v13, %v2581_v15 }
 0x197   : > { %v2616_v58 = vadd.f32 %v2615_v11, %v2597_v52 }
 0x19a   : > { %v2634_v16 = vpop.f32.mrf.mxu3 }
 0x19b   : > { %v2582_v22 = vpop.f32.mrf.mxu0  ;;  %v2635_v50 = vadd.f32 %v2634_v16, %v2616_v58 }
 0x19c   : > { %v2583_v24 = vadd.f32 %v2582_v22, %v2564_v63 }
 0x19d   : > { %v2601_v26 = vpop.f32.mrf.mxu1 }
 0x19e   : > { %v2618_v46 = vpop.f32.mrf.mxu2  ;;  %v2602_v28 = vadd.f32 %v2601_v26, %v2583_v24 }
 0x19f   : > { %v2619_v4 = vadd.f32 %v2618_v46, %v2600_v19 }
 0x1a2   : > { %v2637_v62 = vpop.f32.mrf.mxu3 }
 0x1a3   : > { %v2651_v43 = vpop.f32.mrf.mxu0  ;;  %v2638_v48 = vadd.f32 %v2637_v62, %v2619_v4 }
 0x1a4   : > { %v2652_v60 = vadd.f32 %v2651_v43, %v2633_v25 }
 0x1a5   : > { %v2670_v39 = vpop.f32.mrf.mxu1 }
 0x1a6   : > { %v2620_v36 = vpop.f32.mrf.mxu2  ;;  %v2671_v3 = vadd.f32 %v2670_v39, %v2652_v60 }
 0x1a7   : > { %v2621_v44 = vadd.f32 %v2620_v36, %v2602_v28 }
 0x1aa   : > { %v2639_v45 = vpop.f32.mrf.mxu3 }
 0x1ab   : > { %v2653_v1 = vpop.f32.mrf.mxu0  ;;  %v2640_v10 = vadd.f32 %v2639_v45, %v2621_v44 }
 0x1ac   : > { %v2654_v31 = vadd.f32 %v2653_v1, %v2635_v50 }
 0x1ad   : > { %v2672_v21 = vpop.f32.mrf.mxu1 }
 0x1ae   : > { %v2689_v14 = vpop.f32.mrf.mxu2  ;;  %v2673_v34 = vadd.f32 %v2672_v21, %v2654_v31 }
 0x1af   : > { %v2690_v53 = vadd.f32 %v2689_v14, %v2671_v3 }
 0x1b1   : > { %2872 = vst [vmem:[%s5433_s26 + $0x10] sm:$0xff] %v2690_v53  ;;  %v2943_v0 = vmul.f32 %v2690_v53, %v2690_v53 }
 0x1b2   : > { %v2708_v54 = vpop.f32.mrf.mxu3 }
 0x1b3   : > { %v2656_v55 = vpop.f32.mrf.mxu0 }
 0x1b4   : > { %v2657_v8 = vadd.f32 %v2656_v55, %v2638_v48 }
 0x1b5   : > { %v2675_v20 = vpop.f32.mrf.mxu1 }
 0x1b6   : > { %v2691_v47 = vpop.f32.mrf.mxu2  ;;  %v2676_v33 = vadd.f32 %v2675_v20, %v2657_v8 }
 0x1b7   : > { %v2692_v42 = vadd.f32 %v2691_v47, %v2673_v34 }
 0x1b9   : > { %2876 = vst [vmem:[%s5433_s26 + $0x30] sm:$0xff] %v2692_v42  ;;  %v2904_v12 = vadd.f32 %v2692_v42, %v2690_v53  ;;  %v2947_v59 = vmul.f32 %v2692_v42, %v2692_v42 }
 0x1ba   : > { %v2710_v7 = vpop.f32.mrf.mxu3 }
 0x1bb   : > { %v2975_v29 = vadd.f32 %v2947_v59, %v2943_v0  ;;  %v2658_v9 = vpop.f32.mrf.mxu0 }
 0x1bc   : > { %v2659_v56 = vadd.f32 %v2658_v9, %v2640_v10 }
 0x1bd   : > { %v2677_v57 = vpop.f32.mrf.mxu1 }
 0x1be   : > { %v2694_v30 = vpop.f32.mrf.mxu2  ;;  %v2678_v37 = vadd.f32 %v2677_v57, %v2659_v56 }
 0x1bf   : > { %v2695_v23 = vadd.f32 %v2694_v30, %v2676_v33 }
 0x1c1   : > { %2880 = vst [vmem:[%s5433_s26 + $0x50] sm:$0xff] %v2695_v23  ;;  %v2905_v61 = vadd.f32 %v2904_v12, %v2695_v23  ;;  %v2951_v32 = vmul.f32 %v2695_v23, %v2695_v23 }
 0x1c2   : > { %v2713_v2 = vpop.f32.mrf.mxu3 }
 0x1c3   : > { %v2976_v27 = vadd.f32 %v2975_v29, %v2951_v32  ;;  %v2727_v17 = vpop.f32.mrf.mxu0 }
 0x1c4   : > { %v2728_v36 = vadd.f32 %v2727_v17, %v2708_v54 }
 0x1c5   : > { %v2746_v13 = vpop.f32.mrf.mxu1 }
 0x1c6   : > { %v2696_v11 = vpop.f32.mrf.mxu2  ;;  %v2747_v45 = vadd.f32 %v2746_v13, %v2728_v36 }
 0x1c7   : > { %v2697_v16 = vadd.f32 %v2696_v11, %v2678_v37 }
 0x1c9   : > { %2884 = vst [vmem:[%s5433_s26 + $0x70] sm:$0xff] %v2697_v16  ;;  %v5559_v41 = vadd.f32 %v2905_v61, %v2697_v16  ;;  %v2955_v38 = vmul.f32 %v2697_v16, %v2697_v16 }
 0x1ca   : > { %v2715_v22 = vpop.f32.mrf.mxu3 }
 0x1cb   : > { %v5561_v26 = vadd.f32 %v2976_v27, %v2955_v38  ;;  %v2729_v46 = vpop.f32.mrf.mxu0  ;;  %v2907_v13 = vrot.slane %v5559_v41, 4 }
 0x1cc   : > { %v2730_v15 = vadd.f32 %v2729_v46, %v2710_v7 }
 0x1cd   : > { %v2748_v18 = vpop.f32.mrf.mxu1  ;;  %v2978_v38 = vrot.slane %v5561_v26, 4 }
 0x1ce   : > { %v2765_v62 = vpop.f32.mrf.mxu2  ;;  %v2749_v50 = vadd.f32 %v2748_v18, %v2730_v15  ;;  %v2908_v18 = vadd.f32 %v2907_v13, %v5559_v41 }
 0x1cf   : > { %v2766_v58 = vadd.f32 %v2765_v62, %v2747_v45 }
 0x1d2   : > { %v2784_v5 = vpop.f32.mrf.mxu3 }
 0x1d3   : > { %v2732_v35 = vpop.f32.mrf.mxu0  ;;  %v2785_v14 = vadd.f32 %v2784_v5, %v2766_v58 }
 0x1d4   : > { %v2733_v63 = vadd.f32 %v2732_v35, %v2713_v2  ;;  %v2979_v35 = vadd.f32 %v2978_v38, %v5561_v26 }
 0x1d5   : > { %v2751_v40 = vpop.f32.mrf.mxu1 }
 0x1d6   : > { %v2767_v43 = vpop.f32.mrf.mxu2  ;;  %v2752_v47 = vadd.f32 %v2751_v40, %v2733_v63  ;;  %v2980_v45 = vrot.slane %v2979_v35, 2 }
 0x1d7   : > { %v2768_v31 = vadd.f32 %v2767_v43, %v2749_v50 }
 0x1da   : > { %v2786_v39 = vpop.f32.mrf.mxu3 }
 0x1db   : > { %v2734_v25 = vpop.f32.mrf.mxu0  ;;  %v2787_v34 = vadd.f32 %v2786_v39, %v2768_v31 }
 0x1dc   : > { %v2735_v12 = vadd.f32 %v2734_v25, %v2715_v22  ;;  %v2909_v25 = vrot.slane %v2908_v18, 2 }
 0x1dd   : > { %v2753_v52 = vpop.f32.mrf.mxu1 }
 0x1de   : > { %v2770_v60 = vpop.f32.mrf.mxu2  ;;  %v2754_v33 = vadd.f32 %v2753_v52, %v2735_v12 }
 0x1df   : > { %v2771_v28 = vadd.f32 %v2770_v60, %v2752_v47 }
 0x1e2   : > { %v2789_v6 = vpop.f32.mrf.mxu3 }
 0x1e3   : > { %v2803_v3 = vpop.f32.mrf.mxu0  ;;  %v2790_v44 = vadd.f32 %v2789_v6, %v2771_v28 }
 0x1e4   : > { %v2804_v53 = vadd.f32 %v2803_v3, %v2785_v14 }
 0x1e5   : > { %v2822_v21 = vpop.f32.mrf.mxu1 }
 0x1e6   : > { %v2772_v1 = vpop.f32.mrf.mxu2  ;;  %v2823_v4 = vadd.f32 %v2822_v21, %v2804_v53 }
 0x1e7   : > { %v2773_v10 = vadd.f32 %v2772_v1, %v2754_v33 }
 0x1ea   : > { %v2791_v19 = vpop.f32.mrf.mxu3 }
 0x1eb   : > { %v2805_v24 = vpop.f32.mrf.mxu0  ;;  %v2792_v2 = vadd.f32 %v2791_v19, %v2773_v10 }
 0x1ec   : > { %v2806_v48 = vadd.f32 %v2805_v24, %v2787_v34 }
 0x1ed   : > { %v2824_v20 = vpop.f32.mrf.mxu1 }
 0x1ee   : > { %v2841_v54 = vpop.f32.mrf.mxu2  ;;  %v2825_v59 = vadd.f32 %v2824_v20, %v2806_v48 }
 0x1ef   : > { %v2842_v55 = vadd.f32 %v2841_v54, %v2823_v4 }
 0x1f2   : > { %v2860_v42 = vpop.f32.mrf.mxu3 }
 0x1f3   : > { %v2861_v0 = vadd.f32 %v2860_v42, %v2842_v55  ;;  %v2808_v8 = vpop.f32.mrf.mxu0 }
 0x1f4   : > { %v2809_v9 = vadd.f32 %v2808_v8, %v2790_v44 }
 0x1f5   : > { %2873 = vst [vmem:[%s5433_s26 + $0x18] sm:$0xff] %v2861_v0  ;;  %v2827_v30 = vpop.f32.mrf.mxu1  ;;  %v2944_v40 = vmul.f32 %v2861_v0, %v2861_v0 }
 0x1f6   : > { %v2843_v7 = vpop.f32.mrf.mxu2  ;;  %v2828_v61 = vadd.f32 %v2827_v30, %v2809_v9 }
 0x1f7   : > { %v2844_v29 = vadd.f32 %v2843_v7, %v2825_v59 }
 0x1fa   : > { %v2862_v57 = vpop.f32.mrf.mxu3 }
 0x1fb   : > { %v2863_v23 = vadd.f32 %v2862_v57, %v2844_v29  ;;  %v2810_v56 = vpop.f32.mrf.mxu0 }
 0x1fc   : > { %v2811_v37 = vadd.f32 %v2810_v56, %v2792_v2 }
 0x1fd   : > { %2877 = vst [vmem:[%s5433_s26 + $0x38] sm:$0xff] %v2863_v23  ;;  %v2829_v16 = vpop.f32.mrf.mxu1  ;;  %v2948_v62 = vmul.f32 %v2863_v23, %v2863_v23  ;;  %v2913_v43 = vadd.f32 %v2863_v23, %v2861_v0 }
 0x1fe   : > { %v2846_v32 = vpop.f32.mrf.mxu2  ;;  %v2830_v22 = vadd.f32 %v2829_v16, %v2811_v37 }
 0x1ff   : > { %v2847_v27 = vadd.f32 %v2846_v32, %v2828_v61  ;;  %v2984_v41 = vadd.f32 %v2948_v62, %v2944_v40 }
 0x202   : > { %v2865_v17 = vpop.f32.mrf.mxu3 }
 0x203   : > { %v2866_v11 = vadd.f32 %v2865_v17, %v2847_v27 }
 0x205   : > { %2881 = vst [vmem:[%s5433_s26 + $0x58] sm:$0xff] %v2866_v11  ;;  %v2952_v39 = vmul.f32 %v2866_v11, %v2866_v11  ;;  %v2914_v52 = vadd.f32 %v2913_v43, %v2866_v11 }
 0x206   : > { %v2848_v46 = vpop.f32.mrf.mxu2 }
 0x207   : > { %v2849_v5 = vadd.f32 %v2848_v46, %v2830_v22  ;;  %v2985_v6 = vadd.f32 %v2984_v41, %v2952_v39 }
 0x20a   : > { %v2867_v36 = vpop.f32.mrf.mxu3 }
 0x20b   : > { %v2868_v60 = vadd.f32 %v2867_v36, %v2849_v5 }
 0x20d   : > { %2885 = vst [vmem:[%s5433_s26 + $0x78] sm:$0xff] %v2868_v60  ;;  %v2915_v58 = vadd.f32 %v2914_v52, %v2868_v60  ;;  %v2956_v26 = vmul.f32 %v2868_v60, %v2868_v60 }
 0x20e   : > { %4828 = shalt.err (!%p4825_p10)
}
 0x20f   : > { %s4938_s21 = smov 512   ;;  %s4939_s26 = smov 32   ;;  %v2910_v15 = vadd.f32 %v2909_v25, %v2908_v18  ;;  %v2916_v3 = vrot.slane %v2915_v58, 4  ;;  %v2986_v1 = vadd.f32 %v2985_v6, %v2956_v26  ;;  %v2981_v21 = vadd.f32 %v2980_v45, %v2979_v35 }
 0x210   : > { %4674 = dma.vmem_to_hbm [thread:$0]  (%p5034_p7), %s5575_s6, 2048, %s5577_s7, %s3006_s11, %s4938_s21, %s4938_s21, %s4939_s26   ;;  %v2936_v20 = vlaneseq  ;;  %vm2931_vm5 = vcmask 1042434   ;;  %vm2933_vm6 = vcmask 1041408  }
 0x211   : > { %v2917_v14 = vadd.f32 %v2916_v3, %v2915_v58  ;;  %v2987_v50 = vrot.slane %v2986_v1, 4  ;;  %v2911_v53 = vrot.slane %v2910_v15, 1  ;;  %s3213_s24 = sshll.u32 %s5060_s23, 2  ;;  %s4372_s25 = sshll.u32 %s4986_s19, 2  ;;  %v2982_v63 = vrot.slane %v2981_v21, 1 }
 0x212   : > { %s3043_s6 = scalar_lea.hbm %s5671_s3, %s4372_s25  ;;  %s3010_s7 = sand.u32 1, %s4986_s19   ;;  %vm5603_vm7 = vcmp.lt.s32.totalorder %v2936_v20, 512 }
 0x213   : > { %v2918_v19 = vrot.slane %v2917_v14, 2  ;;  %v2988_v31 = vadd.f32 %v2987_v50, %v2986_v1  ;;  %v2912_v54 = vadd.f32 %v2911_v53, %v2910_v15  ;;  %v2983_v47 = vadd.f32 %v2982_v63, %v2981_v21  ;;  %s3057_s23 = scalar_lea.hbm %s5672_s4, %s4372_s25  ;;  %s245_s14 = scalar_lea.vmem [#allocation8], %s3213_s24 }
 0x214   : > { %s3045_s10 = sshll.u32 %s245_s14, 4  ;;  %s3047_s12 = sshll.u32 %s3043_s6, 4  ;;  %s3046_s10 = int_to_ptr.vmem [resolvable:$true] %s3045_s10  ;;  %s3048_s12 = int_to_ptr.hbm [resolvable:$true] %s3047_s12 }
 0x215   : > { %v2919_v4 = vadd.f32 %v2918_v19, %v2917_v14  ;;  %v2989_v24 = vrot.slane %v2988_v31, 2  ;;  %v2927_v28 = vrot.slane %v2912_v54, 6  ;;  %s3061_s19 = sshll.u32 %s3057_s23, 4  ;;  %s252_s20 = scalar_lea.vmem [#allocation10], %s3213_s24  ;;  %v2998_v8 = vrot.slane %v2983_v47, 6  ;;  %s5615_s19 = int_to_ptr.hbm [resolvable:$true] %s3061_s19 }
 0x216   : > { %s3059_s27 = sshll.u32 %s252_s20, 4  ;;  %s5617_s5 = scalar_lea.sflag [#allocation9], %s3010_s7  ;;  %s5613_s27 = int_to_ptr.vmem [resolvable:$true] %s3059_s27 }
 0x217   : > { %v2920_v34 = vrot.slane %v2919_v4, 1  ;;  %v2990_v55 = vadd.f32 %v2989_v24, %v2988_v31  ;;  %s4843_s21 = sshra.s32 %s3048_s12, 4  ;;  %s4849_s28 = scalar_lea.hbm %s5671_s3, 8  ;;  %s4844_s21 = int_to_ptr.hbm [resolvable:$true] %s4843_s21 }
 0x218   : > { %s4845_s26 = scalar_lea.hbm %s4844_s21, 4  ;;  %p4850_p3 = scmp.lt.s32.totalorder %s4844_s21, %s5671_s3 }
 0x219   : > { %v2921_v48 = vadd.f32 %v2920_v34, %v2919_v4  ;;  %v2991_v42 = vrot.slane %v2990_v55, 1  ;;  %p4846_p12 = scmp.ne.s32.totalorder %s4844_s21, %s4845_s26  ;;  %p4851_p5 = scmp.lt.s32.totalorder %s4849_s28, %s4845_s26 }
 0x21b   : > { %v2928_v0 = vrot.slane %v2921_v48, 5  ;;  %v2992_v12 = vadd.f32 %v2991_v42, %v2990_v55  ;;  %p4847_p13 = pnand %p4846_p12, %p5034_p7  ;;  %p4852_p1 = por %p4851_p5, %p4850_p3 }
 0x21d   : > { %v2999_v7 = vrot.slane %v2992_v12, 5  ;;  %v2932_v44 = vsel %vm2931_vm5, %v2927_v28, %v2928_v0  ;;  %p4848_p0 = pneg %p4847_p13 }
 0x21e   : > { %v2934_v29 = vsel %vm2933_vm6, %v5545_v51, %v2932_v44 }
 0x21f   : > { %2940 = vst.msk [vmem:[%s245_s14] sm:$0xf] %vm5603_vm7, %v2934_v29  ;;  %v3001_v33 = vsel %vm2931_vm5, %v2998_v8, %v2999_v7  ;;  %p4853_p4 = pnand %p4852_p1, %p4848_p0 }
 0x221   : > { %4856 = shalt.err (!%p4853_p4)
}
 0x222   : > { %4675 = dma.vmem_to_hbm [thread:$0]  (%p5034_p7), %s3046_s10, 64, %s3048_s12, %s5617_s5   ;;  %v3002_v51 = vsel %vm2933_vm6, %v5548_v49, %v3001_v33 }
 0x223   : > { %3004 = vst.msk [vmem:[%s252_s20] sm:$0xf] %vm5603_vm7, %v3002_v51  ;;  %s4871_s7 = sshra.s32 %s5615_s19, 4  ;;  %s4877_s14 = scalar_lea.hbm %s5672_s4, 8  ;;  %s4872_s7 = int_to_ptr.hbm [resolvable:$true] %s4871_s7 }
 0x224   : > { %s4873_s11 = scalar_lea.hbm %s4872_s7, 4  ;;  %p4878_p2 = scmp.lt.s32.totalorder %s4872_s7, %s5672_s4 }
 0x225   : > { %p4874_p8 = scmp.ne.s32.totalorder %s4872_s7, %s4873_s11  ;;  %p4879_p10 = scmp.lt.s32.totalorder %s4877_s14, %s4873_s11 }
 0x227   : > { %p4875_p11 = pnand %p4874_p8, %p5034_p7  ;;  %p4880_p12 = por %p4879_p10, %p4878_p2 }
 0x229   : > { %p4876_p9 = pneg %p4875_p11 }
 0x22b   : > { %p4881_p13 = pnand %p4880_p12, %p4876_p9 }
 0x22d   : > { %4884 = shalt.err (!%p4881_p13)
}
 0x22e   : > { %4676 = dma.vmem_to_hbm [thread:$0]  (%p5034_p7), %s5613_s27, 64, %s5615_s19, %s5617_s5  }
 0x22f PF: > { %s3073_s10 = sand.u32 1, %s4919_s15   ;;  %p5695_p0 = scmp.ge.s32.totalorder %s4931_s18, 2 }
 0x230   : > { %s3074_s12 = scalar_lea.sflag [#allocation4], %s3073_s10 }
 0x231   : > { %p4689_p3 = pnand %p5695_p0, %p5002_p6 }
 0x233   : > { %p4690_p5 = pneg %p4689_p3 }
 0x235   : > { %4910 = dma.done.wait (%p4690_p5), %s3074_s12, 2048  }
 0x236   : > { %4912 = vsyncadd (%p4690_p5), %s3074_s12, 4294965248  ;;  %s5696_s20 = sadd.s32 4294967294, %s4931_s18  }
 0x237   : > { %s3083_s24 = sand.u32 1, %s5696_s20  }
 0x238   : > { %s3084_s9 = scalar_lea.sflag [#allocation9], %s3083_s24 }
 0x239   : > { %4914 = dma.done.wait (%p4690_p5), %s3084_s9, 128  }
 0x23a   : > { %4916 = vsyncadd (%p4690_p5), %s3084_s9, 4294967168  ;;  %p22_p7 = scmp.ge.s32.totalorder %s5020_s29, 4   ;;  %s5697_s15 = smov %s4923_s16 }
 0x23b   : > { %s5698_s16 = smov %s4927_s17  ;;  %s5699_s17 = smov %s5030_s8 }
 0x23c   : > { %s5700_s18 = smov %s5020_s29  ;;  %24 = sbr.rel (!%p22_p7) target bundleno = 8 (0x8), region = 109 }
 0x241   :  { %3100 = vsyncpa [#allocation3], 1 }
 0x242   :  { %3102 = vsyncpa [#allocation3 + $0x1], 1 }
 0x243   :  { %3103 = vsyncpa [#allocation6], 1 }
 0x244   :  { %3104 = vsyncpa [#allocation4], 1 }
 0x245   :  { %3106 = vsyncpa [#allocation4 + $0x1], 1 }
 0x246   :  { %3107 = vsyncpa [#allocation9], 1 }
 0x247   :  { %3109 = vsyncpa [#allocation9 + $0x1], 1 }

</bundles_post_ra>
